<compile_context>
chip_gen: v7x
topology: tpu7x:2x2x1
jax: 0.10.0
libtpu: 0.0.40
codegen_flags: <defaults>
</compile_context>

<pallas_src>
import functools
import math

import jax
import jax.numpy as jnp
from jax.experimental import pallas as pl
from jax.experimental.pallas import tpu as pltpu

BATCH = 2
SEQ = 16
CHANNELS = 32
KSIZE = 5
EPS = 1e-5

_HI = jax.lax.Precision.HIGHEST


# ----------------------------------------------------------------------------
# Fused ConvModule forward kernel (single invocation, everything in registers)
# ----------------------------------------------------------------------------
def conv_module_kernel(x_ref, dcw_ref, pw1w_ref, dwv_ref, dwg_ref, pw2w_ref, vec_ref,
                       o_ref, *, B, T, C, K):
    P = K // 2
    C2 = 2 * C
    BT = B * T
    f32 = jnp.float32

    # --- unpack the packed bias/gain rows (layout built in the wrapper) ------------
    vecs = vec_ref[...]                      # (8, 2C)
    vc = vecs[:, :C]                         # (8, C)  first-C-lane view
    dcb, ln_g, ln_b = vc[0:1], vc[1:2], vc[2:3]
    bn_g, bn_b, pw2b = vc[3:4], vc[4:5], vc[5:6]
    pw1b = vecs[6:7, :]                      # (1, 2C)
    dwb_val = vc[7:8]                        # (1, C)  == dw_b[:C]
    dwb_gate = vecs[7:8, C:]                 # (1, C)  == dw_b[C:]

    def im2col(v3, cin):
        # Zero-padded sliding windows along T (per sample), stacked to (B*T, K*cin).
        zpad = jnp.zeros((B, P, cin), f32)
        vp = jnp.concatenate([zpad, v3, zpad], axis=1)                 # (B, T+2P, cin)
        cols = jnp.concatenate([vp[:, k:k + T, :] for k in range(K)], axis=-1)
        return cols.reshape(BT, K * cin)                               # (BT, K*cin)

    x3 = x_ref[...].astype(f32)                                        # (B, T, C)

    # (1) DCNN == Conv1d(C->C, K, pad=K//2): one im2col matmul.
    y = jnp.dot(im2col(x3, C), dcw_ref[...],
                preferred_element_type=f32, precision=_HI) + dcb       # (BT, C)

    # (2) LayerNorm over (C, T): per-sample standardization, identity affine.
    y3 = y.reshape(B, T, C)
    inv_tc = 1.0 / (T * C)
    mu = jnp.sum(jnp.sum(y3, axis=-1, keepdims=True), axis=-2, keepdims=True) * inv_tc
    d = y3 - mu
    var = jnp.sum(jnp.sum(d * d, axis=-1, keepdims=True), axis=-2, keepdims=True) * inv_tc
    y = (d * jax.lax.rsqrt(var + EPS)).reshape(BT, C)

    # (3) LayerNorm(C) with learned affine, all B*T rows at once.
    mu2 = jnp.mean(y, axis=-1, keepdims=True)
    d2 = y - mu2
    var2 = jnp.mean(d2 * d2, axis=-1, keepdims=True)
    y = d2 * jax.lax.rsqrt(var2 + EPS) * ln_g + ln_b

    # (4) Conv1d(C->2C, k=1) + Swish.
    h = jnp.dot(y, pw1w_ref[...], preferred_element_type=f32, precision=_HI) + pw1b
    h = h * jax.nn.sigmoid(h)                                          # (BT, 2C)

    # (5) Conv1d(2C->2C, K, pad=(K-1)//2): one im2col operand, value/gate weight halves
    #     pre-split so both GLU inputs come out lane-aligned.
    him = im2col(h.reshape(B, T, C2), C2)                              # (BT, K*2C)
    z_val = jnp.dot(him, dwv_ref[...], preferred_element_type=f32, precision=_HI) + dwb_val
    z_gate = jnp.dot(him, dwg_ref[...], preferred_element_type=f32, precision=_HI) + dwb_gate

    # (6) GLU over channels.
    g = z_val * jax.nn.sigmoid(z_gate)                                 # (BT, C)

    # (7) BatchNorm1d(C): training-mode batch statistics (biased variance over B*T).
    inv_bt = 1.0 / BT
    bm = jnp.sum(g, axis=0, keepdims=True) * inv_bt                    # (1, C)
    dg = g - bm
    bv = jnp.sum(dg * dg, axis=0, keepdims=True) * inv_bt
    g = dg * jax.lax.rsqrt(bv + EPS) * bn_g + bn_b

    # (8) Conv1d(C->C, k=1).
    # TODO(synk): nn.Dropout(p=0.1) is stochastic in training mode; treated as identity
    # here (inference behavior).
    out = jnp.dot(g, pw2w_ref[...], preferred_element_type=f32, precision=_HI) + pw2b
    o_ref[...] = out.reshape(B, T, C).astype(o_ref.dtype)


# ----------------------------------------------------------------------------
# Wrapper: matmul-friendly weight layouts, packed bias vector, single pallas_call
# ----------------------------------------------------------------------------
@jax.jit
def conv_module_forward(params, x):
    B, T, C = x.shape
    K = params["dcnn_w"].shape[-1]
    assert K % 2 == 1, "kernel assumes odd conv kernel size (module default K=5)"
    C2 = 2 * C

    # Conv weights -> im2col layout (K*Cin, Cout); column order matches the in-kernel
    # concat over taps: col = k*Cin + c  <->  W[o, c, k].
    dcw = jnp.transpose(params["dcnn_w"], (2, 1, 0)).reshape(K * C, C)
    dww = jnp.transpose(params["dw_w"], (2, 1, 0)).reshape(K * C2, C2)
    dwv, dwg = dww[:, :C], dww[:, C:]          # GLU value / gate halves

    # All 1-D bias/gain vectors packed into one (8, 2C) array:
    #   rows 0-5 (lanes [0:C]): dcnn_b, ln_g, ln_b, bn_g, bn_b, pw2_b
    #   row  6   (full 2C)   : pw1_b
    #   row  7   (full 2C)   : dw_b   (val = [:C], gate = [C:])
    zc = jnp.zeros((C,), jnp.float32)
    vecs = jnp.stack([
        jnp.concatenate([params["dcnn_b"], zc]),
        jnp.concatenate([params["ln_g"], zc]),
        jnp.concatenate([params["ln_b"], zc]),
        jnp.concatenate([params["bn_g"], zc]),
        jnp.concatenate([params["bn_b"], zc]),
        jnp.concatenate([params["pw2_b"], zc]),
        params["pw1_b"],
        params["dw_b"],
    ])                                          # (8, 2C)

    args = (x, dcw, params["pw1_w"].T, dwv, dwg, params["pw2_w"].T, vecs)

    return pl.pallas_call(
        functools.partial(conv_module_kernel, B=B, T=T, C=C, K=K),
        out_shape=jax.ShapeDtypeStruct((B, T, C), jnp.float32),
        in_specs=[pl.BlockSpec(memory_space=pltpu.MemorySpace.VMEM) for _ in args],
        out_specs=pl.BlockSpec(memory_space=pltpu.MemorySpace.VMEM),
    )(*args)


# ----------------------------------------------------------------------------
# Pure-JAX reference mirroring the PyTorch forward
# ----------------------------------------------------------------------------
def ref_forward(params, x):
    B, T, C = x.shape
    K = params["dcnn_w"].shape[-1]
    P = K // 2

    # DCNN == standard Conv1d(C->C, K, padding=K//2)
    xt = jnp.transpose(x, (0, 2, 1))                                   # (B, C, T)
    y = jax.lax.conv_general_dilated(
        xt, params["dcnn_w"], window_strides=(1,), padding=[(P, P)],
        dimension_numbers=("NCH", "OIH", "NCH"), precision=_HI)
    y = y + params["dcnn_b"][None, :, None]
    y = jnp.transpose(y, (0, 2, 1))                                    # (B, T, C)

    # LayerNorm over (C, T), identity affine (fresh module each forward)
    mu = jnp.mean(y, axis=(1, 2), keepdims=True)
    var = jnp.mean((y - mu) ** 2, axis=(1, 2), keepdims=True)
    y = (y - mu) / jnp.sqrt(var + EPS)

    # sequential LayerNorm(C)
    mu2 = jnp.mean(y, axis=-1, keepdims=True)
    var2 = jnp.mean((y - mu2) ** 2, axis=-1, keepdims=True)
    y = (y - mu2) / jnp.sqrt(var2 + EPS) * params["ln_g"] + params["ln_b"]

    # Conv1d(C->2C, k=1) + Swish
    h = jnp.einsum("btc,oc->bto", y, params["pw1_w"], precision=_HI) + params["pw1_b"]
    h = h * jax.nn.sigmoid(h)

    # Conv1d(2C->2C, k=K, pad=(K-1)//2)
    ht = jnp.transpose(h, (0, 2, 1))
    z = jax.lax.conv_general_dilated(
        ht, params["dw_w"], (1,), [(P, P)],
        dimension_numbers=("NCH", "OIH", "NCH"), precision=_HI)
    z = z + params["dw_b"][None, :, None]
    z = jnp.transpose(z, (0, 2, 1))                                    # (B, T, 2C)

    # GLU over channels
    g = z[..., :C] * jax.nn.sigmoid(z[..., C:])

    # BatchNorm1d(C), training-mode batch statistics (biased variance)
    bm = jnp.mean(g, axis=(0, 1), keepdims=True)
    bv = jnp.mean((g - bm) ** 2, axis=(0, 1), keepdims=True)
    g = (g - bm) / jnp.sqrt(bv + EPS) * params["bn_g"] + params["bn_b"]

    # Conv1d(C->C, k=1); Dropout == identity
    return jnp.einsum("btc,oc->bto", g, params["pw2_w"], precision=_HI) + params["pw2_b"]


# ----------------------------------------------------------------------------
# Deterministic parameter init
# ----------------------------------------------------------------------------
def make_params(key):
    C, K = CHANNELS, KSIZE
    ks = jax.random.split(key, 12)

    def unif(k, shape, bound):
        return jax.random.uniform(k, shape, jnp.float32, -bound, bound)

    return {
        "dcnn_w": jax.random.normal(ks[0], (C, C, K), jnp.float32),   # torch: randn
        "dcnn_b": unif(ks[1], (C,), 0.1),
        "ln_g": 1.0 + unif(ks[2], (C,), 0.1),
        "ln_b": unif(ks[3], (C,), 0.1),
        "pw1_w": unif(ks[4], (2 * C, C), 1.0 / math.sqrt(C)),
        "pw1_b": unif(ks[5], (2 * C,), 1.0 / math.sqrt(C)),
        "dw_w": unif(ks[6], (2 * C, 2 * C, K), 1.0 / math.sqrt(2 * C * K)),
        "dw_b": unif(ks[7], (2 * C,), 1.0 / math.sqrt(2 * C * K)),
        "bn_g": 1.0 + unif(ks[8], (C,), 0.1),
        "bn_b": unif(ks[9], (C,), 0.1),
        "pw2_w": unif(ks[10], (C, C), 1.0 / math.sqrt(C)),
        "pw2_b": unif(ks[11], (C,), 1.0 / math.sqrt(C)),
    }


if __name__ == "__main__":
    root = jax.random.PRNGKey(0)
    kp, kx = jax.random.split(root)
    params = make_params(kp)
    x = jax.random.normal(kx, (BATCH, SEQ, CHANNELS), jnp.float32)

    out = conv_module_forward(params, x)
    out = jax.block_until_ready(out)

    ref = ref_forward(params, x)
    assert out.shape == (BATCH, SEQ, CHANNELS)
    max_diff = float(jnp.max(jnp.abs(out - ref)))
    assert jnp.allclose(out, ref, rtol=2e-3, atol=2e-3), f"max abs diff {max_diff}"

    print("KERNEL_OK")
</pallas_src>

<mosaic_0001>
module attributes {stable_mosaic.version = 11 : i64} {
  func.func @conv_module_kernel(%arg0: memref<2x16x32xf32, #tpu.memory_space<vmem>>, %arg1: memref<160x32xf32, #tpu.memory_space<vmem>>, %arg2: memref<32x64xf32, #tpu.memory_space<vmem>>, %arg3: memref<320x32xf32, #tpu.memory_space<vmem>>, %arg4: memref<320x32xf32, #tpu.memory_space<vmem>>, %arg5: memref<32x32xf32, #tpu.memory_space<vmem>>, %arg6: memref<8x64xf32, #tpu.memory_space<vmem>>, %arg7: memref<2x16x32xf32, #tpu.memory_space<vmem>>) attributes {dimension_semantics = [], scalar_prefetch = 0 : i64, scratch_operands = 0 : i64, tpu.core_type = #tpu.core_type<tc>} {
    %c0 = arith.constant 0 : index
    %c0_0 = arith.constant 0 : index
    %0 = vector.load %arg6[%c0, %c0_0] : memref<8x64xf32, #tpu.memory_space<vmem>>, vector<8x64xf32>
    %1 = vector.extract_strided_slice %0 {offsets = [0, 0], sizes = [8, 32], strides = [1, 1]} : vector<8x64xf32> to vector<8x32xf32>
    %2 = vector.extract_strided_slice %1 {offsets = [0, 0], sizes = [1, 32], strides = [1, 1]} : vector<8x32xf32> to vector<1x32xf32>
    %3 = vector.extract_strided_slice %1 {offsets = [1, 0], sizes = [1, 32], strides = [1, 1]} : vector<8x32xf32> to vector<1x32xf32>
    %4 = vector.extract_strided_slice %1 {offsets = [2, 0], sizes = [1, 32], strides = [1, 1]} : vector<8x32xf32> to vector<1x32xf32>
    %5 = vector.extract_strided_slice %1 {offsets = [3, 0], sizes = [1, 32], strides = [1, 1]} : vector<8x32xf32> to vector<1x32xf32>
    %6 = vector.extract_strided_slice %1 {offsets = [4, 0], sizes = [1, 32], strides = [1, 1]} : vector<8x32xf32> to vector<1x32xf32>
    %7 = vector.extract_strided_slice %1 {offsets = [5, 0], sizes = [1, 32], strides = [1, 1]} : vector<8x32xf32> to vector<1x32xf32>
    %8 = vector.extract_strided_slice %0 {offsets = [6, 0], sizes = [1, 64], strides = [1, 1]} : vector<8x64xf32> to vector<1x64xf32>
    %9 = vector.extract_strided_slice %1 {offsets = [7, 0], sizes = [1, 32], strides = [1, 1]} : vector<8x32xf32> to vector<1x32xf32>
    %10 = vector.extract_strided_slice %0 {offsets = [7, 32], sizes = [1, 32], strides = [1, 1]} : vector<8x64xf32> to vector<1x32xf32>
    %c0_1 = arith.constant 0 : index
    %c0_2 = arith.constant 0 : index
    %c0_3 = arith.constant 0 : index
    %11 = vector.load %arg0[%c0_1, %c0_2, %c0_3] : memref<2x16x32xf32, #tpu.memory_space<vmem>>, vector<2x16x32xf32>
    %cst = arith.constant 0.000000e+00 : f32
    %12 = vector.broadcast %cst : f32 to vector<2x2x32xf32>
    %13 = tpu.concatenate %12, %11, %12 in 1 : vector<2x2x32xf32>, vector<2x16x32xf32>, vector<2x2x32xf32> -> vector<2x20x32xf32>
    %14 = vector.extract_strided_slice %13 {offsets = [0, 0, 0], sizes = [2, 16, 32], strides = [1, 1, 1]} : vector<2x20x32xf32> to vector<2x16x32xf32>
    %15 = vector.extract_strided_slice %13 {offsets = [0, 1, 0], sizes = [2, 16, 32], strides = [1, 1, 1]} : vector<2x20x32xf32> to vector<2x16x32xf32>
    %16 = vector.extract_strided_slice %13 {offsets = [0, 2, 0], sizes = [2, 16, 32], strides = [1, 1, 1]} : vector<2x20x32xf32> to vector<2x16x32xf32>
    %17 = vector.extract_strided_slice %13 {offsets = [0, 3, 0], sizes = [2, 16, 32], strides = [1, 1, 1]} : vector<2x20x32xf32> to vector<2x16x32xf32>
    %18 = vector.extract_strided_slice %13 {offsets = [0, 4, 0], sizes = [2, 16, 32], strides = [1, 1, 1]} : vector<2x20x32xf32> to vector<2x16x32xf32>
    %19 = tpu.concatenate %14, %15, %16, %17, %18 in 2 : vector<2x16x32xf32>, vector<2x16x32xf32>, vector<2x16x32xf32>, vector<2x16x32xf32>, vector<2x16x32xf32> -> vector<2x16x160xf32>
    %20 = vector.shape_cast %19 : vector<2x16x160xf32> to vector<32x160xf32>
    %c0_4 = arith.constant 0 : index
    %c0_5 = arith.constant 0 : index
    %21 = vector.load %arg1[%c0_4, %c0_5] : memref<160x32xf32, #tpu.memory_space<vmem>>, vector<160x32xf32>
    %cst_6 = arith.constant dense<0.000000e+00> : vector<32x32xf32>
    %22 = tpu.matmul %20, %21, %cst_6 {dimension_numbers = #tpu.dot_dimension_numbers<[1], [0], [0], [1], [0, 0, 1, 1], [], []>, precision = #tpu.contract_precision<fp32>} : vector<32x160xf32>, vector<160x32xf32>, vector<32x32xf32> -> vector<32x32xf32>
    %23 = vector.broadcast %2 : vector<1x32xf32> to vector<32x32xf32>
    %24 = arith.addf %22, %23 : vector<32x32xf32>
    %25 = vector.shape_cast %24 : vector<32x32xf32> to vector<2x16x32xf32>
    %cst_7 = arith.constant dense<0.000000e+00> : vector<2x16xf32>
    %26 = vector.multi_reduction <add>, %25, %cst_7 [2] : vector<2x16x32xf32> to vector<2x16xf32>
    %27 = vector.shape_cast %26 : vector<2x16xf32> to vector<2x16x1xf32>
    %cst_8 = arith.constant dense<0.000000e+00> : vector<2x1xf32>
    %28 = vector.multi_reduction <add>, %27, %cst_8 [1] : vector<2x16x1xf32> to vector<2x1xf32>
    %29 = vector.shape_cast %28 : vector<2x1xf32> to vector<2x1x1xf32>
    %cst_9 = arith.constant 0.001953125 : f32
    %30 = vector.broadcast %cst_9 : f32 to vector<2x1x1xf32>
    %31 = arith.mulf %29, %30 : vector<2x1x1xf32>
    %32 = vector.broadcast %31 : vector<2x1x1xf32> to vector<2x16x32xf32>
    %33 = arith.subf %25, %32 : vector<2x16x32xf32>
    %34 = arith.mulf %33, %33 : vector<2x16x32xf32>
    %cst_10 = arith.constant dense<0.000000e+00> : vector<2x16xf32>
    %35 = vector.multi_reduction <add>, %34, %cst_10 [2] : vector<2x16x32xf32> to vector<2x16xf32>
    %36 = vector.shape_cast %35 : vector<2x16xf32> to vector<2x16x1xf32>
    %cst_11 = arith.constant dense<0.000000e+00> : vector<2x1xf32>
    %37 = vector.multi_reduction <add>, %36, %cst_11 [1] : vector<2x16x1xf32> to vector<2x1xf32>
    %38 = vector.shape_cast %37 : vector<2x1xf32> to vector<2x1x1xf32>
    %cst_12 = arith.constant 0.001953125 : f32
    %39 = vector.broadcast %cst_12 : f32 to vector<2x1x1xf32>
    %40 = arith.mulf %38, %39 : vector<2x1x1xf32>
    %cst_13 = arith.constant 9.99999974E-6 : f32
    %41 = vector.broadcast %cst_13 : f32 to vector<2x1x1xf32>
    %42 = arith.addf %40, %41 : vector<2x1x1xf32>
    %43 = math.rsqrt %42 : vector<2x1x1xf32>
    %44 = vector.broadcast %43 : vector<2x1x1xf32> to vector<2x16x32xf32>
    %45 = arith.mulf %33, %44 : vector<2x16x32xf32>
    %46 = vector.shape_cast %45 : vector<2x16x32xf32> to vector<32x32xf32>
    %cst_14 = arith.constant dense<0.000000e+00> : vector<32xf32>
    %47 = vector.multi_reduction <add>, %46, %cst_14 [1] : vector<32x32xf32> to vector<32xf32>
    %48 = vector.shape_cast %47 : vector<32xf32> to vector<32x1xf32>
    %cst_15 = arith.constant 3.200000e+01 : f32
    %49 = vector.broadcast %cst_15 : f32 to vector<32x1xf32>
    %50 = arith.divf %48, %49 : vector<32x1xf32>
    %51 = vector.broadcast %50 : vector<32x1xf32> to vector<32x32xf32>
    %52 = arith.subf %46, %51 : vector<32x32xf32>
    %53 = arith.mulf %52, %52 : vector<32x32xf32>
    %cst_16 = arith.constant dense<0.000000e+00> : vector<32xf32>
    %54 = vector.multi_reduction <add>, %53, %cst_16 [1] : vector<32x32xf32> to vector<32xf32>
    %55 = vector.shape_cast %54 : vector<32xf32> to vector<32x1xf32>
    %cst_17 = arith.constant 3.200000e+01 : f32
    %56 = vector.broadcast %cst_17 : f32 to vector<32x1xf32>
    %57 = arith.divf %55, %56 : vector<32x1xf32>
    %cst_18 = arith.constant 9.99999974E-6 : f32
    %58 = vector.broadcast %cst_18 : f32 to vector<32x1xf32>
    %59 = arith.addf %57, %58 : vector<32x1xf32>
    %60 = math.rsqrt %59 : vector<32x1xf32>
    %61 = vector.broadcast %60 : vector<32x1xf32> to vector<32x32xf32>
    %62 = arith.mulf %52, %61 : vector<32x32xf32>
    %63 = vector.broadcast %3 : vector<1x32xf32> to vector<32x32xf32>
    %64 = arith.mulf %62, %63 : vector<32x32xf32>
    %65 = vector.broadcast %4 : vector<1x32xf32> to vector<32x32xf32>
    %66 = arith.addf %64, %65 : vector<32x32xf32>
    %c0_19 = arith.constant 0 : index
    %c0_20 = arith.constant 0 : index
    %67 = vector.load %arg2[%c0_19, %c0_20] : memref<32x64xf32, #tpu.memory_space<vmem>>, vector<32x64xf32>
    %cst_21 = arith.constant dense<0.000000e+00> : vector<32x64xf32>
    %68 = tpu.matmul %66, %67, %cst_21 {dimension_numbers = #tpu.dot_dimension_numbers<[1], [0], [0], [1], [0, 0, 1, 1], [], []>, precision = #tpu.contract_precision<fp32>} : vector<32x32xf32>, vector<32x64xf32>, vector<32x64xf32> -> vector<32x64xf32>
    %69 = vector.broadcast %8 : vector<1x64xf32> to vector<32x64xf32>
    %70 = arith.addf %68, %69 : vector<32x64xf32>
    %71 = arith.negf %70 : vector<32x64xf32>
    %72 = math.exp %71 : vector<32x64xf32>
    %cst_22 = arith.constant 1.000000e+00 : f32
    %73 = vector.broadcast %cst_22 : f32 to vector<32x64xf32>
    %74 = arith.addf %73, %72 : vector<32x64xf32>
    %75 = arith.divf %73, %74 : vector<32x64xf32>
    %76 = arith.mulf %70, %75 : vector<32x64xf32>
    %77 = vector.shape_cast %76 : vector<32x64xf32> to vector<2x16x64xf32>
    %cst_23 = arith.constant 0.000000e+00 : f32
    %78 = vector.broadcast %cst_23 : f32 to vector<2x2x64xf32>
    %79 = tpu.concatenate %78, %77, %78 in 1 : vector<2x2x64xf32>, vector<2x16x64xf32>, vector<2x2x64xf32> -> vector<2x20x64xf32>
    %80 = vector.extract_strided_slice %79 {offsets = [0, 0, 0], sizes = [2, 16, 64], strides = [1, 1, 1]} : vector<2x20x64xf32> to vector<2x16x64xf32>
    %81 = vector.extract_strided_slice %79 {offsets = [0, 1, 0], sizes = [2, 16, 64], strides = [1, 1, 1]} : vector<2x20x64xf32> to vector<2x16x64xf32>
    %82 = vector.extract_strided_slice %79 {offsets = [0, 2, 0], sizes = [2, 16, 64], strides = [1, 1, 1]} : vector<2x20x64xf32> to vector<2x16x64xf32>
    %83 = vector.extract_strided_slice %79 {offsets = [0, 3, 0], sizes = [2, 16, 64], strides = [1, 1, 1]} : vector<2x20x64xf32> to vector<2x16x64xf32>
    %84 = vector.extract_strided_slice %79 {offsets = [0, 4, 0], sizes = [2, 16, 64], strides = [1, 1, 1]} : vector<2x20x64xf32> to vector<2x16x64xf32>
    %85 = tpu.concatenate %80, %81, %82, %83, %84 in 2 : vector<2x16x64xf32>, vector<2x16x64xf32>, vector<2x16x64xf32>, vector<2x16x64xf32>, vector<2x16x64xf32> -> vector<2x16x320xf32>
    %86 = vector.shape_cast %85 : vector<2x16x320xf32> to vector<32x320xf32>
    %c0_24 = arith.constant 0 : index
    %c0_25 = arith.constant 0 : index
    %87 = vector.load %arg3[%c0_24, %c0_25] : memref<320x32xf32, #tpu.memory_space<vmem>>, vector<320x32xf32>
    %cst_26 = arith.constant dense<0.000000e+00> : vector<32x32xf32>
    %88 = tpu.matmul %86, %87, %cst_26 {dimension_numbers = #tpu.dot_dimension_numbers<[1], [0], [0], [1], [0, 0, 1, 1], [], []>, precision = #tpu.contract_precision<fp32>} : vector<32x320xf32>, vector<320x32xf32>, vector<32x32xf32> -> vector<32x32xf32>
    %89 = vector.broadcast %9 : vector<1x32xf32> to vector<32x32xf32>
    %90 = arith.addf %88, %89 : vector<32x32xf32>
    %c0_27 = arith.constant 0 : index
    %c0_28 = arith.constant 0 : index
    %91 = vector.load %arg4[%c0_27, %c0_28] : memref<320x32xf32, #tpu.memory_space<vmem>>, vector<320x32xf32>
    %cst_29 = arith.constant dense<0.000000e+00> : vector<32x32xf32>
    %92 = tpu.matmul %86, %91, %cst_29 {dimension_numbers = #tpu.dot_dimension_numbers<[1], [0], [0], [1], [0, 0, 1, 1], [], []>, precision = #tpu.contract_precision<fp32>} : vector<32x320xf32>, vector<320x32xf32>, vector<32x32xf32> -> vector<32x32xf32>
    %93 = vector.broadcast %10 : vector<1x32xf32> to vector<32x32xf32>
    %94 = arith.addf %92, %93 : vector<32x32xf32>
    %95 = arith.negf %94 : vector<32x32xf32>
    %96 = math.exp %95 : vector<32x32xf32>
    %cst_30 = arith.constant 1.000000e+00 : f32
    %97 = vector.broadcast %cst_30 : f32 to vector<32x32xf32>
    %98 = arith.addf %97, %96 : vector<32x32xf32>
    %99 = arith.divf %97, %98 : vector<32x32xf32>
    %100 = arith.mulf %90, %99 : vector<32x32xf32>
    %cst_31 = arith.constant dense<0.000000e+00> : vector<32xf32>
    %101 = vector.multi_reduction <add>, %100, %cst_31 [0] : vector<32x32xf32> to vector<32xf32>
    %102 = vector.shape_cast %101 : vector<32xf32> to vector<1x32xf32>
    %cst_32 = arith.constant 3.125000e-02 : f32
    %103 = vector.broadcast %cst_32 : f32 to vector<1x32xf32>
    %104 = arith.mulf %102, %103 : vector<1x32xf32>
    %105 = vector.broadcast %104 : vector<1x32xf32> to vector<32x32xf32>
    %106 = arith.subf %100, %105 : vector<32x32xf32>
    %107 = arith.mulf %106, %106 : vector<32x32xf32>
    %cst_33 = arith.constant dense<0.000000e+00> : vector<32xf32>
    %108 = vector.multi_reduction <add>, %107, %cst_33 [0] : vector<32x32xf32> to vector<32xf32>
    %109 = vector.shape_cast %108 : vector<32xf32> to vector<1x32xf32>
    %cst_34 = arith.constant 3.125000e-02 : f32
    %110 = vector.broadcast %cst_34 : f32 to vector<1x32xf32>
    %111 = arith.mulf %109, %110 : vector<1x32xf32>
    %cst_35 = arith.constant 9.99999974E-6 : f32
    %112 = vector.broadcast %cst_35 : f32 to vector<1x32xf32>
    %113 = arith.addf %111, %112 : vector<1x32xf32>
    %114 = math.rsqrt %113 : vector<1x32xf32>
    %115 = vector.broadcast %114 : vector<1x32xf32> to vector<32x32xf32>
    %116 = arith.mulf %106, %115 : vector<32x32xf32>
    %117 = vector.broadcast %5 : vector<1x32xf32> to vector<32x32xf32>
    %118 = arith.mulf %116, %117 : vector<32x32xf32>
    %119 = vector.broadcast %6 : vector<1x32xf32> to vector<32x32xf32>
    %120 = arith.addf %118, %119 : vector<32x32xf32>
    %c0_36 = arith.constant 0 : index
    %c0_37 = arith.constant 0 : index
    %121 = vector.load %arg5[%c0_36, %c0_37] : memref<32x32xf32, #tpu.memory_space<vmem>>, vector<32x32xf32>
    %cst_38 = arith.constant dense<0.000000e+00> : vector<32x32xf32>
    %122 = tpu.matmul %120, %121, %cst_38 {dimension_numbers = #tpu.dot_dimension_numbers<[1], [0], [0], [1], [0, 0, 1, 1], [], []>, precision = #tpu.contract_precision<fp32>} : vector<32x32xf32>, vector<32x32xf32>, vector<32x32xf32> -> vector<32x32xf32>
    %123 = vector.broadcast %7 : vector<1x32xf32> to vector<32x32xf32>
    %124 = arith.addf %122, %123 : vector<32x32xf32>
    %125 = vector.shape_cast %124 : vector<32x32xf32> to vector<2x16x32xf32>
    %c0_39 = arith.constant 0 : index
    %c0_40 = arith.constant 0 : index
    %c0_41 = arith.constant 0 : index
    %126 = vector.load %arg7[%c0_39, %c0_40, %c0_41] : memref<2x16x32xf32, #tpu.memory_space<vmem>>, vector<2x16x32xf32>
    tpu.vector_store %arg7[%c0_39, %c0_40, %c0_41], %125 {strides = array<i32>} : memref<2x16x32xf32, #tpu.memory_space<vmem>>, vector<2x16x32xf32>,
    return
  }
}

</mosaic_0001>

<bundles_post_ra>
// kernel: conv_module_forward.1
= control target key start
LH: loop header
LB: loop body
LE: loop exit
PB: predicated region body
PF: predicated region fallthrough
CT: control target
= control target key end

     0   :  { %vm36_vm0 = vcmask 1041408   ;;  %vm57_vm1 = vcmask 1046528   ;;  %vm103_vm2 = vcmask 1044480   ;;  %v11579_v11 = vmov 0.0|0.0   ;;  %s8470_s13 = smov 96   ;;  %s11546_s0 = inlined_call_operand.vmem [shape: f32[2,16,32], index: 0, kind: input, shape index: {}]   ;;  %s11547_s1 = inlined_call_operand.vmem [shape: f32[160,32], index: 1, kind: input, shape index: {}]   ;;  %s11548_s2 = inlined_call_operand.vmem [shape: f32[32,64], index: 2, kind: input, shape index: {}]   ;;  %s11549_s3 = inlined_call_operand.vmem [shape: f32[320,32], index: 3, kind: input, shape index: {}]   ;;  %s11550_s4 = inlined_call_operand.vmem [shape: f32[320,32], index: 4, kind: input, shape index: {}]   ;;  %s11551_s5 = inlined_call_operand.vmem [shape: f32[32,32], index: 5, kind: input, shape index: {}]   ;;  %s11552_s6 = inlined_call_operand.vmem [shape: f32[8,64], index: 6, kind: input, shape index: {}]   ;;  %s11553_s7 = inlined_call_operand.hbm [shape: f32[2,16,32], index: 7, kind: output, shape index: {}]  }
   0x1   :  { %v28_v0 = vld [vmem:[%s11546_s0] sm:$0xff]  ;;  %v29_v1 = vld [vmem:[%s11546_s0 + $0x8] sm:$0xff]  ;;  %v30_v4 = vld [vmem:[%s11546_s0 + $0x10] sm:$0xff]  ;;  %7397 = vmatprep.subr.bf16.mxu0 %v11579_v11  ;;  %vm80_vm3 = vcmask 1045504  }
   0x2   :  { %v37_v2 = vrot.slane %v28_v0, 6  ;;  %v38_v3 = vrot.slane %v29_v1, 6  ;;  %v31_v5 = vld [vmem:[%s11546_s0 + $0x18] sm:$0xff]  ;;  %v40_v6 = vrot.slane %v30_v4, 6  ;;  %s8469_s0 = smov 32   ;;  %v152_v25 = vld [vmem:[%s11547_s1] sm:$0xff] }
   0x3   :  { %v41_v10 = vrot.slane %v31_v5, 6  ;;  %v153_v26 = vld [vmem:[%s11547_s1 + $0x8] sm:$0xff]  ;;  %v154_v33 = vld [vmem:[%s11547_s1 + $0x10] sm:$0xff]  ;;  %v185_v35 = vand.u32 4294901760, %v152_v25  ;;  %v155_v37 = vld [vmem:[%s11547_s1 + $0x18] sm:$0xff] }
   0x4   :  { %v8528_v7 = vsel %vm36_vm0, %v37_v2, %v38_v3  ;;  %v8531_v8 = vsel %vm36_vm0, 0.0, %v37_v2  ;;  %v8534_v9 = vsel %vm36_vm0, %v38_v3, 0.0  ;;  %v8553_v24 = vsel %vm36_vm0, 0.0, %v40_v6 }
   0x5   :  { %v58_v12 = vrot.slane %v8531_v8, 1  ;;  %v59_v13 = vrot.slane %v8528_v7, 1  ;;  %v81_v14 = vrot.slane %v8531_v8, 2  ;;  %v82_v15 = vrot.slane %v8528_v7, 2 }
   0x6   :  { %v104_v16 = vrot.slane %v8531_v8, 3  ;;  %v105_v17 = vrot.slane %v8528_v7, 3  ;;  %v61_v18 = vrot.slane %v8534_v9, 1  ;;  %v84_v20 = vrot.slane %v8534_v9, 2 }
   0x7   :  { %v60_v19 = vsel %vm57_vm1, %v58_v12, %v59_v13  ;;  %v107_v22 = vrot.slane %v8534_v9, 3  ;;  %v8550_v23 = vsel %vm36_vm0, %v40_v6, %v41_v10  ;;  %v83_v27 = vsel %vm80_vm3, %v81_v14, %v82_v15 }
   0x8   :  { %68 = vrot.lane.b32.xlu0 %v60_v19, %s8469_s0  ;;  %v106_v21 = vsel %vm103_vm2, %v104_v16, %v105_v17  ;;  %v63_v28 = vrot.slane %v8553_v24, 1  ;;  %v64_v29 = vrot.slane %v8550_v23, 1  ;;  %v62_v30 = vsel %vm57_vm1, %v59_v13, %v61_v18 }
   0x9   :  { %114 = vrot.lane.b32.xlu1 %v106_v21, %s8470_s13  ;;  %v86_v31 = vrot.slane %v8553_v24, 2  ;;  %v87_v32 = vrot.slane %v8550_v23, 2  ;;  %v130_v34 = vrot.slane %v8534_v9, 4  ;;  %v188_v36 = vand.u32 4294901760, %v153_v26 }
   0xa   :  { %12 = vsyncpa [#allocation3], 0  ;;  %s8471_s18 = smov 64   ;;  %v85_v38 = vsel %vm80_vm3, %v82_v15, %v84_v20  ;;  %v108_v39 = vsel %vm103_vm2, %v105_v17, %v107_v22  ;;  %v109_v40 = vrot.slane %v8553_v24, 3  ;;  %v8580_v41 = vsel %vm36_vm0, %v41_v10, 0.0  ;;  %v156_v42 = vld [vmem:[%s11547_s1 + $0x20] sm:$0xff] }
   0xb   :  { %v157_v43 = vld [vmem:[%s11547_s1 + $0x28] sm:$0xff]  ;;  %v65_v44 = vsel %vm57_vm1, %v63_v28, %v64_v29  ;;  %v110_v45 = vrot.slane %v8550_v23, 3  ;;  %v8593_v46 = vpack.c.bf16 %v188_v36, %v185_v35  ;;  %v8595_v47 = vsub.f32 %v152_v25, %v185_v35  ;;  %v158_v48 = vld [vmem:[%s11547_s1 + $0x30] sm:$0xff]  ;;  %v159_v53 = vld [vmem:[%s11547_s1 + $0x38] sm:$0xff] }
   0xc   :  { %91 = vrot.lane.b32.xlu0 %v83_v27, %s8471_s18  ;;  %v88_v49 = vsel %vm80_vm3, %v86_v31, %v87_v32  ;;  %v8603_v50 = vsub.f32 %v153_v26, %v188_v36  ;;  %v191_v51 = vand.u32 4294901760, %v154_v33  ;;  %v194_v52 = vand.u32 4294901760, %v155_v37  ;;  %v160_v58 = vld [vmem:[%s11547_s1 + $0x40] sm:$0xff]  ;;  %v161_v59 = vld [vmem:[%s11547_s1 + $0x48] sm:$0xff]  ;;  %v162_v0 = vld [vmem:[%s11547_s1 + $0x50] sm:$0xff] }
   0xd   :  { %70 = vrot.lane.b32.xlu1 %v62_v30, %s8469_s0  ;;  %v66_v54 = vrot.slane %v8580_v41, 1  ;;  %v89_v55 = vrot.slane %v8580_v41, 2  ;;  %7399 = vmatpush1.bf16.msra.mxu0 %v8593_v46  ;;  %v197_v56 = vand.u32 4294901760, %v156_v42  ;;  %v200_v57 = vand.u32 4294901760, %v157_v43  ;;  %v163_v1 = vld [vmem:[%s11547_s1 + $0x58] sm:$0xff]  ;;  %v164_v2 = vld [vmem:[%s11547_s1 + $0x60] sm:$0xff] }
   0xe   :  { %7400 = vmatprep.subr.bf16.mxu0 %v11579_v11  ;;  %v8619_v60 = vpack.c.bf16 %v194_v52, %v191_v51  ;;  %v8621_v61 = vsub.f32 %v154_v33, %v191_v51  ;;  %v8623_v62 = vsub.f32 %v155_v37, %v194_v52  ;;  %v203_v63 = vand.u32 4294901760, %v158_v48  ;;  %v165_v10 = vld [vmem:[%s11547_s1 + $0x68] sm:$0xff]  ;;  %v8653_v20 = vld [vmem:[%s11547_s1 + $0x70] sm:$0xff]  ;;  %v8665_v27 = vld [vmem:[%s11547_s1 + $0x78] sm:$0xff] }
   0xf   :  { %v112_v3 = vrot.slane %v8580_v41, 3  ;;  %v8636_v4 = vsub.f32 %v156_v42, %v197_v56  ;;  %v8638_v5 = vsub.f32 %v157_v43, %v200_v57  ;;  %v206_v6 = vand.u32 4294901760, %v159_v53  ;;  %v8670_v28 = vld [vmem:[%s11547_s1 + $0x80] sm:$0xff]  ;;  %v8685_v36 = vld [vmem:[%s11547_s1 + $0x88] sm:$0xff]  ;;  %v8690_v37 = vld [vmem:[%s11547_s1 + $0x90] sm:$0xff] }
  0x10   :  { %93 = vrot.lane.b32.xlu0 %v85_v38, %s8471_s18  ;;  %v8643_v12 = vpack.c.bf16 %v200_v57, %v197_v56  ;;  %v8645_v13 = vsub.f32 %v158_v48, %v203_v63  ;;  %v209_v14 = vand.u32 4294901760, %v160_v58  ;;  %v212_v15 = vand.u32 4294901760, %v161_v59 }
  0x11   :  { %116 = vrot.lane.b32.xlu1 %v108_v39, %s8470_s13  ;;  %7402 = vmatpush1.bf16.msra.mxu0 %v8619_v60  ;;  %v8648_v16 = vsub.f32 %v159_v53, %v206_v6  ;;  %v215_v17 = vand.u32 4294901760, %v162_v0  ;;  %v218_v18 = vand.u32 4294901760, %v163_v1  ;;  %v221_v19 = vand.u32 4294901760, %v164_v2 }
  0x12   :  { %v111_v21 = vsel %vm103_vm2, %v109_v40, %v110_v45  ;;  %7403 = vmatprep.subr.bf16.mxu0 %v11579_v11  ;;  %v8658_v22 = vsub.f32 %v160_v58, %v209_v14  ;;  %v8660_v25 = vsub.f32 %v161_v59, %v212_v15  ;;  %v224_v26 = vand.u32 4294901760, %v165_v10 }
  0x13   :  { %v67_v30 = vsel %vm57_vm1, %v64_v29, %v66_v54  ;;  %v8676_v31 = vsub.f32 %v162_v0, %v215_v17  ;;  %v8678_v33 = vsub.f32 %v163_v1, %v218_v18  ;;  %vm137_vm4 = vcmask 261120   ;;  %v8695_v29 = vld [vmem:[%s11547_s1 + $0x98] sm:$0xff] }
  0x14   :  { %72 = vrot.lane.b32.xlu0 %v65_v44, %s8469_s0  ;;  %v8680_v35 = vsub.f32 %v164_v2, %v221_v19  ;;  %v90_v38 = vsel %vm80_vm3, %v87_v32, %v89_v55  ;;  %v113_v39 = vsel %vm103_vm2, %v110_v45, %v112_v3  ;;  %v8701_v40 = vsub.f32 %v165_v10, %v224_v26 }
  0x15   :  { %95 = vrot.lane.b32.xlu1 %v88_v49, %s8471_s18  ;;  %v227_v42 = vand.u32 4294901760, %v8653_v20  ;;  %7405 = vmatpush1.bf16.msra.mxu0 %v8643_v12  ;;  %v8705_v43 = vpack.c.bf16 %v206_v6, %v203_v63  ;;  %v8707_v44 = vpack.c.bf16 %v212_v15, %v209_v14  ;;  %v230_v48 = vand.u32 4294901760, %v8665_v27 }
  0x16   :  { %v11563_v49 = vand.u32 4294901760, %v8670_v28  ;;  %7406 = vmatprep.subr.bf16.mxu0 %v11579_v11  ;;  %v11561_v45 = vand.u32 4294901760, %v8685_v36  ;;  %v11560_v51 = vand.u32 4294901760, %v8690_v37  ;;  %v11557_v52 = vand.u32 4294901760, %v8695_v29 }
  0x17   :  { %v8716_v32 = vsub.f32 %v8653_v20, %v227_v42  ;;  %v8722_v53 = vpack.c.bf16 %v218_v18, %v215_v17  ;;  %v8724_v54 = vpack.c.bf16 %v224_v26, %v221_v19  ;;  %v8729_v55 = vsub.f32 %v8665_v27, %v230_v48 }
  0x18   :  { %118 = vrot.lane.b32.xlu0 %v111_v21, %s8470_s13  ;;  %v8734_v56 = vsub.f32 %v8670_v28, %v11563_v49  ;;  %v8739_v57 = vsub.f32 %v8685_v36, %v11561_v45  ;;  %v8744_v58 = vsub.f32 %v8690_v37, %v11560_v51  ;;  %v8749_v59 = vsub.f32 %v8695_v29, %v11557_v52 }
  0x19   :  { %74 = vrot.lane.b32.xlu1 %v67_v30, %s8469_s0  ;;  %11922 = vst [vmem:[#allocation5_spill] sm:$0xff] %v8722_v53  ;;  %11923 = vst [vmem:[#allocation6_spill] sm:$0xff] %v8724_v54  ;;  %vm126_vm5 = vcmask 1043456   ;;  %7408 = vmatpush1.bf16.msra.mxu0 %v8705_v43  ;;  %v127_v63 = vrot.slane %v8531_v8, 4  ;;  %v128_v0 = vrot.slane %v8528_v7, 4  ;;  %v11556_v1 = vand.u32 4294901760, %v8595_v47 }
  0x1a   :  { %v11554_v2 = vand.u32 4294901760, %v8603_v50  ;;  %7409 = vmatprep.subr.bf16.mxu0 %v11579_v11  ;;  %v11555_v3 = vand.u32 4294901760, %v8621_v61  ;;  %v11558_v6 = vand.u32 4294901760, %v8623_v62  ;;  %v11559_v10 = vand.u32 4294901760, %v8636_v4 }
  0x1b   :  { %v11562_v14 = vand.u32 4294901760, %v8638_v5  ;;  %v129_v15 = vsel %vm126_vm5, %v127_v63, %v128_v0  ;;  %v333_v17 = vsub.f32 %v8595_v47, %v11556_v1  ;;  %v11577_v19 = vand.u32 4294901760, %v8645_v13 }
  0x1c   :  { %97 = vrot.lane.b32.xlu0 %v90_v38, %s8471_s18  ;;  %v340_v18 = vsub.f32 %v8603_v50, %v11554_v2  ;;  %v176_v21 = vsel %vm137_vm4, %v129_v15, 0  ;;  %v347_v26 = vsub.f32 %v8621_v61, %v11555_v3  ;;  %v354_v30 = vsub.f32 %v8623_v62, %v11558_v6 }
  0x1d   :  { %120 = vrot.lane.b32.xlu1 %v113_v39, %s8470_s13  ;;  %v361_v38 = vsub.f32 %v8636_v4, %v11559_v10  ;;  %7411 = vmatpush1.bf16.msra.mxu0 %v8707_v44  ;;  %v8782_v39 = vand.u32 4294901760, %v176_v21  ;;  %v334_v63 = vand.u32 4294901760, %v333_v17  ;;  %v368_v15 = vsub.f32 %v8638_v5, %v11562_v14 }
  0x1e   :  { %v341_v2 = vand.u32 4294901760, %v340_v18  ;;  %7412 = vmatprep.subr.bf16.mxu0 %v11579_v11  ;;  %v348_v3 = vand.u32 4294901760, %v347_v26  ;;  %v355_v1 = vand.u32 4294901760, %v354_v30  ;;  %v375_v6 = vsub.f32 %v8645_v13, %v11577_v19 }
  0x1f   :  { %v362_v52 = vand.u32 4294901760, %v361_v38  ;;  %v8792_v10 = vsub.f32 %v176_v21, %v8782_v39  ;;  %v369_v17 = vand.u32 4294901760, %v368_v15  ;;  %v11576_v18 = vand.u32 4294901760, %v8648_v16 }
  0x20   :  { %v8794_v51 = vpack.c.bf16 %v341_v2, %v334_v63  ;;  %v8797_v45 = vpack.c.bf16 %v355_v1, %v348_v3  ;;  %v376_v14 = vand.u32 4294901760, %v375_v6  ;;  %v11565_v49 = vand.u32 4294901760, %v8658_v22 }
  0x21   :  { %v11564_v26 = vand.u32 4294901760, %v8660_v25  ;;  %7414 = vmatpush1.bf16.msra.mxu0 %v8722_v53  ;;  %v11578_v30 = vand.u32 4294901760, %v8792_v10  ;;  %v8803_v38 = vpack.c.bf16 %v369_v17, %v362_v52  ;;  %v382_v2 = vsub.f32 %v8648_v16, %v11576_v18 }
  0x22   :  { %v8811_v1 = vsel %vm126_vm5, %v128_v0, %v130_v34  ;;  %7415 = vmatprep.subr.bf16.mxu0 %v11579_v11  ;;  %v389_v3 = vsub.f32 %v8658_v22, %v11565_v49  ;;  %v11566_v6 = vand.u32 4294901760, %v8676_v31  ;;  %v11575_v34 = vand.u32 4294901760, %v8678_v33 }
  0x23   :  { %v396_v52 = vsub.f32 %v8660_v25, %v11564_v26  ;;  %v271_v21 = vsub.f32 %v8792_v10, %v11578_v30  ;;  %v383_v9 = vand.u32 4294901760, %v382_v2  ;;  %v8833_v17 = vpack.c.bf16 %v230_v48, %v227_v42 }
  0x24   :  { %v390_v0 = vand.u32 4294901760, %v389_v3  ;;  %v403_v15 = vsub.f32 %v8676_v31, %v11566_v6  ;;  %v410_v2 = vsub.f32 %v8678_v33, %v11575_v34  ;;  %v11568_v6 = vand.u32 4294901760, %v8680_v35 }
  0x25   :  { %v397_v63 = vand.u32 4294901760, %v396_v52  ;;  %7417 = vmatpush1.bf16.msra.mxu0 %v8724_v54  ;;  %11924 = vst [vmem:[#allocation7_spill] sm:$0xff] %v8833_v17  ;;  %v272_v26 = vand.u32 4294901760, %v271_v21  ;;  %v8835_v49 = vpack.c.bf16 %v383_v9, %v376_v14  ;;  %v11567_v27 = vand.u32 4294901760, %v8701_v40 }
  0x26   :  { %7418 = vmatprep.subr.bf16.mxu0 %v11579_v11  ;;  %v404_v52 = vand.u32 4294901760, %v403_v15  ;;  %v411_v20 = vand.u32 4294901760, %v410_v2  ;;  %v11569_v42 = vand.u32 4294901760, %v8716_v32  ;;  %v417_v48 = vsub.f32 %v8680_v35, %v11568_v6 }
  0x27   :  { %v8841_v3 = vpack.c.bf16 %v397_v63, %v390_v0  ;;  %273 = vmatprep.mubr.f32.mxu0 %v272_v26  ;;  %v11570_v14 = vand.u32 4294901760, %v8729_v55  ;;  %v11925_v21 = vand.u32 4294901760, %v8670_v28  ;;  %v11926_v9 = vand.u32 4294901760, %v8685_v36 }
  0x28   :  { %v8857_v26 = vpack.c.bf16 %v411_v20, %v404_v52  ;;  %v424_v63 = vsub.f32 %v8701_v40, %v11567_v27  ;;  %v418_v15 = vand.u32 4294901760, %v417_v48  ;;  %v431_v2 = vsub.f32 %v8716_v32, %v11569_v42 }
  0x29   :  { %7420 = vmatpush1.bf16.msra.mxu0 %v8833_v17  ;;  %v8855_v0 = vpack.c.bf16 %v11926_v9, %v11925_v21  ;;  %v438_v28 = vsub.f32 %v8729_v55, %v11570_v14  ;;  %v11574_v21 = vand.u32 4294901760, %v8734_v56  ;;  %v11928_v52 = vand.u32 4294901760, %v8690_v37 }
  0x2a   :  { %7421 = vmatprep.subr.bf16.mxu0 %v11579_v11  ;;  %v425_v36 = vand.u32 4294901760, %v424_v63  ;;  %v11929_v20 = vand.u32 4294901760, %v8695_v29  ;;  %v432_v27 = vand.u32 4294901760, %v431_v2  ;;  %v11571_v63 = vand.u32 4294901760, %v8739_v57 }
  0x2b   :  { %11927 = vst [vmem:[#allocation8_spill] sm:$0xff] %v8855_v0  ;;  %v439_v6 = vand.u32 4294901760, %v438_v28  ;;  %v445_v42 = vsub.f32 %v8734_v56, %v11574_v21  ;;  %v11572_v14 = vand.u32 4294901760, %v8744_v58  ;;  %v11573_v29 = vand.u32 4294901760, %v8749_v59 }
  0x2c   :  { %v8874_v9 = vpack.c.bf16 %v11929_v20, %v11928_v52  ;;  %v8877_v48 = vpack.c.bf16 %v425_v36, %v418_v15  ;;  %v452_v15 = vsub.f32 %v8739_v57, %v11571_v63  ;;  %v133_v34 = vrot.slane %v8550_v23, 4 }
  0x2d   :  { %7423 = vmatpush1.bf16.msra.mxu0 %v8855_v0  ;;  %v8885_v37 = vpack.c.bf16 %v439_v6, %v432_v27  ;;  %v446_v2 = vand.u32 4294901760, %v445_v42  ;;  %v459_v28 = vsub.f32 %v8744_v58, %v11572_v14  ;;  %v466_v36 = vsub.f32 %v8749_v59, %v11573_v29 }
  0x2e   :  { %11930 = vst [vmem:[#allocation9_spill] sm:$0xff] %v8874_v9  ;;  %7424 = vmatprep.subr.bf16.mxu0 %v11579_v11  ;;  %v453_v6 = vand.u32 4294901760, %v452_v15  ;;  %v178_v18 = vsel %vm137_vm4, %v8811_v1, 0  ;;  %vm142_vm6 = vcmask 523264   ;;  %vm147_vm7 = vcmask 785408  }
  0x2f   :  { %v460_v27 = vand.u32 4294901760, %v459_v28  ;;  %v467_v42 = vand.u32 4294901760, %v466_v36  ;;  %v8928_v30 = vand.u32 4294901760, %v178_v18 }
  0x30   :  { %v8901_v20 = vpack.c.bf16 %v453_v6, %v446_v2  ;;  %v135_v2 = vrot.slane %v8580_v41, 4 }
  0x31   :  { %7426 = vmatpush1.bf16.msra.mxu0 %v8874_v9  ;;  %v8903_v63 = vpack.c.bf16 %v467_v42, %v460_v27  ;;  %v132_v42 = vrot.slane %v8553_v24, 4  ;;  %v8933_v15 = vsub.f32 %v178_v18, %v8928_v30 }
  0x32   :  { %7427 = vmatprep.subr.bf16.mxu0 %v11579_v11  ;;  %v136_v21 = vsel %vm126_vm5, %v133_v34, %v135_v2 }
  0x33   :  { %v134_v19 = vsel %vm126_vm5, %v132_v42, %v133_v34  ;;  %v182_v11 = vsel %vm137_vm4, %v136_v21, 0 }
  0x34   :  { %v180_v36 = vsel %vm137_vm4, %v134_v19, 0  ;;  %v11581_v19 = vand.u32 4294901760, %v8933_v15 }
  0x35   :  { %v8935_v27 = vand.u32 4294901760, %v180_v36 }
  0x37   :  { %v8946_v52 = vsub.f32 %v180_v36, %v8935_v27 }
  0x39   :  { %v11931_v9 = vand.u32 4294901760, %v8946_v52 }
  0x3b   :  { %v301_v0 = vsub.f32 %v8946_v52, %v11931_v9 }
  0x7a   :  { %v69_v28 = vpop.permute.xlu0 %68 }
  0x7b   :  { %v115_v6 = vpop.permute.xlu1 %114  ;;  %v138_v1 = vsel %vm137_vm4, %v8531_v8, %v69_v28 }
  0x7e   :  { %v92_v42 = vpop.permute.xlu0 %91 }
  0x7f   :  { %v143_v29 = vsel %vm142_vm6, %v138_v1, %v92_v42  ;;  %v71_v41 = vpop.permute.xlu1 %70  ;;  %v8955_v42 = vand.u32 4294901760, %v182_v11 }
  0x80   :  { %v148_v14 = vsel %vm147_vm7, %v143_v29, %v115_v6  ;;  %v139_v18 = vsel %vm137_vm4, %v8528_v7, %v71_v41  ;;  %v286_v7 = vsub.f32 %v8933_v15, %v11581_v19 }
  0x81   :  { %v8949_v34 = vand.u32 4294901760, %v148_v14 }
  0x82   :  { %v94_v2 = vpop.permute.xlu0 %93  ;;  %v287_v36 = vand.u32 4294901760, %v286_v7 }
  0x83   :  { %v8952_v8 = vsub.f32 %v148_v14, %v8949_v34  ;;  %v144_v28 = vsel %vm142_vm6, %v139_v18, %v94_v2  ;;  %v117_v1 = vpop.permute.xlu1 %116 }
  0x84   :  { %v149_v29 = vsel %vm147_vm7, %v144_v28, %v117_v1  ;;  %v8974_v1 = vsub.f32 %v182_v11, %v8955_v42 }
  0x85   :  { %v11588_v21 = vand.u32 4294901760, %v8952_v8  ;;  %v8963_v6 = vand.u32 4294901760, %v149_v29 }
  0x86   :  { %v73_v41 = vpop.permute.xlu0 %72 }
  0x87   :  { %v277_v14 = vsub.f32 %v8952_v8, %v11588_v21  ;;  %v8969_v18 = vsub.f32 %v149_v29, %v8963_v6  ;;  %v140_v2 = vsel %vm137_vm4, %v8553_v24, %v73_v41  ;;  %v96_v28 = vpop.permute.xlu1 %95  ;;  %v315_v24 = vand.u32 4294901760, %v8974_v1 }
  0x88   :  { %v145_v19 = vsel %vm142_vm6, %v140_v2, %v96_v28  ;;  %v302_v41 = vand.u32 4294901760, %v301_v0 }
  0x89   :  { %v278_v17 = vand.u32 4294901760, %v277_v14  ;;  %v291_v21 = vand.u32 4294901760, %v8969_v18  ;;  %v11932_v14 = vmov 0.0|0.0  }
  0x8a   :  { %v119_v54 = vpop.permute.xlu0 %118 }
  0x8b   :  { %279 = vmatmul.mubr.f32.vlgmr.msra.gmra.mrb[0].mxu0 %v278_v17  ;;  %v150_v29 = vsel %vm147_vm7, %v145_v19, %v119_v54  ;;  %v75_v53 = vpop.permute.xlu1 %74  ;;  %v292_v11 = vsub.f32 %v8969_v18, %v291_v21 }
  0x8c   :  { %7429 = vmatpush1.bf16.msra.mxu0 %v8794_v51  ;;  %v8987_v7 = vand.u32 4294901760, %v150_v29  ;;  %v141_v9 = vsel %vm137_vm4, %v8550_v23, %v75_v53  ;;  %288 = vmatprep.mubr.f32.mxu0 %v287_v36  ;;  %v316_v51 = vsub.f32 %v8974_v1, %v315_v24 }
  0x8d   :  { %7430 = vmatprep.subr.bf16.mxu0 %v11932_v14  ;;  %v293_v17 = vand.u32 4294901760, %v292_v11 }
  0x8e   :  { %v8993_v54 = vsub.f32 %v150_v29, %v8987_v7  ;;  %v98_v19 = vpop.permute.xlu0 %97  ;;  %v317_v11 = vand.u32 4294901760, %v316_v51  ;;  %v11944_v51 = vld [vmem:[#allocation5_spill] sm:$0xff] }
  0x8f   :  { %v146_v2 = vsel %vm142_vm6, %v141_v9, %v98_v19  ;;  %v121_v28 = vpop.permute.xlu1 %120  ;;  %294 = vmatmul.mubr.f32.gmra.mrb[2].mxu0 %v293_v17  ;;  %v11941_v19 = vpack.c.bf16 %v8739_v57, %v8734_v56 }
  0x90   :  { %7432 = vmatpush1.bf16.msra.mxu0 %v8797_v45  ;;  %v151_v23 = vsel %vm147_vm7, %v146_v2, %v121_v28  ;;  %303 = vmatprep.mubr.f32.mxu0 %v302_v41  ;;  %v306_v53 = vand.u32 4294901760, %v8993_v54  ;;  %v11942_v2 = vpack.c.bf16 %v8749_v59, %v8744_v58  ;;  %v11943_v28 = vand.u32 4294901760, %v8792_v10 }
  0x91   :  { %7433 = vmatprep.subr.bf16.mxu0 %v11932_v14  ;;  %v9003_v0 = vand.u32 4294901760, %v151_v23 }
  0x92   :  { %v307_v36 = vsub.f32 %v8993_v54, %v306_v53 }
  0x93   :  { %v9009_v29 = vsub.f32 %v151_v23, %v9003_v0  ;;  %v11945_v23 = vld [vmem:[#allocation6_spill] sm:$0xff] }
  0x94   :  { %7435 = vmatpush1.bf16.msra.mxu0 %v8803_v38  ;;  %v308_v45 = vand.u32 4294901760, %v307_v36  ;;  %v11934_v38 = vpack.c.bf16 %v8623_v62, %v8621_v61  ;;  %v11946_v36 = vld [vmem:[#allocation7_spill] sm:$0xff] }
  0x95   :  { %7436 = vmatprep.subr.bf16.mxu0 %v11932_v14  ;;  %v321_v9 = vand.u32 4294901760, %v9009_v29 }
  0x96   :  { %309 = vmatmul.mubr.f32.gmra.mrb[4].mxu0 %v308_v45  ;;  %v11949_v45 = vand.u32 4294901760, %v8595_v47 }
  0x97   :  { %318 = vmatprep.mubr.f32.mxu0 %v317_v11  ;;  %v322_v41 = vsub.f32 %v9009_v29, %v321_v9  ;;  %v11948_v11 = vld [vmem:[#allocation9_spill] sm:$0xff] }
  0x98   :  { %7438 = vmatpush1.bf16.msra.mxu0 %v8835_v49  ;;  %v11933_v49 = vpack.c.bf16 %v8603_v50, %v8595_v47  ;;  %v11955_v47 = vand.u32 4294901760, %v8946_v52 }
  0x99   :  { %7439 = vmatprep.subr.bf16.mxu0 %v11932_v14  ;;  %v323_v17 = vand.u32 4294901760, %v322_v41  ;;  %v11950_v41 = vand.u32 4294901760, %v8603_v50  ;;  %v11956_v50 = vand.u32 4294901760, %v8636_v4 }
  0x9b   :  { %324 = vmatmul.mubr.f32.gmra.mrb[6].mxu0 %v323_v17  ;;  %v7518_v17 = vpack.c.bf16 %v11950_v41, %v11949_v45 }
  0x9c   :  { %7441 = vmatpush1.bf16.msra.mxu0 %v8841_v3  ;;  %494 = vmatprep.mubr.f32.mxu0 %v8782_v39  ;;  %v11935_v3 = vpack.c.bf16 %v8638_v5, %v8636_v4  ;;  %v11960_v4 = vand.u32 4294901760, %v8658_v22 }
  0x9d   :  { %7442 = vmatprep.subr.bf16.mxu0 %v11932_v14 }
  0xa0   :  { %7444 = vmatpush1.bf16.msra.mxu0 %v8857_v26  ;;  %v11936_v26 = vpack.c.bf16 %v8648_v16, %v8645_v13 }
  0xa1   :  { %7445 = vmatprep.subr.bf16.mxu0 %v11932_v14 }
  0xa4   :  { %7447 = vmatpush1.bf16.msra.mxu0 %v8877_v48  ;;  %v11937_v48 = vpack.c.bf16 %v8660_v25, %v8658_v22  ;;  %v11965_v22 = vand.u32 4294901760, %v8701_v40 }
  0xa5   :  { %7448 = vmatprep.subr.bf16.mxu0 %v11932_v14 }
  0xa8   :  { %7450 = vmatpush1.bf16.msra.mxu0 %v8885_v37  ;;  %v11939_v37 = vpack.c.bf16 %v8701_v40, %v8680_v35  ;;  %v11971_v40 = vand.u32 4294901760, %v8749_v59 }
  0xa9   :  { %7451 = vmatprep.subr.bf16.mxu0 %v11932_v14 }
  0xac   :  { %7453 = vmatpush1.bf16.msra.mxu0 %v8901_v20  ;;  %v11940_v20 = vpack.c.bf16 %v8729_v55, %v8716_v32 }
  0xad   :  { %7454 = vmatprep.subr.bf16.mxu0 %v11932_v14 }
  0xb0   :  { %7456 = vmatpush1.bf16.msra.mxu0 %v8903_v63  ;;  %v11938_v63 = vpack.c.bf16 %v8678_v33, %v8676_v31 }
  0xb1   :  { %7457 = vmatprep.subr.bf16.mxu0 %v11932_v14 }
  0xb3   :  { %496 = vmatmul.mubr.f32.vlgmr.msra.gmra.mrb[0].mxu0 %v8949_v34 }
  0xb4   :  { %7459 = vmatpush1.bf16.msra.mxu0 %v11933_v49  ;;  %501 = vmatprep.mubr.f32.mxu0 %v8928_v30  ;;  %v11951_v49 = vand.u32 4294901760, %v8952_v8 }
  0xb5   :  { %7460 = vmatprep.subr.bf16.mxu0 %v11932_v14 }
  0xb7   :  { %503 = vmatmul.mubr.f32.gmra.mrb[2].mxu0 %v8963_v6 }
  0xb8   :  { %7462 = vmatpush1.bf16.msra.mxu0 %v11934_v38  ;;  %508 = vmatprep.mubr.f32.mxu0 %v8935_v27  ;;  %v11952_v38 = vand.u32 4294901760, %v8933_v15 }
  0xb9   :  { %7463 = vmatprep.subr.bf16.mxu0 %v11932_v14 }
  0xbb   :  { %510 = vmatmul.mubr.f32.gmra.mrb[4].mxu0 %v8987_v7 }
  0xbc   :  { %7465 = vmatpush1.bf16.msra.mxu0 %v11935_v3  ;;  %515 = vmatprep.mubr.f32.mxu0 %v8955_v42  ;;  %v11953_v3 = vand.u32 4294901760, %v8621_v61  ;;  %v11958_v61 = vand.u32 4294901760, %v8645_v13  ;;  %v11962_v13 = vand.u32 4294901760, %v8676_v31  ;;  %v11968_v31 = vand.u32 4294901760, %v8734_v56 }
  0xbd   :  { %7466 = vmatprep.subr.bf16.mxu0 %v11932_v14 }
  0xbf   :  { %517 = vmatmul.mubr.f32.gmra.mrb[6].mxu0 %v9003_v0 }
  0xc0   :  { %7468 = vmatpush1.bf16.msra.mxu0 %v11936_v26  ;;  %628 = vmatprep.mubr.f32.mxu0 %v8792_v10  ;;  %v11947_v10 = vld [vmem:[#allocation8_spill] sm:$0xff]  ;;  %v11954_v26 = vand.u32 4294901760, %v8623_v62  ;;  %v11959_v62 = vand.u32 4294901760, %v8648_v16  ;;  %v11963_v16 = vand.u32 4294901760, %v8678_v33  ;;  %v11969_v33 = vand.u32 4294901760, %v8739_v57 }
  0xc1   :  { %7469 = vmatprep.subr.bf16.mxu0 %v11932_v14 }
  0xc4   :  { %7471 = vmatpush1.bf16.msra.mxu0 %v11937_v48  ;;  %v7521_v48 = vpack.c.bf16 %v11954_v26, %v11953_v3 }
  0xc5   :  { %7472 = vmatprep.subr.bf16.mxu0 %v11932_v14 }
  0xc8   :  { %7474 = vmatpush1.bf16.msra.mxu0 %v11938_v63 }
  0xc9   :  { %7475 = vmatprep.subr.bf16.mxu0 %v11932_v14 }
  0xcc   :  { %7477 = vmatpush1.bf16.msra.mxu0 %v11939_v37 }
  0xcd   :  { %7478 = vmatprep.subr.bf16.mxu0 %v11932_v14 }
  0xd0   :  { %7480 = vmatpush1.bf16.msra.mxu0 %v11940_v20 }
  0xd1   :  { %7481 = vmatprep.subr.bf16.mxu0 %v11932_v14 }
  0xd4   :  { %7483 = vmatpush1.bf16.msra.mxu0 %v11941_v19 }
  0xd5   :  { %7484 = vmatprep.subr.bf16.mxu0 %v11932_v14 }
  0xd8   :  { %7486 = vmatpush1.bf16.msra.mxu0 %v11942_v2 }
  0xd9   :  { %7487 = vmatprep.subr.bf16.mxu0 %v11932_v14 }
  0xdb   :  { %631 = vmatmul.mubr.f32.vlgmr.msra.gmra.mrb[0].mxu0 %v8952_v8  ;;  %v11957_v8 = vand.u32 4294901760, %v8638_v5  ;;  %v11961_v5 = vand.u32 4294901760, %v8660_v25  ;;  %v11966_v25 = vand.u32 4294901760, %v8716_v32 }
  0xdc   :  { %7489 = vmatpush1.bf16.msra.mxu0 %v8593_v46  ;;  %637 = vmatprep.mubr.f32.mxu0 %v8933_v15 }
  0xdd   :  { %7490 = vmatprep.subr.bf16.mxu0 %v11932_v14  ;;  %v7524_v15 = vpack.c.bf16 %v11957_v8, %v11956_v50 }
  0xdf   :  { %640 = vmatmul.mubr.f32.gmra.mrb[2].mxu0 %v8969_v18  ;;  %v7533_v18 = vpack.c.bf16 %v11963_v16, %v11962_v13 }
  0xe0   :  { %7492 = vmatpush1.bf16.msra.mxu0 %v8619_v60  ;;  %646 = vmatprep.mubr.f32.mxu0 %v8946_v52  ;;  %v7527_v52 = vpack.c.bf16 %v11959_v62, %v11958_v61 }
  0xe1   :  { %7493 = vmatprep.subr.bf16.mxu0 %v11932_v14 }
  0xe3   :  { %649 = vmatmul.mubr.f32.gmra.mrb[4].mxu0 %v8993_v54  ;;  %v11967_v54 = vand.u32 4294901760, %v8729_v55 }
  0xe4   :  { %7495 = vmatpush1.bf16.msra.mxu0 %v8643_v12  ;;  %655 = vmatprep.mubr.f32.mxu0 %v8974_v1  ;;  %v11964_v1 = vand.u32 4294901760, %v8680_v35  ;;  %v11970_v35 = vand.u32 4294901760, %v8744_v58 }
  0xe5   :  { %7496 = vmatprep.subr.bf16.mxu0 %v11932_v14 }
  0xe7   :  { %658 = vmatmul.mubr.f32.gmra.mrb[6].mxu0 %v9009_v29  ;;  %v7542_v29 = vpack.c.bf16 %v11969_v33, %v11968_v31 }
  0xe8   :  { %7498 = vmatpush1.bf16.msra.mxu0 %v8705_v43  ;;  %750 = vmatprep.mubr.f32.mxu0 %v11943_v28 }
  0xe9   :  { %7499 = vmatprep.subr.bf16.mxu0 %v11932_v14 }
  0xec   :  { %7501 = vmatpush1.bf16.msra.mxu0 %v8707_v44 }
  0xed   :  { %7502 = vmatprep.subr.bf16.mxu0 %v11932_v14 }
  0xf0   :  { %7504 = vmatpush1.bf16.msra.mxu0 %v11944_v51 }
  0xf1   :  { %7505 = vmatprep.subr.bf16.mxu0 %v11932_v14 }
  0xf4   :  { %7507 = vmatpush1.bf16.msra.mxu0 %v11945_v23 }
  0xf5   :  { %7508 = vmatprep.subr.bf16.mxu0 %v11932_v14 }
  0xf8   :  { %7510 = vmatpush1.bf16.msra.mxu0 %v11946_v36 }
  0xf9   :  { %7511 = vmatprep.subr.bf16.mxu0 %v11932_v14 }
  0xfc   :  { %7513 = vmatpush1.bf16.msra.mxu0 %v11947_v10 }
  0xfd   :  { %7514 = vmatprep.subr.bf16.mxu0 %v11932_v14 }
 0x100   :  { %7516 = vmatpush1.bf16.msra.mxu0 %v11948_v11 }
 0x101   :  { %7517 = vmatprep.subr.bf16.mxu0 %v11932_v14 }
 0x103   :  { %754 = vmatmul.mubr.f32.vlgmr.msra.gmra.mrb[0].mxu0 %v11951_v49 }
 0x104   :  { %7519 = vmatpush1.bf16.msra.mxu0 %v7518_v17  ;;  %761 = vmatprep.mubr.f32.mxu0 %v11952_v38 }
 0x105   :  { %7520 = vmatprep.subr.bf16.mxu0 %v11932_v14 }
 0x107   :  { %765 = vmatmul.mubr.f32.gmra.mrb[2].mxu0 %v291_v21  ;;  %v7530_v21 = vpack.c.bf16 %v11961_v5, %v11960_v4 }
 0x108   :  { %7522 = vmatpush1.bf16.msra.mxu0 %v7521_v48  ;;  %772 = vmatprep.mubr.f32.mxu0 %v11955_v47 }
 0x109   :  { %7523 = vmatprep.subr.bf16.mxu0 %v11932_v14 }
 0x10b   :  { %776 = vmatmul.mubr.f32.gmra.mrb[4].mxu0 %v306_v53  ;;  %v7539_v53 = vpack.c.bf16 %v11967_v54, %v11966_v25 }
 0x10c   :  { %7525 = vmatpush1.bf16.msra.mxu0 %v7524_v15  ;;  %783 = vmatprep.mubr.f32.mxu0 %v315_v24  ;;  %v7536_v24 = vpack.c.bf16 %v11965_v22, %v11964_v1 }
 0x10d   :  { %7526 = vmatprep.subr.bf16.mxu0 %v11932_v14 }
 0x10f   :  { %787 = vmatmul.mubr.f32.gmra.mrb[6].mxu0 %v321_v9  ;;  %v7545_v9 = vpack.c.bf16 %v11971_v40, %v11970_v35 }
 0x110   :  { %7528 = vmatpush1.bf16.msra.mxu0 %v7527_v52  ;;  %917 = vmatprep.mubr.f32.mxu0 %v8782_v39 }
 0x111   :  { %7529 = vmatprep.subr.bf16.mxu0 %v11932_v14 }
 0x114   :  { %7531 = vmatpush1.bf16.msra.mxu0 %v7530_v21 }
 0x115   :  { %7532 = vmatprep.subr.bf16.mxu0 %v11932_v14 }
 0x118   :  { %7534 = vmatpush1.bf16.msra.mxu0 %v7533_v18 }
 0x119   :  { %7535 = vmatprep.subr.bf16.mxu0 %v11932_v14 }
 0x11c   :  { %7537 = vmatpush1.bf16.msra.mxu0 %v7536_v24 }
 0x11d   :  { %7538 = vmatprep.subr.bf16.mxu0 %v11932_v14 }
 0x120   :  { %7540 = vmatpush1.bf16.msra.mxu0 %v7539_v53 }
 0x121   :  { %7541 = vmatprep.subr.bf16.mxu0 %v11932_v14 }
 0x124   :  { %7543 = vmatpush1.bf16.msra.mxu0 %v7542_v29 }
 0x125   :  { %7544 = vmatprep.subr.bf16.mxu0 %v11932_v14 }
 0x128   :  { %7546 = vmatpush1.bf16.msra.mxu0 %v7545_v9 }
 0x129   :  { %7547 = vmatprep.subr.bf16.mxu0 %v11932_v14 }
 0x12b   :  { %919 = vmatmul.mubr.f32.vlgmr.msra.gmra.mrb[0].mxu0 %v8949_v34 }
 0x12c   :  { %7549 = vmatpush1.bf16.msra.mxu0 %v8593_v46  ;;  %924 = vmatprep.mubr.f32.mxu0 %v8928_v30  ;;  %v172_v46 = vlaneseq }
 0x12d   :  { %7550 = vmatprep.subr.bf16.mxu0 %v11932_v14 }
 0x12f   :  { %926 = vmatmul.mubr.f32.gmra.mrb[2].mxu0 %v8963_v6 }
 0x130   :  { %7552 = vmatpush1.bf16.msra.mxu0 %v8619_v60  ;;  %931 = vmatprep.mubr.f32.mxu0 %v8935_v27  ;;  %v9208_v60 = vshrl.u32 %v172_v46, 7 }
 0x131   :  { %7553 = vmatprep.subr.bf16.mxu0 %v11932_v14 }
 0x132   :  { %11972 = vst [vmem:[#allocation5_spill] sm:$0xff] %v9208_v60 }
 0x133   :  { %933 = vmatmul.mubr.f32.gmra.mrb[4].mxu0 %v8987_v7 }
 0x134   :  { %7555 = vmatpush1.bf16.msra.mxu0 %v8643_v12  ;;  %938 = vmatprep.mubr.f32.mxu0 %v8955_v42  ;;  %v174_v12 = vsub.s32 0, %v9208_v60 }
 0x135   :  { %7556 = vmatprep.subr.bf16.mxu0 %v11932_v14 }
 0x137   :  { %940 = vmatmul.mubr.f32.gmra.mrb[6].mxu0 %v9003_v0 }
 0x138   :  { %7558 = vmatpush1.bf16.msra.mxu0 %v8705_v43  ;;  %1030 = vmatprep.mubr.f32.mxu0 %v8782_v39  ;;  %v9214_v43 = vld [vmem:[%s11552_s6] sm:$0xff] }
 0x139   :  { %7559 = vmatprep.subr.bf16.mxu0 %v11932_v14 }
 0x13c   :  { %7561 = vmatpush1.bf16.msra.mxu0 %v8707_v44  ;;  %v175_v44 = vrot.slane %v9214_v43, %v174_v12 }
 0x13d   :  { %7562 = vmatprep.subr.bf16.mxu0 %v11932_v14 }
 0x140   :  { %7564 = vmatpush1.bf16.msra.mxu0 %v11944_v51 }
 0x141   :  { %7565 = vmatprep.subr.bf16.mxu0 %v11932_v14 }
 0x144   :  { %7567 = vmatpush1.bf16.msra.mxu0 %v11945_v23 }
 0x145   :  { %7568 = vmatprep.subr.bf16.mxu0 %v11932_v14 }
 0x148   :  { %7570 = vmatpush1.bf16.msra.mxu0 %v11946_v36 }
 0x149   :  { %7571 = vmatprep.subr.bf16.mxu0 %v11932_v14 }
 0x14c   :  { %7573 = vmatpush1.bf16.msra.mxu0 %v11947_v10 }
 0x14d   :  { %7574 = vmatprep.subr.bf16.mxu0 %v11932_v14 }
 0x150   :  { %7576 = vmatpush1.bf16.msra.mxu0 %v11948_v11 }
 0x153   :  { %1032 = vmatmul.mubr.f32.vlgmr.msra.gmra.mrb[0].mxu0 %v8949_v34 }
 0x154   :  { %1037 = vmatprep.mubr.f32.mxu0 %v8928_v30 }
 0x157   :  { %1039 = vmatmul.mubr.f32.gmra.mrb[2].mxu0 %v8963_v6 }
 0x158   :  { %1044 = vmatprep.mubr.f32.mxu0 %v8935_v27 }
 0x15b   :  { %1046 = vmatmul.mubr.f32.gmra.mrb[4].mxu0 %v8987_v7 }
 0x15c   :  { %1051 = vmatprep.mubr.f32.mxu0 %v8955_v42 }
 0x15f   :  { %1053 = vmatmul.mubr.f32.gmra.mrb[6].mxu0 %v9003_v0 }
 0x226   :  { %v1033_v32 = vpop.f32.mrb[0].mxu0 }
 0x227   :  { %v8249_v55 = vadd.f32 %v1033_v32, %v175_v44  ;;  %v1035_v56 = vpop.f32.mrb[1].mxu0 }
 0x229   :  { %v1058_v57 = vsel %vm137_vm4, %v8249_v55, 0.0 }
 0x22a   :  { %v1040_v58 = vpop.f32.mrb[2].mxu0  ;;  %1059 = vadd.xlane.f32.xlu0 %v1058_v57 }
 0x22b   :  { %v8250_v59 = vadd.f32 %v1040_v58, %v175_v44  ;;  %v1042_v39 = vpop.f32.mrb[3].mxu0 }
 0x22d   :  { %v1061_v30 = vsel %vm137_vm4, %v8250_v59, 0.0 }
 0x22e   :  { %v1047_v27 = vpop.f32.mrb[4].mxu0  ;;  %1062 = vadd.xlane.f32.xlu1 %v1061_v30 }
 0x22f   :  { %v8251_v34 = vadd.f32 %v1047_v27, %v175_v44  ;;  %v1049_v42 = vpop.f32.mrb[5].mxu0 }
 0x231   :  { %v1064_v6 = vsel %vm137_vm4, %v8251_v34, 0.0 }
 0x232   :  { %v1054_v7 = vpop.f32.mrb[6].mxu0  ;;  %1065 = vadd.xlane.f32.xlu0 %v1064_v6 }
 0x233   :  { %v8252_v14 = vadd.f32 %v1054_v7, %v175_v44  ;;  %v1056_v0 = vpop.f32.mrb[7].mxu0 }
 0x235   :  { %v1067_v63 = vsel %vm137_vm4, %v8252_v14, 0.0 }
 0x236   :  { %1068 = vadd.xlane.f32.xlu0 %v1067_v63 }
 0x2b7   :  { %v1060_v37 = vpop.xlane.xlu0 %1059 }
 0x2bb   :  { %v1063_v20 = vpop.xlane.xlu1 %1062 }
 0x2bc   :  { %v1070_v19 = vadd.f32 %v1063_v20, %v1060_v37 }
 0x2be   :  { %v1071_v2 = vrot.slane %v1070_v19, 4 }
 0x2bf   :  { %v1066_v28 = vpop.xlane.xlu0 %1065 }
 0x2c0   :  { %v1072_v51 = vadd.f32 %v1071_v2, %v1070_v19 }
 0x2c2   :  { %v1073_v23 = vrot.slane %v1072_v51, 2 }
 0x2c3   :  { %v1069_v36 = vpop.xlane.xlu0 %1068 }
 0x2c4   :  { %v1074_v10 = vadd.f32 %v1073_v23, %v1072_v51  ;;  %v1077_v11 = vadd.f32 %v1069_v36, %v1066_v28 }
 0x2c6   :  { %v1075_v45 = vrot.slane %v1074_v10, 1  ;;  %v1078_v41 = vrot.slane %v1077_v11, 4 }
 0x2c8   :  { %v1076_v17 = vadd.f32 %v1075_v45, %v1074_v10  ;;  %v1079_v49 = vadd.f32 %v1078_v41, %v1077_v11 }
 0x2ca   :  { %v1080_v38 = vrot.slane %v1079_v49, 2  ;;  %v1084_v3 = vmul.f32 0.001953125, %v1076_v17 }
 0x2cc   :  { %v1081_v26 = vadd.f32 %v1080_v38, %v1079_v49  ;;  %v1087_v48 = vsub.f32 %v8250_v59, %v1084_v3  ;;  %v1086_v47 = vsub.f32 %v8249_v55, %v1084_v3 }
 0x2ce   :  { %v1082_v50 = vrot.slane %v1081_v26, 1  ;;  %v1091_v8 = vmul.f32 %v1087_v48, %v1087_v48  ;;  %v1090_v15 = vmul.f32 %v1086_v47, %v1086_v47 }
 0x2d0   :  { %v1083_v61 = vadd.f32 %v1082_v50, %v1081_v26  ;;  %v1097_v62 = vsel %vm137_vm4, %v1091_v8, 0.0  ;;  %v1094_v52 = vsel %vm137_vm4, %v1090_v15, 0.0 }
 0x2d1   :  { %1098 = vadd.xlane.f32.xlu0 %v1097_v62  ;;  %1095 = vadd.xlane.f32.xlu1 %v1094_v52  ;;  %v1200_v62 = vld [vmem:[%s11548_s2 + $0x8] sm:$0xff] }
 0x2d2   :  { %v1085_v4 = vmul.f32 0.001953125, %v1083_v61  ;;  %v1199_v61 = vld [vmem:[%s11548_s2] sm:$0xff] }
 0x2d3   :  { %v1220_v52 = vand.u32 4294901760, %v1199_v61 }
 0x2d4   :  { %v1089_v5 = vsub.f32 %v8252_v14, %v1085_v4  ;;  %v1088_v21 = vsub.f32 %v8251_v34, %v1085_v4  ;;  %v1223_v4 = vand.u32 4294901760, %v1200_v62 }
 0x2d6   :  { %v1093_v13 = vmul.f32 %v1089_v5, %v1089_v5  ;;  %v1092_v16 = vmul.f32 %v1088_v21, %v1088_v21 }
 0x2d8   :  { %v1103_v18 = vsel %vm137_vm4, %v1093_v13, 0.0  ;;  %v1100_v1 = vsel %vm137_vm4, %v1092_v16, 0.0  ;;  %v1202_v13 = vld [vmem:[%s11548_s2 + $0x18] sm:$0xff] }
 0x2d9   :  { %1104 = vadd.xlane.f32.xlu0 %v1103_v18  ;;  %1101 = vadd.xlane.f32.xlu1 %v1100_v1  ;;  %v1229_v18 = vand.u32 4294901760, %v1202_v13 }
 0x35e   :  { %v1096_v22 = vpop.xlane.xlu1 %1095  ;;  %v1099_v24 = vpop.xlane.xlu0 %1098 }
 0x35f   :  { %v1106_v25 = vadd.f32 %v1099_v24, %v1096_v22  ;;  %v1330_v22 = vsub.f32 %v1199_v61, %v1220_v52  ;;  %v1337_v24 = vsub.f32 %v1200_v62, %v1223_v4 }
 0x361   :  { %v1107_v54 = vrot.slane %v1106_v25, 4 }
 0x363   :  { %v1108_v53 = vadd.f32 %v1107_v54, %v1106_v25  ;;  %v1331_v25 = vand.u32 4294901760, %v1330_v22  ;;  %v1338_v54 = vand.u32 4294901760, %v1337_v24 }
 0x365   :  { %v1109_v31 = vrot.slane %v1108_v53, 2 }
 0x366   :  { %v1102_v33 = vpop.xlane.xlu1 %1101  ;;  %v1105_v29 = vpop.xlane.xlu0 %1104 }
 0x367   :  { %v1110_v35 = vadd.f32 %v1109_v31, %v1108_v53  ;;  %v1113_v40 = vadd.f32 %v1105_v29, %v1102_v33  ;;  %v1332_v53 = vsub.f32 %v1330_v22, %v1331_v25  ;;  %v1339_v31 = vsub.f32 %v1337_v24, %v1338_v54 }
 0x368   :  { %v1351_v29 = vsub.f32 %v1202_v13, %v1229_v18 }
 0x369   :  { %v1111_v9 = vrot.slane %v1110_v35, 1  ;;  %v1114_v46 = vrot.slane %v1113_v40, 4 }
 0x36b   :  { %v1112_v12 = vadd.f32 %v1111_v9, %v1110_v35  ;;  %v1115_v44 = vadd.f32 %v1114_v46, %v1113_v40  ;;  %v1333_v35 = vand.u32 4294901760, %v1332_v53  ;;  %v1340_v40 = vand.u32 4294901760, %v1339_v31 }
 0x36c   :  { %v1352_v46 = vand.u32 4294901760, %v1351_v29 }
 0x36d   :  { %v1120_v32 = vmul.f32 0.001953125, %v1112_v12  ;;  %v1116_v55 = vrot.slane %v1115_v44, 2  ;;  %v9269_v12 = vpack.c.bf16 %v1340_v40, %v1333_v35 }
 0x36f   :  { %v1122_v56 = vadd.f32 1e-05, %v1120_v32  ;;  %v1117_v57 = vadd.f32 %v1116_v55, %v1115_v44  ;;  %v1353_v32 = vsub.f32 %v1351_v29, %v1352_v46 }
 0x371   :  { %8396 = vrsqrt.f32 %v1122_v56  ;;  %v1118_v58 = vrot.slane %v1117_v57, 1  ;;  %v1354_v56 = vand.u32 4294901760, %v1353_v32 }
 0x373   :  { %v1119_v59 = vadd.f32 %v1118_v58, %v1117_v57  ;;  %v9274_v58 = vpack.c.bf16 %v1337_v24, %v1330_v22 }
 0x375   :  { %v1121_v39 = vmul.f32 0.001953125, %v1119_v59 }
 0x377   :  { %v1123_v30 = vadd.f32 1e-05, %v1121_v39  ;;  %v9278_v39 = vpack.c.bf16 %v1338_v54, %v1331_v25 }
 0x379   :  { %8398 = vrsqrt.f32 %v1123_v30 }
 0x37b   :  { %v8397_v27 = vpop.eup %8396 }
 0x37c   :  { %v1127_v34 = vmul.f32 %v8397_v27, %v1087_v48  ;;  %v1126_v42 = vmul.f32 %v8397_v27, %v1086_v47 }
 0x37e   :  { %v1133_v6 = vsel %vm137_vm4, %v1127_v34, 0.0  ;;  %v1130_v7 = vsel %vm137_vm4, %v1126_v42, 0.0 }
 0x37f   :  { %1134 = vadd.xlane.f32.xlu0 %v1133_v6  ;;  %1131 = vadd.xlane.f32.xlu1 %v1130_v7 }
 0x383   :  { %v8399_v14 = vpop.eup %8398 }
 0x384   :  { %v1129_v0 = vmul.f32 %v8399_v14, %v1089_v5  ;;  %v1128_v63 = vmul.f32 %v8399_v14, %v1088_v21  ;;  %v9255_v5 = vpack.c.bf16 %v1223_v4, %v1220_v52  ;;  %v1201_v21 = vld [vmem:[%s11548_s2 + $0x10] sm:$0xff] }
 0x385   :  { %v1226_v16 = vand.u32 4294901760, %v1201_v21 }
 0x386   :  { %v1139_v37 = vsel %vm137_vm4, %v1129_v0, 0.0  ;;  %v1136_v20 = vsel %vm137_vm4, %v1128_v63, 0.0  ;;  %7578 = vmatprep.subr.bf16.mxu1 %v9255_v5 }
 0x387   :  { %1140 = vadd.xlane.f32.xlu0 %v1139_v37  ;;  %1137 = vadd.xlane.f32.xlu1 %v1136_v20  ;;  %v9265_v1 = vpack.c.bf16 %v1229_v18, %v1226_v16  ;;  %v1344_v33 = vsub.f32 %v1201_v21, %v1226_v16 }
 0x388   :  { %7580 = vmatpush3.bf16.msra.mxu1 %v9255_v5 }
 0x389   :  { %7582 = vmatprep.subr.bf16.mxu1 %v9265_v1  ;;  %v1345_v9 = vand.u32 4294901760, %v1344_v33  ;;  %v9276_v59 = vpack.c.bf16 %v1351_v29, %v1344_v33 }
 0x38b   :  { %v1346_v44 = vsub.f32 %v1344_v33, %v1345_v9  ;;  %v9280_v30 = vpack.c.bf16 %v1352_v46, %v1345_v9 }
 0x38c   :  { %7584 = vmatpush3.bf16.msra.mxu1 %v9265_v1 }
 0x38d   :  { %7586 = vmatprep.subr.bf16.mxu1 %v9269_v12  ;;  %v1347_v55 = vand.u32 4294901760, %v1346_v44 }
 0x38f   :  { %v9272_v57 = vpack.c.bf16 %v1354_v56, %v1347_v55 }
 0x40c   :  { %v1132_v19 = vpop.xlane.xlu1 %1131  ;;  %v1135_v2 = vpop.xlane.xlu0 %1134 }
 0x40d   :  { %v1143_v28 = vmul.f32 0.03125, %v1132_v19  ;;  %v1144_v51 = vmul.f32 0.03125, %v1135_v2  ;;  %v1185_v19 = vsub.s32 1, %v9208_v60 }
 0x40f   :  { %v9229_v23 = vsub.f32 %v1126_v42, %v1143_v28  ;;  %v9231_v36 = vsub.f32 %v1127_v34, %v1144_v51  ;;  %v1193_v51 = vsub.s32 2, %v9208_v60 }
 0x411   :  { %v1151_v10 = vmul.f32 %v9229_v23, %v9229_v23  ;;  %v1152_v11 = vmul.f32 %v9231_v36, %v9231_v36 }
 0x413   :  { %v1155_v45 = vsel %vm137_vm4, %v1151_v10, 0.0  ;;  %v1158_v41 = vsel %vm137_vm4, %v1152_v11, 0.0  ;;  %v1186_v10 = vrot.slane %v9214_v43, %v1185_v19  ;;  %v2000_v19 = vld [vmem:[%s11549_s3 + $0x138] sm:$0xff] }
 0x414   :  { %1156 = vadd.xlane.f32.xlu1 %v1155_v45  ;;  %v1138_v17 = vpop.xlane.xlu1 %1137  ;;  %1159 = vadd.xlane.f32.xlu0 %v1158_v41  ;;  %v1141_v49 = vpop.xlane.xlu0 %1140 }
 0x415   :  { %v1145_v38 = vmul.f32 0.03125, %v1138_v17  ;;  %v1146_v3 = vmul.f32 0.03125, %v1141_v49  ;;  %v1194_v17 = vrot.slane %v9214_v43, %v1193_v51 }
 0x417   :  { %v9239_v26 = vsub.f32 %v1128_v63, %v1145_v38  ;;  %v9241_v48 = vsub.f32 %v1129_v0, %v1146_v3 }
 0x419   :  { %v1153_v47 = vmul.f32 %v9239_v26, %v9239_v26  ;;  %v1154_v50 = vmul.f32 %v9241_v48, %v9241_v48 }
 0x41b   :  { %v1161_v8 = vsel %vm137_vm4, %v1153_v47, 0.0  ;;  %v1164_v15 = vsel %vm137_vm4, %v1154_v50, 0.0 }
 0x41c   :  { %1162 = vadd.xlane.f32.xlu1 %v1161_v8  ;;  %1165 = vadd.xlane.f32.xlu0 %v1164_v15 }
 0x4a1   :  { %v1157_v27 = vpop.xlane.xlu1 %1156  ;;  %v1160_v34 = vpop.xlane.xlu0 %1159 }
 0x4a2   :  { %v1167_v42 = vmul.f32 0.03125, %v1157_v27  ;;  %v1168_v6 = vmul.f32 0.03125, %v1160_v34 }
 0x4a4   :  { %v1171_v7 = vadd.f32 1e-05, %v1167_v42  ;;  %v1172_v14 = vadd.f32 1e-05, %v1168_v6 }
 0x4a6   :  { %8400 = vrsqrt.f32 %v1171_v7  ;;  %v1997_v7 = vld [vmem:[%s11549_s3 + $0x120] sm:$0xff] }
 0x4a7   :  { %8402 = vrsqrt.f32 %v1172_v14  ;;  %v1998_v14 = vld [vmem:[%s11549_s3 + $0x128] sm:$0xff] }
 0x4a9   :  { %v1163_v0 = vpop.xlane.xlu1 %1162  ;;  %v1166_v63 = vpop.xlane.xlu0 %1165 }
 0x4aa   :  { %v1169_v37 = vmul.f32 0.03125, %v1163_v0  ;;  %v1170_v20 = vmul.f32 0.03125, %v1166_v63  ;;  %v3056_v0 = vand.u32 4294901760, %v1997_v7  ;;  %v3059_v63 = vand.u32 4294901760, %v1998_v14 }
 0x4ac   :  { %v1173_v2 = vadd.f32 1e-05, %v1169_v37  ;;  %v1174_v28 = vadd.f32 1e-05, %v1170_v20  ;;  %v9351_v37 = vpack.c.bf16 %v3059_v63, %v3056_v0  ;;  %v1999_v20 = vld [vmem:[%s11549_s3 + $0x130] sm:$0xff] }
 0x4ad   :  { %v3062_v51 = vand.u32 4294901760, %v1999_v20 }
 0x4ae   :  { %8404 = vrsqrt.f32 %v1173_v2 }
 0x4af   :  { %8406 = vrsqrt.f32 %v1174_v28 }
 0x4b0   :  { %v8401_v11 = vpop.eup %8400 }
 0x4b1   :  { %v8403_v45 = vpop.eup %8402  ;;  %v1179_v41 = vmul.f32 %v8401_v11, %v9229_v23 }
 0x4b2   :  { %v1180_v49 = vmul.f32 %v8403_v45, %v9231_v36 }
 0x4b3   :  { %v1187_v38 = vmul.f32 %v1186_v10, %v1179_v41 }
 0x4b4   :  { %v1188_v3 = vmul.f32 %v1186_v10, %v1180_v49 }
 0x4b5   :  { %v1195_v47 = vadd.f32 %v1194_v17, %v1187_v38 }
 0x4b6   :  { %v1196_v50 = vadd.f32 %v1194_v17, %v1188_v3 }
 0x4b7   :  { %v1208_v8 = vsel %vm137_vm4, %v1195_v47, 0 }
 0x4b8   :  { %v8405_v15 = vpop.eup %8404  ;;  %v9289_v61 = vand.u32 4294901760, %v1208_v8  ;;  %v1211_v62 = vsel %vm137_vm4, %v1196_v50, 0 }
 0x4b9   :  { %v8407_v52 = vpop.eup %8406  ;;  %v1181_v4 = vmul.f32 %v8405_v15, %v9239_v26  ;;  %v9293_v21 = vand.u32 4294901760, %v1211_v62 }
 0x4ba   :  { %v1182_v23 = vmul.f32 %v8407_v52, %v9241_v48  ;;  %v1289_v36 = vsub.f32 %v1208_v8, %v9289_v61 }
 0x4bb   :  { %v1299_v13 = vsub.f32 %v1211_v62, %v9293_v21  ;;  %v1189_v16 = vmul.f32 %v1186_v10, %v1181_v4  ;;  %v3186_v4 = vsub.f32 %v1997_v7, %v3056_v0  ;;  %v9399_v7 = vld [vmem:[%s11550_s4 + $0x80] sm:$0xff] }
 0x4bc   :  { %v1290_v18 = vand.u32 4294901760, %v1289_v36  ;;  %v1190_v22 = vmul.f32 %v1186_v10, %v1182_v23  ;;  %v3065_v10 = vand.u32 4294901760, %v2000_v19  ;;  %11978 = vst [vmem:[#allocation11_spill] sm:$0xff] %v9399_v7 }
 0x4bd   :  { %v1300_v24 = vand.u32 4294901760, %v1299_v13  ;;  %v1197_v25 = vadd.f32 %v1194_v17, %v1189_v16 }
 0x4be   :  { %v1291_v54 = vsub.f32 %v1289_v36, %v1290_v18  ;;  %v1198_v53 = vadd.f32 %v1194_v17, %v1190_v22  ;;  %v9361_v41 = vpack.c.bf16 %v3065_v10, %v3062_v51 }
 0x4bf   :  { %v1301_v31 = vsub.f32 %v1299_v13, %v1300_v24  ;;  %v1214_v33 = vsel %vm137_vm4, %v1197_v25, 0  ;;  %v3200_v25 = vsub.f32 %v1999_v20, %v3062_v51 }
 0x4c0   :  { %v1292_v29 = vand.u32 4294901760, %v1291_v54  ;;  %v1308_v26 = vand.u32 4294901760, %v1214_v33  ;;  %v1217_v35 = vsel %vm137_vm4, %v1198_v53, 0  ;;  %11973 = vst [vmem:[#allocation6_spill] sm:$0xff] %v9361_v41  ;;  %v3207_v54 = vsub.f32 %v2000_v19, %v3065_v10 }
 0x4c1   :  { %v1302_v40 = vand.u32 4294901760, %v1301_v31  ;;  %v1318_v48 = vand.u32 4294901760, %v1217_v35 }
 0x4c2   :  { %6973 = vmatprep.mubr.f32.mxu1 %v1292_v29  ;;  %v1309_v9 = vsub.f32 %v1214_v33, %v1308_v26  ;;  %v3201_v33 = vand.u32 4294901760, %v3200_v25  ;;  %v3208_v29 = vand.u32 4294901760, %v3207_v54 }
 0x4c3   :  { %6974 = vmatmul.mubr.f32.vlgmr.msra.gmra.mrb[0].mxu1 %v1302_v40  ;;  %v1319_v46 = vsub.f32 %v1217_v35, %v1318_v48 }
 0x4c4   :  { %7588 = vmatpush3.bf16.msra.mxu1 %v9269_v12  ;;  %v1310_v44 = vand.u32 4294901760, %v1309_v9  ;;  %v1993_v12 = vld [vmem:[%s11549_s3 + $0x100] sm:$0xff]  ;;  %v3202_v35 = vsub.f32 %v3200_v25, %v3201_v33  ;;  %v3209_v40 = vsub.f32 %v3207_v54, %v3208_v29 }
 0x4c5   :  { %7590 = vmatprep.subr.bf16.mxu1 %v9272_v57  ;;  %v1320_v32 = vand.u32 4294901760, %v1319_v46 }
 0x4c6   :  { %v1311_v55 = vsub.f32 %v1309_v9, %v1310_v44 }
 0x4c7   :  { %v1321_v56 = vsub.f32 %v1319_v46, %v1320_v32 }
 0x4c8   :  { %v1312_v27 = vand.u32 4294901760, %v1311_v55  ;;  %7592 = vmatpush3.bf16.msra.mxu1 %v9272_v57  ;;  %v3044_v57 = vand.u32 4294901760, %v1993_v12 }
 0x4c9   :  { %v1322_v34 = vand.u32 4294901760, %v1321_v56  ;;  %7594 = vmatprep.subr.bf16.mxu1 %v9274_v58  ;;  %v9380_v56 = vpack.c.bf16 %v3207_v54, %v3200_v25  ;;  %v9484_v25 = vld [vmem:[%s11550_s4 + $0x18] sm:$0xff]  ;;  %v1979_v54 = vld [vmem:[%s11549_s3 + $0x90] sm:$0xff] }
 0x4ca   :  { %6976 = vmatprep.mubr.f32.mxu1 %v1312_v27  ;;  %v3158_v2 = vsub.f32 %v1993_v12, %v3044_v57  ;;  %11989 = vst [vmem:[#allocation22_spill] sm:$0xff] %v9484_v25 }
 0x4cb   :  { %6977 = vmatmul.mubr.f32.gmra.mrb[2].mxu1 %v1322_v34 }
 0x4cc   :  { %6987 = vmatprep.mubr.f32.mxu1 %v9289_v61  ;;  %v3159_v11 = vand.u32 4294901760, %v3158_v2 }
 0x4ce   :  { %v3160_v17 = vsub.f32 %v3158_v2, %v3159_v11 }
 0x4cf   :  { %6988 = vmatmul.mubr.f32.vlgmr.msra.gmra.mrb[0].mxu1 %v9293_v21 }
 0x4d0   :  { %7596 = vmatpush3.bf16.msra.mxu1 %v9274_v58  ;;  %6990 = vmatprep.mubr.f32.mxu1 %v1308_v26  ;;  %v3161_v47 = vand.u32 4294901760, %v3160_v17  ;;  %v9427_v17 = vld [vmem:[%s11549_s3 + $0x80] sm:$0xff] }
 0x4d1   :  { %7598 = vmatprep.subr.bf16.mxu1 %v9276_v59 }
 0x4d3   :  { %6991 = vmatmul.mubr.f32.gmra.mrb[2].mxu1 %v1318_v48 }
 0x4d4   :  { %7600 = vmatpush3.bf16.msra.mxu1 %v9276_v59  ;;  %7001 = vmatprep.mubr.f32.mxu1 %v1289_v36 }
 0x4d5   :  { %7602 = vmatprep.subr.bf16.mxu1 %v9255_v5 }
 0x4d7   :  { %7002 = vmatmul.mubr.f32.vlgmr.msra.gmra.mrb[0].mxu1 %v1299_v13  ;;  %v3187_v13 = vand.u32 4294901760, %v3186_v4 }
 0x4d8   :  { %7604 = vmatpush3.bf16.msra.mxu1 %v9255_v5  ;;  %7004 = vmatprep.mubr.f32.mxu1 %v1309_v9  ;;  %v3210_v9 = vand.u32 4294901760, %v3209_v40  ;;  %v1964_v40 = vld [vmem:[%s11549_s3 + $0x18] sm:$0xff] }
 0x4d9   :  { %7606 = vmatprep.subr.bf16.mxu1 %v9265_v1  ;;  %v3188_v22 = vsub.f32 %v3186_v4, %v3187_v13 }
 0x4db   :  { %7005 = vmatmul.mubr.f32.gmra.mrb[2].mxu1 %v1319_v46  ;;  %v3189_v53 = vand.u32 4294901760, %v3188_v22 }
 0x4dc   :  { %7608 = vmatpush3.bf16.msra.mxu1 %v9265_v1  ;;  %7015 = vmatprep.mubr.f32.mxu1 %v1290_v18 }
 0x4dd   :  { %7610 = vmatprep.subr.bf16.mxu1 %v9278_v39 }
 0x4df   :  { %7016 = vmatmul.mubr.f32.vlgmr.msra.gmra.mrb[0].mxu1 %v1300_v24 }
 0x4e0   :  { %7612 = vmatpush3.bf16.msra.mxu1 %v9278_v39  ;;  %7018 = vmatprep.mubr.f32.mxu1 %v1310_v44  ;;  %v1996_v39 = vld [vmem:[%s11549_s3 + $0x118] sm:$0xff] }
 0x4e1   :  { %7614 = vmatprep.subr.bf16.mxu1 %v9280_v30  ;;  %v3053_v42 = vand.u32 4294901760, %v1996_v39 }
 0x4e3   :  { %7019 = vmatmul.mubr.f32.gmra.mrb[2].mxu1 %v1320_v32  ;;  %v3179_v3 = vsub.f32 %v1996_v39, %v3053_v42 }
 0x4e4   :  { %7616 = vmatpush3.bf16.msra.mxu1 %v9280_v30  ;;  %7029 = vmatprep.mubr.f32.mxu1 %v9289_v61 }
 0x4e5   :  { %7618 = vmatprep.subr.bf16.mxu1 %v9255_v5  ;;  %v3180_v15 = vand.u32 4294901760, %v3179_v3 }
 0x4e7   :  { %7030 = vmatmul.mubr.f32.vlgmr.msra.gmra.mrb[0].mxu1 %v9293_v21  ;;  %v3181_v52 = vsub.f32 %v3179_v3, %v3180_v15 }
 0x4e8   :  { %7620 = vmatpush3.bf16.msra.mxu1 %v9255_v5  ;;  %7032 = vmatprep.mubr.f32.mxu1 %v1308_v26  ;;  %v1994_v5 = vld [vmem:[%s11549_s3 + $0x108] sm:$0xff] }
 0x4e9   :  { %7622 = vmatprep.subr.bf16.mxu1 %v9265_v1  ;;  %v3047_v58 = vand.u32 4294901760, %v1994_v5  ;;  %v3182_v36 = vand.u32 4294901760, %v3181_v52 }
 0x4eb   :  { %7033 = vmatmul.mubr.f32.gmra.mrb[2].mxu1 %v1318_v48  ;;  %v9331_v59 = vpack.c.bf16 %v3047_v58, %v3044_v57  ;;  %v3165_v28 = vsub.f32 %v1994_v5, %v3047_v58  ;;  %v9388_v5 = vpack.c.bf16 %v3208_v29, %v3201_v33  ;;  %v1205_v57 = vsub.s32 6, %v9208_v60  ;;  %v1980_v29 = vld [vmem:[%s11549_s3 + $0x98] sm:$0xff] }
 0x4ec   :  { %7624 = vmatpush3.bf16.msra.mxu1 %v9265_v1  ;;  %7043 = vmatprep.mubr.f32.mxu1 %v9289_v61  ;;  %v1995_v1 = vld [vmem:[%s11549_s3 + $0x110] sm:$0xff] }
 0x4ed   :  { %7818 = vmatprep.subr.bf16.mxu0 %v9331_v59  ;;  %v3050_v30 = vand.u32 4294901760, %v1995_v1  ;;  %v3166_v45 = vand.u32 4294901760, %v3165_v28  ;;  %v9374_v44 = vpack.c.bf16 %v3165_v28, %v3158_v2  ;;  %11977 = vst [vmem:[#allocation10_spill] sm:$0xff] %v9388_v5  ;;  %v1206_v58 = vrot.slane %v9214_v43, %v1205_v57  ;;  %v9410_v43 = vld [vmem:[%s11550_s4] sm:$0xff] }
 0x4ee   :  { %7820 = vmatpush3.bf16.msra.mxu0 %v9331_v59  ;;  %11980 = vst [vmem:[#allocation13_spill] sm:$0xff] %v9410_v43  ;;  %v11600_v2 = vand.u32 4294901760, %v9399_v7 }
 0x4ef   :  { %7044 = vmatmul.mubr.f32.vlgmr.msra.gmra.mrb[0].mxu1 %v9293_v21  ;;  %v9341_v6 = vpack.c.bf16 %v3053_v42, %v3050_v30  ;;  %v3167_v49 = vsub.f32 %v3165_v28, %v3166_v45  ;;  %v3172_v38 = vsub.f32 %v1995_v1, %v3050_v30  ;;  %v3193_v21 = vsub.f32 %v1998_v14, %v3059_v63  ;;  %v9404_v14 = vld [vmem:[%s11550_s4 + $0x88] sm:$0xff] }
 0x4f0   :  { %7046 = vmatprep.mubr.f32.mxu1 %v1308_v26  ;;  %v9382_v27 = vpack.c.bf16 %v3166_v45, %v3159_v11  ;;  %11979 = vst [vmem:[#allocation12_spill] sm:$0xff] %v9404_v14  ;;  %v9415_v63 = vld [vmem:[%s11550_s4 + $0x8] sm:$0xff]  ;;  %v11598_v28 = vand.u32 4294901760, %v9404_v14  ;;  %v11597_v11 = vand.u32 4294901760, %v9410_v43 }
 0x4f1   :  { %7822 = vmatprep.subr.bf16.mxu0 %v9341_v6  ;;  %v3168_v50 = vand.u32 4294901760, %v3167_v49  ;;  %v3173_v8 = vand.u32 4294901760, %v3172_v38  ;;  %v3194_v16 = vand.u32 4294901760, %v3193_v21  ;;  %v9376_v32 = vpack.c.bf16 %v3179_v3, %v3172_v38  ;;  %11981 = vst [vmem:[#allocation14_spill] sm:$0xff] %v9415_v63  ;;  %v9432_v49 = vld [vmem:[%s11549_s3 + $0x88] sm:$0xff] }
 0x4f2   :  { %7824 = vmatpush3.bf16.msra.mxu0 %v9341_v6  ;;  %v9378_v55 = vpack.c.bf16 %v3193_v21, %v3186_v4  ;;  %11974 = vst [vmem:[#allocation7_spill] sm:$0xff] %v9382_v27  ;;  %v11595_v45 = vand.u32 4294901760, %v9415_v63  ;;  %v9439_v3 = vsub.f32 %v9399_v7, %v11600_v2  ;;  %v9466_v4 = vld [vmem:[%s11550_s4 + $0x90] sm:$0xff]  ;;  %v1981_v2 = vld [vmem:[%s11549_s3 + $0xa0] sm:$0xff] }
 0x4f3   :  { %7047 = vmatmul.mubr.f32.gmra.mrb[2].mxu1 %v1318_v48  ;;  %7826 = vmatprep.subr.bf16.mxu0 %v9351_v37  ;;  %v9365_v61 = vpack.c.bf16 %v3168_v50, %v3161_v47  ;;  %v3174_v62 = vsub.f32 %v3172_v38, %v3173_v8  ;;  %v3195_v24 = vsub.f32 %v3193_v21, %v3194_v16  ;;  %v3203_v48 = vand.u32 4294901760, %v3202_v35  ;;  %v1961_v50 = vld [vmem:[%s11549_s3] sm:$0xff]  ;;  %v9471_v21 = vld [vmem:[%s11550_s4 + $0x98] sm:$0xff]  ;;  %v1963_v35 = vld [vmem:[%s11549_s3 + $0x10] sm:$0xff] }
 0x4f4   :  { %v9384_v34 = vpack.c.bf16 %v3180_v15, %v3173_v8  ;;  %v9386_v12 = vpack.c.bf16 %v3194_v16, %v3187_v13  ;;  %11982 = vst [vmem:[#allocation15_spill] sm:$0xff] %v9439_v3  ;;  %v9444_v47 = vsub.f32 %v9404_v14, %v11598_v28  ;;  %v1962_v8 = vld [vmem:[%s11549_s3 + $0x8] sm:$0xff]  ;;  %v9461_v52 = vsub.f32 %v9415_v63, %v11595_v45 }
 0x4f5   :  { %v3175_v23 = vand.u32 4294901760, %v3174_v62  ;;  %v3196_v31 = vand.u32 4294901760, %v3195_v24  ;;  %v9372_v46 = vpack.c.bf16 %v3210_v9, %v3203_v48  ;;  %v9456_v62 = vsub.f32 %v9410_v43, %v11597_v11  ;;  %11986 = vst [vmem:[#allocation19_spill] sm:$0xff] %v9466_v4  ;;  %11987 = vst [vmem:[#allocation20_spill] sm:$0xff] %v9471_v21  ;;  %v9479_v24 = vld [vmem:[%s11550_s4 + $0x10] sm:$0xff] }
 0x4f6   :  { %7828 = vmatpush3.bf16.msra.mxu0 %v9351_v37  ;;  %11975 = vst [vmem:[#allocation8_spill] sm:$0xff] %v9384_v34  ;;  %11976 = vst [vmem:[#allocation9_spill] sm:$0xff] %v9386_v12  ;;  %v11601_v13 = vand.u32 4294901760, %v9432_v49  ;;  %v2014_v16 = vand.u32 4294901760, %v1961_v50  ;;  %v2017_v22 = vand.u32 4294901760, %v1962_v8  ;;  %v11593_v33 = vand.u32 4294901760, %v9471_v21 }
 0x4f7   :  { %7830 = vmatprep.subr.bf16.mxu0 %v9361_v41  ;;  %v9368_v18 = vpack.c.bf16 %v3182_v36, %v3175_v23  ;;  %v9370_v26 = vpack.c.bf16 %v3196_v31, %v3189_v53  ;;  %11983 = vst [vmem:[#allocation16_spill] sm:$0xff] %v9444_v47  ;;  %11984 = vst [vmem:[#allocation17_spill] sm:$0xff] %v9456_v62  ;;  %v11602_v36 = vand.u32 4294901760, %v9427_v17  ;;  %v11594_v31 = vand.u32 4294901760, %v9466_v4 }
 0x4f8   :  { %11985 = vst [vmem:[#allocation18_spill] sm:$0xff] %v9461_v52  ;;  %11988 = vst [vmem:[#allocation21_spill] sm:$0xff] %v9479_v24  ;;  %v9506_v48 = vpack.c.bf16 %v2017_v22, %v2014_v16  ;;  %v9508_v9 = vsub.f32 %v1961_v50, %v2014_v16  ;;  %v9510_v57 = vsub.f32 %v1962_v8, %v2017_v22  ;;  %v2020_v50 = vand.u32 4294901760, %v1963_v35 }
 0x4f9   :  { %v9493_v53 = vpack.c.bf16 %v11601_v13, %v11602_v36  ;;  %v2023_v8 = vand.u32 4294901760, %v1964_v40 }
 0x4fa   :  { %7832 = vmatpush3.bf16.msra.mxu0 %v9361_v41  ;;  %11991 = vst [vmem:[#allocation24_spill] sm:$0xff] %v9506_v48  ;;  %v9568_v22 = vsub.f32 %v1963_v35, %v2020_v50  ;;  %v1965_v35 = vld [vmem:[%s11549_s3 + $0x20] sm:$0xff] }
 0x4fb   :  { %7834 = vmatprep.subr.bf16.mxu0 %v9365_v61  ;;  %11990 = vst [vmem:[#allocation23_spill] sm:$0xff] %v9493_v53  ;;  %7626 = vmatprep.subr.bf16.mxu1 %v9493_v53  ;;  %v9570_v60 = vsub.f32 %v1964_v40, %v2023_v8  ;;  %v2074_v40 = vand.u32 4294901760, %v1981_v2 }
 0x4fc   :  { %7628 = vmatpush3.bf16.msra.mxu1 %v9506_v48  ;;  %v1968_v48 = vld [vmem:[%s11549_s3 + $0x38] sm:$0xff] }
 0x5c2   :  { %v7045_v1 = vpop.f32.mrb[0].mxu1 }
 0x5c3   :  { %v9392_v39 = vadd.f32 %v7045_v1, %v1206_v58  ;;  %v1811_v30 = vpop.f32.mrb[1].mxu1  ;;  %v9521_v1 = vsub.f32 %v9466_v4, %v11594_v31  ;;  %v9555_v31 = vld [vmem:[%s11550_s4 + $0x28] sm:$0xff] }
 0x5c4   :  { %v9394_v42 = vadd.f32 %v1811_v30, %v1206_v58  ;;  %v9526_v30 = vsub.f32 %v9471_v21, %v11593_v33  ;;  %v9550_v33 = vld [vmem:[%s11550_s4 + $0x20] sm:$0xff]  ;;  %11999 = vst [vmem:[#allocation32_spill] sm:$0xff] %v9555_v31 }
 0x5c5   :  { %v6190_v0 = vmul.f32 -1.442695, %v9392_v39  ;;  %11993 = vst [vmem:[#allocation26_spill] sm:$0xff] %v9521_v1  ;;  %11998 = vst [vmem:[#allocation31_spill] sm:$0xff] %v9550_v33  ;;  %v9616_v1 = vsub.f32 %v1981_v2, %v2074_v40  ;;  %v1983_v2 = vld [vmem:[%s11549_s3 + $0xb0] sm:$0xff] }
 0x5c6   :  { %v6189_v20 = vmul.f32 -1.442695, %v9394_v42  ;;  %v7048_v19 = vpop.f32.mrb[2].mxu1  ;;  %11994 = vst [vmem:[#allocation27_spill] sm:$0xff] %v9526_v30 }
 0x5c7   :  { %8408 = vpow2.f32 %v6190_v0  ;;  %v9420_v51 = vadd.f32 %v7048_v19, %v1206_v58  ;;  %v1823_v10 = vpop.f32.mrb[3].mxu1  ;;  %v11596_v0 = vand.u32 4294901760, %v9479_v24  ;;  %v2068_v19 = vand.u32 4294901760, %v1979_v54 }
 0x5c8   :  { %8410 = vpow2.f32 %v6189_v20  ;;  %v9434_v38 = vadd.f32 %v1823_v10, %v1206_v58  ;;  %v9515_v58 = vld [vmem:[%s11550_s4 + $0xa0] sm:$0xff]  ;;  %v11599_v20 = vand.u32 4294901760, %v9484_v25  ;;  %v2071_v10 = vand.u32 4294901760, %v1980_v29 }
 0x5c9   :  { %v6192_v15 = vmul.f32 -1.442695, %v9420_v51  ;;  %11992 = vst [vmem:[#allocation25_spill] sm:$0xff] %v9515_v58  ;;  %v9559_v11 = vsub.f32 %v1979_v54, %v2068_v19  ;;  %v12002_v54 = vand.u32 4294901760, %v9515_v58 }
 0x5ca   :  { %v6191_v23 = vmul.f32 -1.442695, %v9434_v38  ;;  %v9544_v16 = vsub.f32 %v9484_v25, %v11599_v20  ;;  %v9561_v28 = vsub.f32 %v1980_v29, %v2071_v10  ;;  %v9563_v20 = vpack.c.bf16 %v2023_v8, %v2020_v50  ;;  %v1966_v50 = vld [vmem:[%s11549_s3 + $0x28] sm:$0xff]  ;;  %v9599_v8 = vld [vmem:[%s11550_s4 + $0xb0] sm:$0xff] }
 0x5cb   :  { %8412 = vpow2.f32 %v6192_v15  ;;  %v9534_v15 = vld [vmem:[%s11550_s4 + $0xa8] sm:$0xff]  ;;  %v9577_v29 = vsub.f32 %v9515_v58, %v12002_v54  ;;  %12005 = vst [vmem:[#allocation37_spill] sm:$0xff] %v9599_v8  ;;  %v2029_v62 = vand.u32 4294901760, %v1966_v50 }
 0x5cc   :  { %8414 = vpow2.f32 %v6191_v23  ;;  %11995 = vst [vmem:[#allocation28_spill] sm:$0xff] %v9534_v15  ;;  %v9539_v23 = vsub.f32 %v9479_v24, %v11596_v0  ;;  %11997 = vst [vmem:[#allocation30_spill] sm:$0xff] %v9544_v16  ;;  %v9557_v0 = vpack.c.bf16 %v2071_v10, %v2068_v19  ;;  %v11607_v16 = vand.u32 4294901760, %v9534_v15 }
 0x5cd   :  { %12001 = vst [vmem:[#allocation34_spill] sm:$0xff] %v9563_v20  ;;  %12003 = vst [vmem:[#allocation35_spill] sm:$0xff] %v9577_v29  ;;  %v11618_v19 = vand.u32 4294901760, %v9550_v33  ;;  %v11620_v10 = vand.u32 4294901760, %v9555_v31 }
 0x5ce   :  { %11996 = vst [vmem:[#allocation29_spill] sm:$0xff] %v9539_v23  ;;  %12000 = vst [vmem:[#allocation33_spill] sm:$0xff] %v9557_v0  ;;  %7630 = vmatprep.subr.bf16.mxu1 %v9557_v0  ;;  %v2026_v0 = vand.u32 4294901760, %v1965_v35 }
 0x5cf   :  { %7632 = vmatpush3.bf16.msra.mxu1 %v9563_v20 }
 0x5d1   :  { %v8409_v45 = vpop.eup %8408 }
 0x5d2   :  { %v8411_v13 = vpop.eup %8410  ;;  %v1846_v36 = vadd.f32 1.0, %v8409_v45  ;;  %v1982_v45 = vld [vmem:[%s11549_s3 + $0xa8] sm:$0xff] }
 0x5d3   :  { %v1845_v23 = vadd.f32 1.0, %v8411_v13  ;;  %v9591_v13 = vsub.f32 %v9534_v15, %v11607_v16  ;;  %v9609_v16 = vsub.f32 %v9550_v33, %v11618_v19  ;;  %v2077_v30 = vand.u32 4294901760, %v1982_v45  ;;  %v1967_v19 = vld [vmem:[%s11549_s3 + $0x30] sm:$0xff] }
 0x5d4   :  { %8416 = vrcp.f32 %v1846_v36  ;;  %v9604_v36 = vld [vmem:[%s11550_s4 + $0xb8] sm:$0xff]  ;;  %v2032_v53 = vand.u32 4294901760, %v1967_v19 }
 0x5d5   :  { %12004 = vst [vmem:[#allocation36_spill] sm:$0xff] %v9591_v13  ;;  %12006 = vst [vmem:[#allocation38_spill] sm:$0xff] %v9604_v36  ;;  %v8413_v54 = vpop.eup %8412  ;;  %8418 = vrcp.f32 %v1845_v23  ;;  %v9614_v13 = vsub.f32 %v9555_v31, %v11620_v10  ;;  %v9621_v23 = vld [vmem:[%s11550_s4 + $0x30] sm:$0xff]  ;;  %v9628_v10 = vld [vmem:[%s11550_s4 + $0x38] sm:$0xff]  ;;  %v12017_v47 = vand.u32 4294901760, %v9604_v36 }
 0x5d6   :  { %12007 = vst [vmem:[#allocation39_spill] sm:$0xff] %v9609_v16  ;;  %v8415_v29 = vpop.eup %8414  ;;  %v1848_v20 = vadd.f32 1.0, %v8413_v54  ;;  %12009 = vst [vmem:[#allocation41_spill] sm:$0xff] %v9621_v23  ;;  %v9633_v54 = vpack.c.bf16 %v2077_v30, %v2074_v40  ;;  %v1984_v16 = vld [vmem:[%s11549_s3 + $0xb8] sm:$0xff]  ;;  %v9650_v40 = vsub.f32 %v1966_v50, %v2029_v62  ;;  %v2080_v50 = vand.u32 4294901760, %v1983_v2 }
 0x5d7   :  { %12008 = vst [vmem:[#allocation40_spill] sm:$0xff] %v9614_v13  ;;  %v1847_v52 = vadd.f32 1.0, %v8415_v29  ;;  %12010 = vst [vmem:[#allocation42_spill] sm:$0xff] %v9628_v10  ;;  %v9635_v13 = vsub.f32 %v1982_v45, %v2077_v30  ;;  %v9637_v29 = vsub.f32 %v1965_v35, %v2026_v0  ;;  %v9655_v30 = vld [vmem:[%s11550_s4 + $0xc0] sm:$0xff]  ;;  %v12015_v45 = vand.u32 4294901760, %v9599_v8 }
 0x5d8   :  { %8420 = vrcp.f32 %v1848_v20  ;;  %12011 = vst [vmem:[#allocation43_spill] sm:$0xff] %v9633_v54  ;;  %v9648_v20 = vpack.c.bf16 %v2029_v62, %v2026_v0  ;;  %12014 = vst [vmem:[#allocation46_spill] sm:$0xff] %v9655_v30  ;;  %7634 = vmatprep.subr.bf16.mxu1 %v9633_v54  ;;  %v11635_v62 = vand.u32 4294901760, %v9621_v23  ;;  %v11637_v0 = vand.u32 4294901760, %v9628_v10 }
 0x5d9   :  { %12012 = vst [vmem:[#allocation44_spill] sm:$0xff] %v9637_v29  ;;  %8422 = vrcp.f32 %v1847_v52  ;;  %v9661_v35 = vsub.f32 %v9599_v8, %v12015_v45  ;;  %v9666_v52 = vsub.f32 %v9604_v36, %v12017_v47  ;;  %v2083_v3 = vand.u32 4294901760, %v1984_v16  ;;  %v9674_v45 = vld [vmem:[%s11550_s4 + $0xc8] sm:$0xff] }
 0x5da   :  { %12013 = vst [vmem:[#allocation45_spill] sm:$0xff] %v9648_v20  ;;  %7636 = vmatpush3.bf16.msra.mxu1 %v9648_v20  ;;  %v2035_v54 = vand.u32 4294901760, %v1968_v48  ;;  %12019 = vst [vmem:[#allocation49_spill] sm:$0xff] %v9674_v45  ;;  %v9679_v47 = vsub.f32 %v9621_v23, %v11635_v62  ;;  %v9690_v20 = vld [vmem:[%s11550_s4 + $0x40] sm:$0xff]  ;;  %v9695_v36 = vld [vmem:[%s11550_s4 + $0x48] sm:$0xff]  ;;  %v9711_v8 = vsub.f32 %v1967_v19, %v2032_v53  ;;  %v11649_v33 = vand.u32 4294901760, %v9674_v45 }
 0x5db   :  { %12016 = vst [vmem:[#allocation47_spill] sm:$0xff] %v9661_v35  ;;  %12018 = vst [vmem:[#allocation48_spill] sm:$0xff] %v9666_v52  ;;  %v9684_v52 = vsub.f32 %v9628_v10, %v11637_v0  ;;  %v1985_v62 = vld [vmem:[%s11549_s3 + $0xc0] sm:$0xff]  ;;  %v9702_v0 = vsub.f32 %v1983_v2, %v2080_v50  ;;  %v1986_v10 = vld [vmem:[%s11549_s3 + $0xc8] sm:$0xff]  ;;  %v12030_v15 = vand.u32 4294901760, %v9655_v30  ;;  %v11653_v58 = vand.u32 4294901760, %v9695_v36 }
 0x5dc   :  { %12020 = vst [vmem:[#allocation50_spill] sm:$0xff] %v9679_v47  ;;  %12022 = vst [vmem:[#allocation52_spill] sm:$0xff] %v9690_v20  ;;  %v9700_v47 = vpack.c.bf16 %v2083_v3, %v2080_v50  ;;  %v9706_v35 = vpack.c.bf16 %v2035_v54, %v2032_v53  ;;  %v9713_v31 = vsub.f32 %v1968_v48, %v2035_v54  ;;  %v11651_v50 = vand.u32 4294901760, %v9690_v20 }
 0x5dd   :  { %12021 = vst [vmem:[#allocation51_spill] sm:$0xff] %v9684_v52  ;;  %12023 = vst [vmem:[#allocation53_spill] sm:$0xff] %v9695_v36  ;;  %v9704_v52 = vsub.f32 %v1984_v16, %v2083_v3  ;;  %v9719_v2 = vsub.f32 %v9655_v30, %v12030_v15  ;;  %v2086_v53 = vand.u32 4294901760, %v1985_v62  ;;  %v9730_v19 = vsub.f32 %v9674_v45, %v11649_v33 }
 0x5de   :  { %12024 = vst [vmem:[#allocation54_spill] sm:$0xff] %v9700_v47  ;;  %12025 = vst [vmem:[#allocation55_spill] sm:$0xff] %v9702_v0  ;;  %v8417_v23 = vpop.eup %8416  ;;  %7638 = vmatprep.subr.bf16.mxu1 %v9700_v47  ;;  %v2089_v15 = vand.u32 4294901760, %v1986_v10 }
 0x5df   :  { %12026 = vst [vmem:[#allocation56_spill] sm:$0xff] %v9704_v52  ;;  %12027 = vst [vmem:[#allocation57_spill] sm:$0xff] %v9706_v35  ;;  %v8419_v3 = vpop.eup %8418  ;;  %v1858_v16 = vmul.f32 %v8417_v23, %v9392_v39  ;;  %7640 = vmatpush3.bf16.msra.mxu1 %v9706_v35  ;;  %v9735_v39 = vsub.f32 %v9690_v20, %v11651_v50  ;;  %v9740_v23 = vsub.f32 %v9695_v36, %v11653_v58 }
 0x5e0   :  { %12028 = vst [vmem:[#allocation58_spill] sm:$0xff] %v9711_v8  ;;  %12029 = vst [vmem:[#allocation59_spill] sm:$0xff] %v9713_v31  ;;  %v1857_v48 = vmul.f32 %v8419_v3, %v9394_v42  ;;  %v9744_v35 = vsub.f32 %v1985_v62, %v2086_v53  ;;  %v9746_v33 = vsub.f32 %v1986_v10, %v2089_v15 }
 0x5e1   :  { %12031 = vst [vmem:[#allocation60_spill] sm:$0xff] %v9719_v2  ;;  %12032 = vst [vmem:[#allocation61_spill] sm:$0xff] %v9730_v19  ;;  %v1866_v54 = vrot.slane %v1858_v16, 6  ;;  %v9742_v2 = vpack.c.bf16 %v2089_v15, %v2086_v53  ;;  %v1969_v16 = vld [vmem:[%s11549_s3 + $0x40] sm:$0xff] }
 0x5e2   :  { %12033 = vst [vmem:[#allocation62_spill] sm:$0xff] %v9735_v39  ;;  %12034 = vst [vmem:[#allocation63_spill] sm:$0xff] %v9740_v23  ;;  %v8421_v42 = vpop.eup %8420  ;;  %v1865_v3 = vrot.slane %v1857_v48, 6  ;;  %v2038_v47 = vand.u32 4294901760, %v1969_v16 }
 0x5e3   :  { %12035 = vst [vmem:[#allocation64_spill] sm:$0xff] %v9742_v2  ;;  %12036 = vst [vmem:[#allocation65_spill] sm:$0xff] %v9744_v35  ;;  %v8423_v19 = vpop.eup %8422  ;;  %v9752_v50 = vsel %vm36_vm0, %v1866_v54, 0.0  ;;  %v1860_v39 = vmul.f32 %v8421_v42, %v9420_v51  ;;  %7642 = vmatprep.subr.bf16.mxu1 %v9742_v2 }
 0x5e4   :  { %12037 = vst [vmem:[#allocation66_spill] sm:$0xff] %v9746_v33  ;;  %12038 = vst [vmem:[#allocation67_spill] sm:$0xff] %v9752_v50  ;;  %v1946_v58 = vrot.slane %v9752_v50, 4  ;;  %v9757_v48 = vsel %vm36_vm0, %v1865_v3, %v1866_v54  ;;  %v9760_v62 = vsel %vm36_vm0, 0.0, %v1865_v3  ;;  %v1859_v10 = vmul.f32 %v8423_v19, %v9434_v38 }
 0x5e5   :  { %12039 = vst [vmem:[#allocation68_spill] sm:$0xff] %v9757_v48  ;;  %12040 = vst [vmem:[#allocation69_spill] sm:$0xff] %v9760_v62  ;;  %v1944_v53 = vrot.slane %v9757_v48, 4  ;;  %v1869_v15 = vrot.slane %v1860_v39, 6  ;;  %v1921_v23 = vrot.slane %v9760_v62, 3  ;;  %v1922_v51 = vrot.slane %v9757_v48, 3 }
 0x5e6   :  { %v1868_v36 = vrot.slane %v1859_v10, 6  ;;  %v1885_v42 = vrot.slane %v9760_v62, 1  ;;  %v1886_v54 = vrot.slane %v9757_v48, 1  ;;  %v1943_v3 = vrot.slane %v9760_v62, 4  ;;  %v1970_v48 = vld [vmem:[%s11549_s3 + $0x48] sm:$0xff] }
 0x5e7   :  { %v1947_v20 = vsel %vm126_vm5, %v1944_v53, %v1946_v58  ;;  %v9772_v38 = vsel %vm36_vm0, %v1869_v15, 0.0  ;;  %v1924_v19 = vrot.slane %v9752_v50, 3  ;;  %v1888_v45 = vrot.slane %v9752_v50, 1 }
 0x5e8   :  { %12041 = vst [vmem:[#allocation70_spill] sm:$0xff] %v9772_v38  ;;  %v2007_v39 = vsel %vm142_vm6, %v1947_v20, 0  ;;  %v9777_v2 = vsel %vm36_vm0, %v1868_v36, %v1869_v15  ;;  %v9780_v10 = vsel %vm36_vm0, 0.0, %v1868_v36  ;;  %v1923_v20 = vsel %vm103_vm2, %v1921_v23, %v1922_v51 }
 0x5e9   :  { %12042 = vst [vmem:[#allocation71_spill] sm:$0xff] %v9777_v2  ;;  %12043 = vst [vmem:[#allocation72_spill] sm:$0xff] %v9780_v10  ;;  %v9786_v58 = vand.u32 4294901760, %v2007_v39  ;;  %v1948_v62 = vrot.slane %v9780_v10, 4  ;;  %v1949_v30 = vrot.slane %v9777_v2, 4  ;;  %v1951_v15 = vrot.slane %v9772_v38, 4  ;;  %1931 = vrot.lane.b32.xlu1 %v1923_v20, %s8471_s18 }
 0x5ea   :  { %v1887_v36 = vsel %vm57_vm1, %v1885_v42, %v1886_v54  ;;  %v1926_v50 = vrot.slane %v9780_v10, 3  ;;  %v1927_v25 = vrot.slane %v9777_v2, 3  ;;  %v1925_v21 = vsel %vm103_vm2, %v1922_v51, %v1924_v19 }
 0x5eb   :  { %12044 = vst [vmem:[#allocation73_spill] sm:$0xff] %v9786_v58  ;;  %v9797_v24 = vsub.f32 %v2007_v39, %v9786_v58  ;;  %1895 = vrot.lane.b32.xlu0 %v1887_v36, %s8471_s18  ;;  %v1945_v4 = vsel %vm126_vm5, %v1943_v3, %v1944_v53  ;;  %v2041_v23 = vand.u32 4294901760, %v1970_v48  ;;  %v1929_v20 = vrot.slane %v9772_v38, 3 }
 0x5ec   :  { %v1928_v63 = vsel %vm103_vm2, %v1926_v50, %v1927_v25  ;;  %v2005_v42 = vsel %vm142_vm6, %v1945_v4, 0  ;;  %v1890_v43 = vrot.slane %v9780_v10, 1  ;;  %v11679_v36 = vrot.slane %v9777_v2, 1 }
 0x5ed   :  { %12045 = vst [vmem:[#allocation74_spill] sm:$0xff] %v9797_v24  ;;  %v9806_v14 = vand.u32 4294901760, %v2005_v42  ;;  %v9809_v39 = vand.u32 4294901760, %v9797_v24  ;;  %v1950_v51 = vsel %vm126_vm5, %v1948_v62, %v1949_v30  ;;  %1933 = vrot.lane.b32.xlu1 %v1925_v21, %s8471_s18  ;;  %v1889_v53 = vsel %vm57_vm1, %v1886_v54, %v1888_v45  ;;  %v9829_v21 = vld [vmem:[%s11550_s4 + $0xd0] sm:$0xff] }
 0x5ee   :  { %v2009_v50 = vsel %vm142_vm6, %v1950_v51, 0  ;;  %v1952_v3 = vsel %vm126_vm5, %v1949_v30, %v1951_v15  ;;  %12050 = vst [vmem:[#allocation79_spill] sm:$0xff] %v9829_v21  ;;  %v9834_v30 = vld [vmem:[%s11550_s4 + $0xd8] sm:$0xff]  ;;  %v9839_v54 = vpack.c.bf16 %v2041_v23, %v2038_v47  ;;  %v9841_v15 = vsub.f32 %v1969_v16, %v2038_v47 }
 0x5ef   :  { %12046 = vst [vmem:[#allocation75_spill] sm:$0xff] %v9806_v14  ;;  %12047 = vst [vmem:[#allocation76_spill] sm:$0xff] %v9809_v39  ;;  %1935 = vrot.lane.b32.xlu0 %v1928_v63, %s8471_s18  ;;  %v9819_v4 = vsub.f32 %v2005_v42, %v9806_v14  ;;  %v3129_v19 = vsub.f32 %v9797_v24, %v9809_v39  ;;  %v9823_v10 = vand.u32 4294901760, %v2009_v50  ;;  %v2011_v62 = vsel %vm142_vm6, %v1952_v3, 0  ;;  %v9846_v42 = vld [vmem:[%s11550_s4 + $0x50] sm:$0xff]  ;;  %v9851_v51 = vld [vmem:[%s11550_s4 + $0x58] sm:$0xff] }
 0x5f0   :  { %12051 = vst [vmem:[#allocation80_spill] sm:$0xff] %v9834_v30  ;;  %v1930_v63 = vsel %vm103_vm2, %v1927_v25, %v1929_v20  ;;  %v9837_v45 = vand.u32 4294901760, %v2011_v62  ;;  %12053 = vst [vmem:[#allocation82_spill] sm:$0xff] %v9839_v54  ;;  %v1892_v25 = vsel %vm57_vm1, %v1890_v43, %v11679_v36  ;;  %v9862_v16 = vsub.f32 %v1970_v48, %v2041_v23  ;;  %v1987_v20 = vld [vmem:[%s11549_s3 + $0xd0] sm:$0xff] }
 0x5f1   :  { %12048 = vst [vmem:[#allocation77_spill] sm:$0xff] %v9819_v4  ;;  %12049 = vst [vmem:[#allocation78_spill] sm:$0xff] %v9823_v10  ;;  %v9854_v3 = vand.u32 4294901760, %v9819_v4  ;;  %v9860_v47 = vsub.f32 %v2009_v50, %v9823_v10  ;;  %1897 = vrot.lane.b32.xlu1 %v1889_v53, %s8471_s18  ;;  %v9868_v7 = vand.u32 4294901760, %v3129_v19  ;;  %7644 = vmatpush3.bf16.msra.mxu1 %v9839_v54  ;;  %v11686_v43 = vand.u32 4294901760, %v9829_v21  ;;  %v1971_v19 = vld [vmem:[%s11549_s3 + $0x50] sm:$0xff] }
 0x5f2   :  { %12052 = vst [vmem:[#allocation81_spill] sm:$0xff] %v9837_v45  ;;  %12054 = vst [vmem:[#allocation83_spill] sm:$0xff] %v9841_v15  ;;  %v9871_v5 = vsub.f32 %v2011_v62, %v9837_v45  ;;  %v11688_v50 = vand.u32 4294901760, %v9834_v30  ;;  %v1988_v62 = vld [vmem:[%s11549_s3 + $0xd8] sm:$0xff]  ;;  %v2092_v53 = vand.u32 4294901760, %v1987_v20  ;;  %v1893_v39 = vrot.slane %v9772_v38, 1 }
 0x5f3   :  { %12055 = vst [vmem:[#allocation84_spill] sm:$0xff] %v9846_v42  ;;  %12056 = vst [vmem:[#allocation85_spill] sm:$0xff] %v9851_v51  ;;  %1937 = vrot.lane.b32.xlu0 %v1930_v63, %s8471_s18  ;;  %v3119_v48 = vsub.f32 %v9819_v4, %v9854_v3  ;;  %v9880_v23 = vand.u32 4294901760, %v9860_v47  ;;  %v9893_v63 = vsub.f32 %v9829_v21, %v11686_v43  ;;  %v12067_v43 = vand.u32 4294901760, %v9846_v42 }
 0x5f4   :  { %12057 = vst [vmem:[#allocation86_spill] sm:$0xff] %v9854_v3  ;;  %12058 = vst [vmem:[#allocation87_spill] sm:$0xff] %v9860_v47  ;;  %v9888_v36 = vand.u32 4294901760, %v9871_v5  ;;  %v9898_v54 = vsub.f32 %v9834_v30, %v11688_v50  ;;  %v1972_v50 = vld [vmem:[%s11549_s3 + $0x58] sm:$0xff]  ;;  %v2095_v38 = vand.u32 4294901760, %v1988_v62  ;;  %v9924_v21 = vsub.f32 %v1987_v20, %v2092_v53  ;;  %v9947_v20 = vld [vmem:[%s11550_s4 + $0x68] sm:$0xff] }
 0x5f5   :  { %12059 = vst [vmem:[#allocation88_spill] sm:$0xff] %v9862_v16  ;;  %12060 = vst [vmem:[#allocation89_spill] sm:$0xff] %v9868_v7  ;;  %v9903_v12 = vand.u32 4294901760, %v3119_v48  ;;  %v3139_v34 = vsub.f32 %v9860_v47, %v9880_v23  ;;  %1899 = vrot.lane.b32.xlu1 %v1892_v25, %s8471_s18  ;;  %v9934_v25 = vld [vmem:[%s11550_s4 + $0xe8] sm:$0xff] }
 0x5f6   :  { %12061 = vst [vmem:[#allocation90_spill] sm:$0xff] %v9871_v5  ;;  %12062 = vst [vmem:[#allocation91_spill] sm:$0xff] %v9880_v23  ;;  %v3149_v48 = vsub.f32 %v9871_v5, %v9888_v36  ;;  %v12080_v23 = vrot.slane %v9777_v2, 1  ;;  %v1976_v2 = vld [vmem:[%s11549_s3 + $0x78] sm:$0xff] }
 0x5f7   :  { %12063 = vst [vmem:[#allocation92_spill] sm:$0xff] %v9888_v36  ;;  %12064 = vst [vmem:[#allocation93_spill] sm:$0xff] %v9893_v63  ;;  %v9911_v63 = vsub.f32 %v9846_v42, %v12067_v43  ;;  %v9929_v43 = vld [vmem:[%s11550_s4 + $0xe0] sm:$0xff]  ;;  %7065 = vmatprep.mubr.f32.mxu0 %v9903_v12  ;;  %v2044_v42 = vand.u32 4294901760, %v1971_v19 }
 0x5f8   :  { %12065 = vst [vmem:[#allocation94_spill] sm:$0xff] %v9898_v54  ;;  %12066 = vst [vmem:[#allocation95_spill] sm:$0xff] %v9903_v12  ;;  %v12069_v54 = vand.u32 4294901760, %v9851_v51  ;;  %7066 = vmatmul.mubr.f32.vlgmr.msra.gmra.mrb[8].mxu0 %v9868_v7  ;;  %v9954_v12 = vsub.f32 %v1988_v62, %v2095_v38  ;;  %v1989_v36 = vld [vmem:[%s11549_s3 + $0xe0] sm:$0xff]  ;;  %v1894_v27 = vsel %vm57_vm1, %v12080_v23, %v1893_v39  ;;  %v1990_v62 = vld [vmem:[%s11549_s3 + $0xe8] sm:$0xff]  ;;  %v11710_v23 = vand.u32 4294901760, %v9947_v20 }
 0x5f9   :  { %12068 = vst [vmem:[#allocation96_spill] sm:$0xff] %v9911_v63  ;;  %12071 = vst [vmem:[#allocation98_spill] sm:$0xff] %v9924_v21  ;;  %v9937_v63 = vand.u32 4294901760, %v3139_v34  ;;  %v2047_v34 = vand.u32 4294901760, %v1972_v50  ;;  %7836 = vmatpush3.bf16.msra.mxu0 %v9365_v61  ;;  %v9964_v7 = vsub.f32 %v1971_v19, %v2044_v42  ;;  %1901 = vrot.lane.b32.xlu1 %v1894_v27, %s8471_s18  ;;  %v2098_v27 = vand.u32 4294901760, %v1989_v36 }
 0x5fa   :  { %v9922_v30 = vsub.f32 %v9851_v51, %v12069_v54  ;;  %12072 = vst [vmem:[#allocation99_spill] sm:$0xff] %v9929_v43  ;;  %12073 = vst [vmem:[#allocation100_spill] sm:$0xff] %v9934_v25  ;;  %v9942_v54 = vld [vmem:[%s11550_s4 + $0x60] sm:$0xff]  ;;  %v9952_v51 = vpack.c.bf16 %v2095_v38, %v2092_v53  ;;  %v11706_v53 = vand.u32 4294901760, %v9929_v43  ;;  %v11705_v38 = vand.u32 4294901760, %v9934_v25  ;;  %7838 = vmatprep.subr.bf16.mxu0 %v9368_v18 }
 0x5fb   :  { %12074 = vst [vmem:[#allocation101_spill] sm:$0xff] %v9937_v63  ;;  %12075 = vst [vmem:[#allocation102_spill] sm:$0xff] %v9942_v54  ;;  %7068 = vmatprep.mubr.f32.mxu0 %v9937_v63  ;;  %v9973_v61 = vpack.c.bf16 %v2047_v34, %v2044_v42  ;;  %v11709_v39 = vand.u32 4294901760, %v9942_v54  ;;  %v1973_v42 = vld [vmem:[%s11549_s3 + $0x60] sm:$0xff] }
 0x5fc   :  { %12070 = vst [vmem:[#allocation97_spill] sm:$0xff] %v9922_v30  ;;  %12076 = vst [vmem:[#allocation103_spill] sm:$0xff] %v9947_v20  ;;  %v9950_v30 = vand.u32 4294901760, %v3149_v48  ;;  %v9975_v48 = vsub.f32 %v1972_v50, %v2047_v34  ;;  %7646 = vmatprep.subr.bf16.mxu1 %v9952_v51  ;;  %v9983_v19 = vsub.f32 %v9929_v43, %v11706_v53  ;;  %v1974_v50 = vld [vmem:[%s11549_s3 + $0x68] sm:$0xff]  ;;  %v2101_v53 = vand.u32 4294901760, %v1990_v62 }
 0x5fd   :  { %12078 = vst [vmem:[#allocation105_spill] sm:$0xff] %v9952_v51  ;;  %12079 = vst [vmem:[#allocation106_spill] sm:$0xff] %v9954_v12  ;;  %v9988_v63 = vsub.f32 %v9934_v25, %v11705_v38  ;;  %7648 = vmatpush3.bf16.msra.mxu1 %v9973_v61  ;;  %v10001_v34 = vsub.f32 %v9942_v54, %v11709_v39  ;;  %v10006_v38 = vsub.f32 %v9947_v20, %v11710_v23  ;;  %v10025_v23 = vld [vmem:[%s11550_s4 + $0x70] sm:$0xff] }
 0x5fe   :  { %12077 = vst [vmem:[#allocation104_spill] sm:$0xff] %v9950_v30  ;;  %12081 = vst [vmem:[#allocation107_spill] sm:$0xff] %v9964_v7  ;;  %7069 = vmatmul.mubr.f32.gmra.mrb[10].mxu0 %v9950_v30  ;;  %v10016_v30 = vld [vmem:[%s11550_s4 + $0xf8] sm:$0xff]  ;;  %v10020_v39 = vsub.f32 %v1989_v36, %v2098_v27  ;;  %v1991_v20 = vld [vmem:[%s11549_s3 + $0xf0] sm:$0xff] }
 0x5ff   :  { %12082 = vst [vmem:[#allocation108_spill] sm:$0xff] %v9973_v61  ;;  %12083 = vst [vmem:[#allocation109_spill] sm:$0xff] %v9975_v48  ;;  %7840 = vmatpush3.bf16.msra.mxu0 %v9368_v18  ;;  %7087 = vmatprep.mubr.f32.mxu0 %v9806_v14  ;;  %v2053_v61 = vand.u32 4294901760, %v1974_v50  ;;  %v10035_v18 = vld [vmem:[%s11550_s4 + $0x78] sm:$0xff]  ;;  %v1975_v51 = vld [vmem:[%s11549_s3 + $0x70] sm:$0xff]  ;;  %v11761_v14 = vand.u32 4294901760, %v9616_v1 }
 0x600   :  { %12084 = vst [vmem:[#allocation110_spill] sm:$0xff] %v9983_v19  ;;  %12085 = vst [vmem:[#allocation111_spill] sm:$0xff] %v9988_v63  ;;  %v10011_v63 = vld [vmem:[%s11550_s4 + $0xf0] sm:$0xff]  ;;  %7842 = vmatprep.subr.bf16.mxu0 %v9370_v26  ;;  %v2050_v19 = vand.u32 4294901760, %v1973_v42  ;;  %v11734_v36 = vand.u32 4294901760, %v10035_v18 }
 0x601   :  { %12086 = vst [vmem:[#allocation112_spill] sm:$0xff] %v10001_v34  ;;  %12087 = vst [vmem:[#allocation113_spill] sm:$0xff] %v10006_v38  ;;  %v10028_v38 = vpack.c.bf16 %v2101_v53, %v2098_v27  ;;  %v10030_v34 = vsub.f32 %v1990_v62, %v2101_v53  ;;  %v1992_v53 = vld [vmem:[%s11549_s3 + $0xf8] sm:$0xff]  ;;  %v10050_v54 = vsub.f32 %v1974_v50, %v2053_v61 }
 0x602   :  { %12088 = vst [vmem:[#allocation114_spill] sm:$0xff] %v10011_v63  ;;  %12089 = vst [vmem:[#allocation115_spill] sm:$0xff] %v10016_v30  ;;  %v10046_v62 = vpack.c.bf16 %v2053_v61, %v2050_v19  ;;  %v10048_v27 = vsub.f32 %v1973_v42, %v2050_v19  ;;  %v12099_v61 = vand.u32 4294901760, %v10011_v63  ;;  %v12101_v42 = vand.u32 4294901760, %v10016_v30 }
 0x603   :  { %12090 = vst [vmem:[#allocation116_spill] sm:$0xff] %v10020_v39  ;;  %12091 = vst [vmem:[#allocation117_spill] sm:$0xff] %v10025_v23  ;;  %7650 = vmatprep.subr.bf16.mxu1 %v10028_v38  ;;  %7844 = vmatpush3.bf16.msra.mxu0 %v9370_v26  ;;  %v12103_v26 = vand.u32 4294901760, %v9432_v49 }
 0x604   :  { %12092 = vst [vmem:[#allocation118_spill] sm:$0xff] %v10028_v38  ;;  %12093 = vst [vmem:[#allocation119_spill] sm:$0xff] %v10030_v34  ;;  %v12098_v38 = vand.u32 4294901760, %v9427_v17  ;;  %v10068_v19 = vsub.f32 %v10011_v63, %v12099_v61  ;;  %v10073_v50 = vsub.f32 %v10016_v30, %v12101_v42  ;;  %7846 = vmatprep.subr.bf16.mxu0 %v9372_v46  ;;  %7652 = vmatpush3.bf16.msra.mxu1 %v10046_v62 }
 0x605   :  { %12094 = vst [vmem:[#allocation120_spill] sm:$0xff] %v10035_v18  ;;  %12095 = vst [vmem:[#allocation121_spill] sm:$0xff] %v10046_v62  ;;  %v10080_v43 = vsub.f32 %v9432_v49, %v12103_v26  ;;  %v2104_v61 = vand.u32 4294901760, %v1991_v20  ;;  %v10091_v42 = vsub.f32 %v10035_v18, %v11734_v36  ;;  %v2059_v30 = vand.u32 4294901760, %v1976_v2 }
 0x606   :  { %12096 = vst [vmem:[#allocation122_spill] sm:$0xff] %v10048_v27  ;;  %12097 = vst [vmem:[#allocation123_spill] sm:$0xff] %v10050_v54  ;;  %v10063_v25 = vsub.f32 %v9427_v17, %v12098_v38  ;;  %v12104_v17 = vand.u32 4294901760, %v10025_v23 }
 0x607   :  { %12100 = vst [vmem:[#allocation124_spill] sm:$0xff] %v10068_v19  ;;  %12102 = vst [vmem:[#allocation125_spill] sm:$0xff] %v10073_v50  ;;  %v2107_v19 = vand.u32 4294901760, %v1992_v53  ;;  %v2056_v50 = vand.u32 4294901760, %v1975_v51  ;;  %v10095_v49 = vsub.f32 %v1991_v20, %v2104_v61  ;;  %7848 = vmatpush3.bf16.msra.mxu0 %v9372_v46  ;;  %v11736_v36 = vand.u32 4294901760, %v10080_v43 }
 0x608   :  { %v10086_v38 = vsub.f32 %v10025_v23, %v12104_v17  ;;  %12106 = vst [vmem:[#allocation127_spill] sm:$0xff] %v10091_v42  ;;  %v11735_v23 = vand.u32 4294901760, %v10063_v25  ;;  %7850 = vmatprep.subr.bf16.mxu0 %v9374_v44  ;;  %v11738_v20 = vand.u32 4294901760, %v9508_v9  ;;  %v11742_v46 = vand.u32 4294901760, %v9559_v11 }
 0x609   :  { %v10093_v63 = vpack.c.bf16 %v2107_v19, %v2104_v61  ;;  %12108 = vst [vmem:[#allocation129_spill] sm:$0xff] %v10095_v49  ;;  %v10097_v26 = vsub.f32 %v1992_v53, %v2107_v19  ;;  %v10100_v62 = vpack.c.bf16 %v2059_v30, %v2056_v50  ;;  %v10102_v17 = vsub.f32 %v1975_v51, %v2056_v50 }
 0x60a   :  { %12105 = vst [vmem:[#allocation126_spill] sm:$0xff] %v10086_v38  ;;  %v10104_v38 = vsub.f32 %v1976_v2, %v2059_v30  ;;  %v11741_v53 = vand.u32 4294901760, %v9510_v57  ;;  %v2286_v2 = vsub.f32 %v10063_v25, %v11735_v23  ;;  %v11752_v30 = vand.u32 4294901760, %v9561_v28  ;;  %7088 = vmatmul.mubr.f32.vlgmr.msra.gmra.mrb[8].mxu0 %v9786_v58 }
 0x60b   :  { %12107 = vst [vmem:[#allocation128_spill] sm:$0xff] %v10093_v63  ;;  %12109 = vst [vmem:[#allocation130_spill] sm:$0xff] %v10097_v26  ;;  %7654 = vmatprep.subr.bf16.mxu1 %v10093_v63  ;;  %v2293_v50 = vsub.f32 %v10080_v43, %v11736_v36  ;;  %v2174_v61 = vsub.f32 %v9508_v9, %v11738_v20  ;;  %v2300_v51 = vsub.f32 %v9559_v11, %v11742_v46 }
 0x60c   :  { %12110 = vst [vmem:[#allocation131_spill] sm:$0xff] %v10100_v62  ;;  %12111 = vst [vmem:[#allocation132_spill] sm:$0xff] %v10102_v17  ;;  %7656 = vmatpush3.bf16.msra.mxu1 %v10100_v62  ;;  %v2181_v23 = vsub.f32 %v9510_v57, %v11741_v53  ;;  %7090 = vmatprep.mubr.f32.mxu0 %v9823_v10  ;;  %v2287_v19 = vand.u32 4294901760, %v2286_v2  ;;  %v2307_v36 = vsub.f32 %v9561_v28, %v11752_v30 }
 0x60d   :  { %12112 = vst [vmem:[#allocation133_spill] sm:$0xff] %v10104_v38  ;;  %7852 = vmatpush3.bf16.msra.mxu0 %v9374_v44  ;;  %v12113_v42 = vand.u32 4294901760, %v9568_v22  ;;  %v12114_v62 = vand.u32 4294901760, %v9570_v60  ;;  %v2294_v46 = vand.u32 4294901760, %v2293_v50  ;;  %v2175_v63 = vand.u32 4294901760, %v2174_v61 }
 0x60e   :  { %7854 = vmatprep.subr.bf16.mxu0 %v9376_v32  ;;  %v2182_v18 = vand.u32 4294901760, %v2181_v23  ;;  %v2301_v10 = vand.u32 4294901760, %v2300_v51  ;;  %v2308_v44 = vand.u32 4294901760, %v2307_v36  ;;  %7091 = vmatmul.mubr.f32.gmra.mrb[10].mxu0 %v9837_v45  ;;  %v11760_v51 = vand.u32 4294901760, %v9711_v8 }
 0x60f   :  { %v2188_v20 = vsub.f32 %v9568_v22, %v12113_v42  ;;  %v2195_v53 = vsub.f32 %v9570_v60, %v12114_v62  ;;  %v7657_v30 = vpack.c.bf16 %v2294_v46, %v2287_v19  ;;  %v11759_v42 = vand.u32 4294901760, %v9635_v13  ;;  %7109 = vmatprep.mubr.f32.mxu0 %v9819_v4  ;;  %v12135_v4 = vld [vmem:[#allocation14_spill] sm:$0xff] }
 0x610   :  { %v10147_v41 = vpack.c.bf16 %v2182_v18, %v2175_v63  ;;  %v11757_v62 = vand.u32 4294901760, %v9637_v29  ;;  %v10153_v23 = vpack.c.bf16 %v2308_v44, %v2301_v10  ;;  %v11755_v10 = vand.u32 4294901760, %v9702_v0 }
 0x611   :  { %v2189_v2 = vand.u32 4294901760, %v2188_v20  ;;  %v2196_v58 = vand.u32 4294901760, %v2195_v53  ;;  %7856 = vmatpush3.bf16.msra.mxu0 %v9376_v32  ;;  %v2314_v20 = vsub.f32 %v9616_v1, %v11761_v14  ;;  %v11756_v53 = vand.u32 4294901760, %v9650_v40  ;;  %7658 = vmatprep.subr.bf16.mxu1 %v7657_v30 }
 0x612   :  { %7858 = vmatprep.subr.bf16.mxu0 %v9378_v55  ;;  %v2321_v63 = vsub.f32 %v9635_v13, %v11759_v42  ;;  %v2202_v32 = vsub.f32 %v9637_v29, %v11757_v62  ;;  %v11762_v30 = vand.u32 4294901760, %v9713_v31  ;;  %v2328_v61 = vsub.f32 %v9702_v0, %v11755_v10 }
 0x613   :  { %v10155_v36 = vpack.c.bf16 %v2196_v58, %v2189_v2  ;;  %v11758_v58 = vand.u32 4294901760, %v9704_v52  ;;  %v2315_v18 = vand.u32 4294901760, %v2314_v20  ;;  %v2209_v46 = vsub.f32 %v9650_v40, %v11756_v53 }
 0x614   :  { %v2322_v19 = vand.u32 4294901760, %v2321_v63  ;;  %v2203_v50 = vand.u32 4294901760, %v2202_v32  ;;  %v2216_v20 = vsub.f32 %v9711_v8, %v11760_v51  ;;  %v2223_v63 = vsub.f32 %v9713_v31, %v11762_v30 }
 0x615   :  { %v2335_v44 = vsub.f32 %v9704_v52, %v11758_v58  ;;  %7860 = vmatpush3.bf16.msra.mxu0 %v9378_v55  ;;  %v2210_v2 = vand.u32 4294901760, %v2209_v46  ;;  %v11768_v32 = vand.u32 4294901760, %v9744_v35  ;;  %v2329_v53 = vand.u32 4294901760, %v2328_v61 }
 0x616   :  { %7862 = vmatprep.subr.bf16.mxu0 %v9380_v56  ;;  %v10190_v10 = vpack.c.bf16 %v2322_v19, %v2315_v18  ;;  %v11765_v58 = vand.u32 4294901760, %v9746_v33  ;;  %v2217_v46 = vand.u32 4294901760, %v2216_v20  ;;  %v2224_v42 = vand.u32 4294901760, %v2223_v63 }
 0x617   :  { %v2336_v62 = vand.u32 4294901760, %v2335_v44  ;;  %v10193_v55 = vpack.c.bf16 %v2210_v2, %v2203_v50  ;;  %v2342_v51 = vsub.f32 %v9744_v35, %v11768_v32  ;;  %v11763_v18 = vand.u32 4294901760, %v9841_v15 }
 0x618   :  { %v2349_v30 = vsub.f32 %v9746_v33, %v11765_v58  ;;  %v11764_v19 = vand.u32 4294901760, %v9862_v16  ;;  %v10206_v50 = vpack.c.bf16 %v2224_v42, %v2217_v46  ;;  %v11766_v44 = vand.u32 4294901760, %v9924_v21  ;;  %v12205_v33 = vld [vmem:[#allocation115_spill] sm:$0xff] }
 0x619   :  { %v10198_v14 = vpack.c.bf16 %v2336_v62, %v2329_v53  ;;  %7864 = vmatpush3.bf16.msra.mxu0 %v9380_v56  ;;  %v2343_v61 = vand.u32 4294901760, %v2342_v51  ;;  %v11767_v2 = vand.u32 4294901760, %v9954_v12  ;;  %v2230_v53 = vsub.f32 %v9841_v15, %v11763_v18 }
 0x61a   :  { %7866 = vmatprep.subr.bf16.mxu0 %v9331_v59  ;;  %v2350_v62 = vand.u32 4294901760, %v2349_v30  ;;  %v2237_v20 = vsub.f32 %v9862_v16, %v11764_v19  ;;  %v11769_v56 = vand.u32 4294901760, %v9964_v7  ;;  %v2356_v42 = vsub.f32 %v9924_v21, %v11766_v44  ;;  %v12196_v21 = vld [vmem:[#allocation72_spill] sm:$0xff]  ;;  %v12200_v16 = vld [vmem:[#allocation103_spill] sm:$0xff] }
 0x61b   :  { %v2363_v51 = vsub.f32 %v9954_v12, %v11767_v2  ;;  %v11775_v30 = vand.u32 4294901760, %v9975_v48  ;;  %v11772_v63 = vand.u32 4294901760, %v10020_v39  ;;  %v2231_v18 = vand.u32 4294901760, %v2230_v53 }
 0x61c   :  { %7110 = vmatmul.mubr.f32.vlgmr.msra.gmra.mrb[8].mxu0 %v9797_v24  ;;  %v10227_v46 = vpack.c.bf16 %v2350_v62, %v2343_v61  ;;  %v2238_v19 = vand.u32 4294901760, %v2237_v20  ;;  %v2244_v58 = vsub.f32 %v9964_v7, %v11769_v56  ;;  %v2357_v44 = vand.u32 4294901760, %v2356_v42  ;;  %v12195_v7 = vld [vmem:[#allocation67_spill] sm:$0xff] }
 0x61d   :  { %7112 = vmatprep.mubr.f32.mxu0 %v9860_v47  ;;  %7868 = vmatpush3.bf16.msra.mxu0 %v9331_v59  ;;  %v2364_v2 = vand.u32 4294901760, %v2363_v51  ;;  %v2251_v32 = vsub.f32 %v9975_v48, %v11775_v30  ;;  %v2370_v61 = vsub.f32 %v10020_v39, %v11772_v63  ;;  %v11774_v20 = vand.u32 4294901760, %v10030_v34  ;;  %v12192_v39 = vld [vmem:[#allocation100_spill] sm:$0xff] }
 0x61e   :  { %7870 = vmatprep.subr.bf16.mxu0 %v9341_v6  ;;  %v10241_v62 = vpack.c.bf16 %v2238_v19, %v2231_v18  ;;  %v2245_v53 = vand.u32 4294901760, %v2244_v58  ;;  %v11773_v56 = vand.u32 4294901760, %v10048_v27  ;;  %v11776_v24 = vand.u32 4294901760, %v10050_v54 }
 0x61f   :  { %v10245_v47 = vpack.c.bf16 %v2364_v2, %v2357_v44  ;;  %v2252_v42 = vand.u32 4294901760, %v2251_v32  ;;  %v2371_v51 = vand.u32 4294901760, %v2370_v61  ;;  %v2377_v63 = vsub.f32 %v10030_v34, %v11774_v20 }
 0x620   :  { %7113 = vmatmul.mubr.f32.gmra.mrb[10].mxu0 %v9871_v5  ;;  %v2258_v58 = vsub.f32 %v10048_v27, %v11773_v56  ;;  %v11779_v18 = vand.u32 4294901760, %v10095_v49  ;;  %v11781_v19 = vand.u32 4294901760, %v10097_v26  ;;  %v2265_v44 = vsub.f32 %v10050_v54, %v11776_v24  ;;  %v12185_v27 = vld [vmem:[#allocation84_spill] sm:$0xff]  ;;  %v12187_v54 = vld [vmem:[#allocation85_spill] sm:$0xff] }
 0x621   :  { %12115 = vst [vmem:[#allocation134_spill] sm:$0xff] %v10245_v47  ;;  %7872 = vmatpush3.bf16.msra.mxu0 %v9341_v6  ;;  %7131 = vmatprep.mubr.f32.mxu0 %v9854_v3  ;;  %v10259_v32 = vpack.c.bf16 %v2252_v42, %v2245_v53  ;;  %v11782_v2 = vand.u32 4294901760, %v10102_v17  ;;  %v11783_v61 = vand.u32 4294901760, %v10104_v38  ;;  %v2378_v56 = vand.u32 4294901760, %v2377_v63 }
 0x622   :  { %7874 = vmatprep.subr.bf16.mxu0 %v9351_v37  ;;  %v2259_v20 = vand.u32 4294901760, %v2258_v58  ;;  %v2384_v30 = vsub.f32 %v10095_v49, %v11779_v18  ;;  %v2391_v53 = vsub.f32 %v10097_v26, %v11781_v19  ;;  %v2266_v42 = vand.u32 4294901760, %v2265_v44 }
 0x623   :  { %12116 = vst [vmem:[#allocation135_spill] sm:$0xff] %v10259_v32  ;;  %v2272_v24 = vsub.f32 %v10102_v17, %v11782_v2  ;;  %v2279_v3 = vsub.f32 %v10104_v38, %v11783_v61  ;;  %v10281_v58 = vpack.c.bf16 %v2378_v56, %v2371_v51  ;;  %v12117_v61 = vld [vmem:[#allocation6_spill] sm:$0xff]  ;;  %v12126_v51 = vld [vmem:[#allocation73_spill] sm:$0xff]  ;;  %v1910_v48 = vrot.slane %v12195_v7, 2 }
 0x624   :  { %v2385_v5 = vand.u32 4294901760, %v2384_v30  ;;  %v2392_v18 = vand.u32 4294901760, %v2391_v53  ;;  %v10286_v44 = vpack.c.bf16 %v2266_v42, %v2259_v20  ;;  %v12119_v53 = vld [vmem:[#allocation76_spill] sm:$0xff]  ;;  %v1912_v12 = vrot.slane %v12196_v21, 2 }
 0x625   :  { %7876 = vmatpush3.bf16.msra.mxu0 %v9351_v37  ;;  %v2273_v19 = vand.u32 4294901760, %v2272_v24  ;;  %v2280_v2 = vand.u32 4294901760, %v2279_v3  ;;  %v12118_v3 = vld [vmem:[#allocation7_spill] sm:$0xff]  ;;  %v12122_v42 = vld [vmem:[#allocation92_spill] sm:$0xff]  ;;  %v12206_v8 = vand.u32 4294901760, %v12205_v33 }
 0x626   :  { %7878 = vmatprep.subr.bf16.mxu0 %v12117_v61  ;;  %v10291_v47 = vpack.c.bf16 %v2392_v18, %v2385_v5  ;;  %v12120_v24 = vld [vmem:[#allocation91_spill] sm:$0xff]  ;;  %v12124_v5 = vld [vmem:[#allocation9_spill] sm:$0xff]  ;;  %v12125_v18 = vld [vmem:[#allocation10_spill] sm:$0xff] }
 0x627   :  { %v10299_v20 = vpack.c.bf16 %v2280_v2, %v2273_v19  ;;  %v12121_v19 = vld [vmem:[#allocation8_spill] sm:$0xff]  ;;  %v12123_v2 = vld [vmem:[#allocation75_spill] sm:$0xff] }
 0x629   :  { %7880 = vmatpush3.bf16.msra.mxu0 %v12117_v61 }
 0x62a   :  { %7882 = vmatprep.subr.bf16.mxu0 %v12118_v3 }
 0x62c   :  { %7132 = vmatmul.mubr.f32.vlgmr.msra.gmra.mrb[8].mxu0 %v12119_v53 }
 0x62d   :  { %7134 = vmatprep.mubr.f32.mxu0 %v12120_v24  ;;  %7884 = vmatpush3.bf16.msra.mxu0 %v12118_v3  ;;  %v12127_v3 = vld [vmem:[#allocation78_spill] sm:$0xff]  ;;  %v12140_v24 = vld [vmem:[#allocation20_spill] sm:$0xff] }
 0x62e   :  { %7886 = vmatprep.subr.bf16.mxu0 %v12121_v19  ;;  %v12141_v53 = vand.u32 4294901760, %v12140_v24 }
 0x630   :  { %7135 = vmatmul.mubr.f32.gmra.mrb[10].mxu0 %v12122_v42  ;;  %v12138_v42 = vld [vmem:[#allocation19_spill] sm:$0xff] }
 0x631   :  { %7888 = vmatpush3.bf16.msra.mxu0 %v12121_v19  ;;  %7153 = vmatprep.mubr.f32.mxu0 %v12123_v2  ;;  %v12130_v19 = vld [vmem:[#allocation12_spill] sm:$0xff] }
 0x632   :  { %7890 = vmatprep.subr.bf16.mxu0 %v12124_v5  ;;  %v12131_v30 = vand.u32 4294901760, %v12130_v19  ;;  %v12150_v19 = vld [vmem:[#allocation28_spill] sm:$0xff] }
 0x633   :  { %v12151_v24 = vand.u32 4294901760, %v12150_v19 }
 0x635   :  { %7892 = vmatpush3.bf16.msra.mxu0 %v12124_v5  ;;  %v12128_v5 = vld [vmem:[#allocation11_spill] sm:$0xff] }
 0x636   :  { %7894 = vmatprep.subr.bf16.mxu0 %v12125_v18 }
 0x639   :  { %7896 = vmatpush3.bf16.msra.mxu0 %v12125_v18  ;;  %v12129_v18 = vand.u32 4294901760, %v12128_v5  ;;  %v12145_v5 = vld [vmem:[#allocation22_spill] sm:$0xff] }
 0x63a   :  { %7898 = vmatprep.subr.bf16.mxu0 %v9331_v59 }
 0x63b   :  { %v10349_v56 = vpack.c.bf16 %v12131_v30, %v12129_v18  ;;  %v12148_v18 = vld [vmem:[#allocation25_spill] sm:$0xff] }
 0x63c   :  { %7154 = vmatmul.mubr.f32.vlgmr.msra.gmra.mrb[8].mxu0 %v12126_v51 }
 0x63d   :  { %7156 = vmatprep.mubr.f32.mxu0 %v12127_v3  ;;  %7900 = vmatpush3.bf16.msra.mxu0 %v9331_v59  ;;  %12132 = vst [vmem:[#allocation6_spill] sm:$0xff] %v10349_v56  ;;  %v12133_v59 = vld [vmem:[#allocation13_spill] sm:$0xff] }
 0x63e   :  { %7902 = vmatprep.subr.bf16.mxu0 %v9341_v6  ;;  %v12134_v32 = vand.u32 4294901760, %v12133_v59  ;;  %v12153_v59 = vld [vmem:[#allocation31_spill] sm:$0xff] }
 0x640   :  { %7157 = vmatmul.mubr.f32.gmra.mrb[10].mxu0 %v9837_v45 }
 0x641   :  { %7904 = vmatpush3.bf16.msra.mxu0 %v9341_v6  ;;  %7175 = vmatprep.mubr.f32.mxu0 %v12123_v2  ;;  %v12136_v6 = vand.u32 4294901760, %v12135_v4  ;;  %v12146_v4 = vand.u32 4294901760, %v12145_v5 }
 0x642   :  { %7906 = vmatprep.subr.bf16.mxu0 %v9351_v37 }
 0x643   :  { %v10356_v63 = vpack.c.bf16 %v12136_v6, %v12134_v32  ;;  %v12154_v6 = vand.u32 4294901760, %v12153_v59  ;;  %v12168_v59 = vld [vmem:[#allocation46_spill] sm:$0xff] }
 0x645   :  { %7908 = vmatpush3.bf16.msra.mxu0 %v9351_v37  ;;  %12137 = vst [vmem:[#allocation7_spill] sm:$0xff] %v10356_v63  ;;  %v12139_v37 = vand.u32 4294901760, %v12138_v42  ;;  %v12149_v42 = vand.u32 4294901760, %v12148_v18 }
 0x646   :  { %7910 = vmatprep.subr.bf16.mxu0 %v12117_v61 }
 0x647   :  { %v10363_v2 = vpack.c.bf16 %v12141_v53, %v12139_v37  ;;  %v10379_v53 = vpack.c.bf16 %v12151_v24, %v12149_v42  ;;  %v12155_v37 = vld [vmem:[#allocation32_spill] sm:$0xff]  ;;  %v12163_v42 = vld [vmem:[#allocation41_spill] sm:$0xff]  ;;  %v12165_v24 = vld [vmem:[#allocation42_spill] sm:$0xff] }
 0x648   :  { %v12164_v19 = vand.u32 4294901760, %v12163_v42 }
 0x649   :  { %7912 = vmatpush3.bf16.msra.mxu0 %v12117_v61  ;;  %12142 = vst [vmem:[#allocation8_spill] sm:$0xff] %v10363_v2  ;;  %v12143_v61 = vld [vmem:[#allocation21_spill] sm:$0xff]  ;;  %12152 = vst [vmem:[#allocation10_spill] sm:$0xff] %v10379_v53 }
 0x64a   :  { %8010 = vmatprep.subr.bf16.mxu0 %v10349_v56  ;;  %v12144_v30 = vand.u32 4294901760, %v12143_v61  ;;  %v12156_v61 = vand.u32 4294901760, %v12155_v37  ;;  %v12170_v37 = vld [vmem:[#allocation49_spill] sm:$0xff] }
 0x64c   :  { %7176 = vmatmul.mubr.f32.vlgmr.msra.gmra.mrb[8].mxu0 %v12126_v51  ;;  %v10372_v32 = vpack.c.bf16 %v12146_v4, %v12144_v30  ;;  %v12158_v30 = vld [vmem:[#allocation37_spill] sm:$0xff]  ;;  %v12160_v4 = vld [vmem:[#allocation38_spill] sm:$0xff] }
 0x64d   :  { %7178 = vmatprep.mubr.f32.mxu0 %v12127_v3  ;;  %8012 = vmatpush3.bf16.msra.mxu0 %v10356_v63  ;;  %v10387_v3 = vpack.c.bf16 %v12156_v61, %v12154_v6  ;;  %v12159_v5 = vand.u32 4294901760, %v12158_v30  ;;  %v12161_v18 = vand.u32 4294901760, %v12160_v4  ;;  %v12169_v6 = vand.u32 4294901760, %v12168_v59  ;;  %v12173_v30 = vld [vmem:[#allocation52_spill] sm:$0xff]  ;;  %v12175_v4 = vld [vmem:[#allocation53_spill] sm:$0xff] }
 0x64e   :  { %12147 = vst [vmem:[#allocation9_spill] sm:$0xff] %v10372_v32  ;;  %8014 = vmatprep.subr.bf16.mxu0 %v10363_v2  ;;  %v12171_v61 = vand.u32 4294901760, %v12170_v37  ;;  %v12183_v59 = vld [vmem:[#allocation69_spill] sm:$0xff] }
 0x64f   :  { %12157 = vst [vmem:[#allocation11_spill] sm:$0xff] %v10387_v3  ;;  %v10394_v51 = vpack.c.bf16 %v12161_v18, %v12159_v5  ;;  %v12174_v5 = vand.u32 4294901760, %v12173_v30  ;;  %v12176_v18 = vand.u32 4294901760, %v12175_v4  ;;  %v1907_v37 = vrot.slane %v12183_v59, 2 }
 0x650   :  { %7179 = vmatmul.mubr.f32.gmra.mrb[10].mxu0 %v9837_v45  ;;  %v12166_v45 = vand.u32 4294901760, %v12165_v24  ;;  %v10408_v38 = vpack.c.bf16 %v12171_v61, %v12169_v6  ;;  %v12184_v6 = vld [vmem:[#allocation68_spill] sm:$0xff]  ;;  %v12186_v30 = vand.u32 4294901760, %v12185_v27  ;;  %v12188_v4 = vand.u32 4294901760, %v12187_v54  ;;  %v12197_v27 = vld [vmem:[#allocation71_spill] sm:$0xff] }
 0x651   :  { %8016 = vmatpush3.bf16.msra.mxu0 %v10372_v32  ;;  %12162 = vst [vmem:[#allocation12_spill] sm:$0xff] %v10394_v51  ;;  %v10415_v49 = vpack.c.bf16 %v12176_v18, %v12174_v5  ;;  %v1908_v61 = vrot.slane %v12184_v6, 2  ;;  %v12190_v18 = vld [vmem:[#allocation99_spill] sm:$0xff]  ;;  %v1913_v15 = vrot.slane %v12197_v27, 2 }
 0x652   :  { %8018 = vmatprep.subr.bf16.mxu0 %v10379_v53  ;;  %v10401_v17 = vpack.c.bf16 %v12166_v45, %v12164_v19  ;;  %12172 = vst [vmem:[#allocation14_spill] sm:$0xff] %v10408_v38  ;;  %v12178_v45 = vld [vmem:[#allocation79_spill] sm:$0xff]  ;;  %v12180_v19 = vld [vmem:[#allocation80_spill] sm:$0xff]  ;;  %v10431_v5 = vpack.c.bf16 %v12188_v4, %v12186_v30  ;;  %v12198_v4 = vld [vmem:[#allocation102_spill] sm:$0xff] }
 0x653   :  { %12177 = vst [vmem:[#allocation19_spill] sm:$0xff] %v10415_v49  ;;  %v12179_v42 = vand.u32 4294901760, %v12178_v45  ;;  %v12181_v24 = vand.u32 4294901760, %v12180_v19  ;;  %v12191_v45 = vand.u32 4294901760, %v12190_v18  ;;  %v12193_v19 = vand.u32 4294901760, %v12192_v39 }
 0x654   :  { %12167 = vst [vmem:[#allocation13_spill] sm:$0xff] %v10401_v17  ;;  %12189 = vst [vmem:[#allocation21_spill] sm:$0xff] %v10431_v5  ;;  %v1909_v34 = vsel %vm80_vm3, %v1907_v37, %v1908_v61  ;;  %v12199_v18 = vand.u32 4294901760, %v12198_v4  ;;  %v12201_v39 = vand.u32 4294901760, %v12200_v16  ;;  %v12203_v37 = vld [vmem:[#allocation114_spill] sm:$0xff]  ;;  %v1911_v4 = vsel %vm80_vm3, %v1908_v61, %v1910_v48 }
 0x655   :  { %8020 = vmatpush3.bf16.msra.mxu0 %v10387_v3  ;;  %v10422_v26 = vpack.c.bf16 %v12181_v24, %v12179_v42  ;;  %v10438_v42 = vpack.c.bf16 %v12193_v19, %v12191_v45  ;;  %v12204_v35 = vand.u32 4294901760, %v12203_v37 }
 0x656   :  { %8022 = vmatprep.subr.bf16.mxu0 %v10394_v51  ;;  %v10450_v45 = vpack.c.bf16 %v12201_v39, %v12199_v18  ;;  %v1914_v18 = vsel %vm80_vm3, %v1912_v12, %v1913_v15  ;;  %v12213_v39 = vld [vmem:[#allocation120_spill] sm:$0xff] }
 0x657   :  { %12182 = vst [vmem:[#allocation20_spill] sm:$0xff] %v10422_v26  ;;  %12194 = vst [vmem:[#allocation22_spill] sm:$0xff] %v10438_v42  ;;  %v10461_v31 = vpack.c.bf16 %v12206_v8, %v12204_v35  ;;  %v12211_v8 = vld [vmem:[#allocation117_spill] sm:$0xff]  ;;  %v12214_v37 = vand.u32 4294901760, %v12213_v39 }
 0x658   :  { %12202 = vst [vmem:[#allocation25_spill] sm:$0xff] %v10450_v45  ;;  %v12212_v35 = vand.u32 4294901760, %v12211_v8 }
 0x659   :  { %8024 = vmatpush3.bf16.msra.mxu0 %v10401_v17  ;;  %12207 = vst [vmem:[#allocation28_spill] sm:$0xff] %v10461_v31 }
 0x65a   :  { %8026 = vmatprep.subr.bf16.mxu0 %v10408_v38  ;;  %v10479_v0 = vpack.c.bf16 %v12214_v37, %v12212_v35 }
 0x65b   :  { %v1932_v24 = vpop.permute.xlu1 %1931 }
 0x65c   :  { %v1957_v54 = vsel %vm142_vm6, %v1909_v34, %v1932_v24  ;;  %12215 = vst [vmem:[#allocation38_spill] sm:$0xff] %v10479_v0 }
 0x65d   :  { %8028 = vmatpush3.bf16.msra.mxu0 %v10415_v49  ;;  %v1896_v30 = vpop.permute.xlu0 %1895  ;;  %v10452_v19 = vand.u32 4294901760, %v1957_v54 }
 0x65e   :  { %8030 = vmatprep.subr.bf16.mxu0 %v10422_v26  ;;  %v1953_v7 = vsel %vm142_vm6, %v12183_v59, %v1896_v30 }
 0x65f   :  { %v10463_v34 = vand.u32 4294901760, %v1953_v7  ;;  %v10466_v24 = vsub.f32 %v1957_v54, %v10452_v19  ;;  %v1934_v16 = vpop.permute.xlu1 %1933  ;;  %v12216_v54 = vld [vmem:[#allocation70_spill] sm:$0xff] }
 0x660   :  { %v1958_v30 = vsel %vm142_vm6, %v1911_v4, %v1934_v16  ;;  %v1915_v52 = vrot.slane %v12216_v54, 2 }
 0x661   :  { %8032 = vmatpush3.bf16.msra.mxu0 %v10431_v5  ;;  %12208 = vst [vmem:[#allocation31_spill] sm:$0xff] %v10463_v34  ;;  %12209 = vst [vmem:[#allocation32_spill] sm:$0xff] %v10466_v24  ;;  %v10471_v59 = vsub.f32 %v1953_v7, %v10463_v34  ;;  %v1936_v33 = vpop.permute.xlu0 %1935  ;;  %v10482_v29 = vand.u32 4294901760, %v1958_v30  ;;  %v10487_v48 = vand.u32 4294901760, %v10466_v24 }
 0x662   :  { %8034 = vmatprep.subr.bf16.mxu0 %v10438_v42  ;;  %v1959_v12 = vsel %vm142_vm6, %v1914_v18, %v1936_v33 }
 0x663   :  { %12210 = vst [vmem:[#allocation37_spill] sm:$0xff] %v10471_v59  ;;  %12217 = vst [vmem:[#allocation41_spill] sm:$0xff] %v10482_v29  ;;  %v10490_v61 = vand.u32 4294901760, %v10471_v59  ;;  %v10492_v7 = vand.u32 4294901760, %v1959_v12  ;;  %v10495_v16 = vsub.f32 %v1958_v30, %v10482_v29  ;;  %4427 = vmatprep.mubr.f32.mxu0 %v10487_v48  ;;  %v1898_v4 = vpop.permute.xlu1 %1897  ;;  %v2112_v8 = vsub.f32 %v10466_v24, %v10487_v48 }
 0x664   :  { %12218 = vst [vmem:[#allocation42_spill] sm:$0xff] %v10487_v48  ;;  %v1954_v35 = vsel %vm142_vm6, %v12184_v6, %v1898_v4  ;;  %v1916_v30 = vsel %vm80_vm3, %v1913_v15, %v1915_v52 }
 0x665   :  { %8036 = vmatpush3.bf16.msra.mxu0 %v10450_v45  ;;  %12219 = vst [vmem:[#allocation46_spill] sm:$0xff] %v10492_v7  ;;  %12220 = vst [vmem:[#allocation49_spill] sm:$0xff] %v10495_v16  ;;  %v2118_v18 = vsub.f32 %v10471_v59, %v10490_v61  ;;  %v10503_v33 = vsub.f32 %v1959_v12, %v10492_v7  ;;  %v1938_v39 = vpop.permute.xlu0 %1937  ;;  %v10509_v37 = vand.u32 4294901760, %v1954_v35  ;;  %v10513_v48 = vand.u32 4294901760, %v2112_v8 }
 0x666   :  { %8038 = vmatprep.subr.bf16.mxu0 %v10461_v31  ;;  %v1960_v54 = vsel %vm142_vm6, %v1916_v30, %v1938_v39  ;;  %v10516_v59 = vand.u32 4294901760, %v10495_v16 }
 0x667   :  { %12221 = vst [vmem:[#allocation52_spill] sm:$0xff] %v10503_v33  ;;  %12222 = vst [vmem:[#allocation53_spill] sm:$0xff] %v10509_v37  ;;  %v10518_v12 = vand.u32 4294901760, %v2118_v18  ;;  %v10520_v24 = vand.u32 4294901760, %v1960_v54  ;;  %v10523_v6 = vand.u32 4294901760, %v10503_v33  ;;  %v10526_v52 = vsub.f32 %v1954_v35, %v10509_v37  ;;  %2114 = vmatprep.mubr.f32.mxu1 %v10513_v48  ;;  %v1900_v15 = vpop.permute.xlu1 %1899 }
 0x668   :  { %12223 = vst [vmem:[#allocation79_spill] sm:$0xff] %v10513_v48  ;;  %v2127_v4 = vsub.f32 %v10495_v16, %v10516_v59  ;;  %v1955_v18 = vsel %vm142_vm6, %v12196_v21, %v1900_v15 }
 0x669   :  { %8040 = vmatpush3.bf16.msra.mxu0 %v10479_v0  ;;  %12224 = vst [vmem:[#allocation80_spill] sm:$0xff] %v10518_v12  ;;  %12225 = vst [vmem:[#allocation69_spill] sm:$0xff] %v10520_v24  ;;  %v10533_v8 = vsub.f32 %v1960_v54, %v10520_v24  ;;  %v10539_v35 = vand.u32 4294901760, %v1955_v18  ;;  %2120 = vmatmul.mubr.f32.vlgmr.msra.gmra.mrb[4].mxu1 %v10518_v12  ;;  %v10546_v39 = vand.u32 4294901760, %v10526_v52 }
 0x66a   :  { %8074 = vmatprep.subr.bf16.mxu0 %v10349_v56  ;;  %12226 = vst [vmem:[#allocation68_spill] sm:$0xff] %v10526_v52  ;;  %v10543_v30 = vand.u32 4294901760, %v2127_v4  ;;  %7660 = vmatpush3.bf16.msra.mxu1 %v10147_v41  ;;  %v2142_v54 = vsub.f32 %v10503_v33, %v10523_v6 }
 0x66b   :  { %12227 = vst [vmem:[#allocation84_spill] sm:$0xff] %v10533_v8  ;;  %12228 = vst [vmem:[#allocation85_spill] sm:$0xff] %v10539_v35  ;;  %v10552_v21 = vand.u32 4294901760, %v10533_v8  ;;  %v10555_v15 = vsub.f32 %v1955_v18, %v10539_v35  ;;  %v1902_v48 = vpop.permute.xlu1 %1901  ;;  %7662 = vmatprep.subr.bf16.mxu1 %v10153_v23  ;;  %v2133_v4 = vsub.f32 %v10526_v52, %v10546_v39 }
 0x66c   :  { %4431 = vmatmul.mubr.f32.vlgmr.msra.gmra.mrb[12].mxu0 %v10490_v61  ;;  %12229 = vst [vmem:[#allocation99_spill] sm:$0xff] %v10543_v30  ;;  %2129 = vmatprep.mubr.f32.mxu1 %v10543_v30  ;;  %v1956_v41 = vsel %vm142_vm6, %v12197_v27, %v1902_v48  ;;  %v10575_v23 = vand.u32 4294901760, %v2142_v54 }
 0x66d   :  { %8076 = vmatpush3.bf16.msra.mxu0 %v10356_v63  ;;  %4438 = vmatprep.mubr.f32.mxu0 %v10516_v59  ;;  %12230 = vst [vmem:[#allocation100_spill] sm:$0xff] %v10555_v15  ;;  %v10564_v12 = vand.u32 4294901760, %v1956_v41  ;;  %v10568_v18 = vand.u32 4294901760, %v2133_v4  ;;  %v10571_v30 = vand.u32 4294901760, %v10555_v15  ;;  %v2157_v27 = vsub.f32 %v10533_v8, %v10552_v21  ;;  %v12282_v63 = vld [vmem:[#allocation24_spill] sm:$0xff] }
 0x66e   :  { %8078 = vmatprep.subr.bf16.mxu0 %v10363_v2  ;;  %7664 = vmatpush3.bf16.msra.mxu1 %v10155_v36  ;;  %12233 = vst [vmem:[#allocation71_spill] sm:$0xff] %v10575_v23  ;;  %v12281_v2 = vld [vmem:[#allocation16_spill] sm:$0xff] }
 0x66f   :  { %12231 = vst [vmem:[#allocation67_spill] sm:$0xff] %v10564_v12  ;;  %12232 = vst [vmem:[#allocation72_spill] sm:$0xff] %v10568_v18  ;;  %v10580_v48 = vsub.f32 %v1956_v41, %v10564_v12  ;;  %2135 = vmatmul.mubr.f32.gmra.mrb[6].mxu1 %v10568_v18  ;;  %7666 = vmatprep.subr.bf16.mxu1 %v10190_v10  ;;  %v2148_v4 = vsub.f32 %v10555_v15, %v10571_v30  ;;  %v10597_v10 = vand.u32 4294901760, %v2157_v27  ;;  %v12261_v18 = vld [vmem:[#allocation98_spill] sm:$0xff] }
 0x670   :  { %4442 = vmatmul.mubr.f32.gmra.mrb[14].mxu0 %v10546_v39  ;;  %2144 = vmatprep.mubr.f32.mxu1 %v10575_v23  ;;  %v12260_v23 = vld [vmem:[#allocation106_spill] sm:$0xff] }
 0x671   :  { %8080 = vmatpush3.bf16.msra.mxu0 %v10372_v32  ;;  %4449 = vmatprep.mubr.f32.mxu0 %v10523_v6  ;;  %12234 = vst [vmem:[#allocation102_spill] sm:$0xff] %v10580_v48  ;;  %v10590_v36 = vand.u32 4294901760, %v2148_v4  ;;  %v10593_v54 = vand.u32 4294901760, %v10580_v48  ;;  %12236 = vst [vmem:[#allocation114_spill] sm:$0xff] %v10597_v10  ;;  %v12247_v4 = vld [vmem:[#allocation56_spill] sm:$0xff] }
 0x672   :  { %8082 = vmatprep.subr.bf16.mxu0 %v10379_v53  ;;  %7668 = vmatpush3.bf16.msra.mxu1 %v10193_v55  ;;  %v12279_v53 = vld [vmem:[#allocation37_spill] sm:$0xff] }
 0x673   :  { %12235 = vst [vmem:[#allocation103_spill] sm:$0xff] %v10590_v36  ;;  %2150 = vmatmul.mubr.f32.gmra.mrb[8].mxu1 %v10590_v36  ;;  %7670 = vmatprep.subr.bf16.mxu1 %v10198_v14  ;;  %v2163_v41 = vsub.f32 %v10580_v48, %v10593_v54  ;;  %v12238_v14 = vld [vmem:[#allocation134_spill] sm:$0xff] }
 0x674   :  { %4453 = vmatmul.mubr.f32.gmra.mrb[16].mxu0 %v10571_v30  ;;  %2159 = vmatprep.mubr.f32.mxu1 %v10597_v10  ;;  %v12257_v10 = vld [vmem:[#allocation88_spill] sm:$0xff] }
 0x675   :  { %8084 = vmatpush3.bf16.msra.mxu0 %v10387_v3  ;;  %4460 = vmatprep.mubr.f32.mxu0 %v10552_v21  ;;  %v10607_v55 = vand.u32 4294901760, %v2163_v41  ;;  %v12248_v41 = vld [vmem:[#allocation55_spill] sm:$0xff] }
 0x676   :  { %8086 = vmatprep.subr.bf16.mxu0 %v10394_v51  ;;  %7672 = vmatpush3.bf16.msra.mxu1 %v10206_v50  ;;  %v12239_v50 = vld [vmem:[#allocation135_spill] sm:$0xff]  ;;  %v12276_v51 = vld [vmem:[#allocation132_spill] sm:$0xff] }
 0x677   :  { %12237 = vst [vmem:[#allocation115_spill] sm:$0xff] %v10607_v55  ;;  %2165 = vmatmul.mubr.f32.gmra.mrb[10].mxu1 %v10607_v55  ;;  %7674 = vmatprep.subr.bf16.mxu1 %v10227_v46  ;;  %v12240_v46 = vpack.c.bf16 %v10080_v43, %v10063_v25 }
 0x678   :  { %4464 = vmatmul.mubr.f32.gmra.mrb[18].mxu0 %v10593_v54  ;;  %2395 = vmatprep.mubr.f32.mxu1 %v10452_v19 }
 0x679   :  { %8088 = vmatpush3.bf16.msra.mxu0 %v10401_v17  ;;  %4755 = vmatprep.mubr.f32.mxu0 %v10452_v19 }
 0x67a   :  { %8090 = vmatprep.subr.bf16.mxu0 %v10408_v38  ;;  %7676 = vmatpush3.bf16.msra.mxu1 %v10241_v62  ;;  %v12241_v62 = vpack.c.bf16 %v9510_v57, %v9508_v9  ;;  %v12273_v38 = vld [vmem:[#allocation129_spill] sm:$0xff] }
 0x67b   :  { %7678 = vmatprep.subr.bf16.mxu1 %v12238_v14  ;;  %v12249_v14 = vpack.c.bf16 %v12247_v4, %v12248_v41 }
 0x67d   :  { %8092 = vmatpush3.bf16.msra.mxu0 %v10415_v49 }
 0x67e   :  { %8094 = vmatprep.subr.bf16.mxu0 %v10422_v26  ;;  %7680 = vmatpush3.bf16.msra.mxu1 %v12239_v50  ;;  %v12250_v50 = vld [vmem:[#allocation59_spill] sm:$0xff]  ;;  %v12270_v26 = vld [vmem:[#allocation122_spill] sm:$0xff] }
 0x67f   :  { %7682 = vmatprep.subr.bf16.mxu1 %v10281_v58  ;;  %v12243_v58 = vpack.c.bf16 %v9570_v60, %v9568_v22 }
 0x681   :  { %8096 = vmatpush3.bf16.msra.mxu0 %v10431_v5 }
 0x682   :  { %8098 = vmatprep.subr.bf16.mxu0 %v10438_v42  ;;  %7684 = vmatpush3.bf16.msra.mxu1 %v10286_v44  ;;  %v12244_v44 = vpack.c.bf16 %v9635_v13, %v9616_v1  ;;  %v12266_v42 = vld [vmem:[#allocation119_spill] sm:$0xff] }
 0x683   :  { %7686 = vmatprep.subr.bf16.mxu1 %v10291_v47  ;;  %v12242_v47 = vpack.c.bf16 %v9561_v28, %v9559_v11 }
 0x685   :  { %8100 = vmatpush3.bf16.msra.mxu0 %v10450_v45 }
 0x686   :  { %8102 = vmatprep.subr.bf16.mxu0 %v10461_v31  ;;  %7688 = vmatpush3.bf16.msra.mxu1 %v10299_v20  ;;  %v12245_v20 = vld [vmem:[#allocation44_spill] sm:$0xff]  ;;  %v12264_v31 = vld [vmem:[#allocation107_spill] sm:$0xff] }
 0x687   :  { %7690 = vmatprep.subr.bf16.mxu1 %v12240_v46  ;;  %v12246_v27 = vpack.c.bf16 %v9650_v40, %v12245_v20  ;;  %v12251_v46 = vld [vmem:[#allocation58_spill] sm:$0xff] }
 0x689   :  { %8104 = vmatpush3.bf16.msra.mxu0 %v10479_v0  ;;  %2397 = vmatmul.mubr.f32.vlgmr.msra.gmra.mrb[12].mxu1 %v10463_v34  ;;  %v12262_v0 = vpack.c.bf16 %v12260_v23, %v12261_v18  ;;  %v12315_v23 = vld [vmem:[#allocation105_spill] sm:$0xff] }
 0x68a   :  { %2402 = vmatprep.mubr.f32.mxu1 %v10482_v29  ;;  %7692 = vmatpush3.bf16.msra.mxu1 %v12241_v62  ;;  %v12252_v62 = vpack.c.bf16 %v12250_v50, %v12251_v46 }
 0x68b   :  { %7694 = vmatprep.subr.bf16.mxu1 %v12242_v47  ;;  %v12253_v47 = vld [vmem:[#allocation32_spill] sm:$0xff] }
 0x68c   :  { %4757 = vmatmul.mubr.f32.vlgmr.msra.gmra.mrb[20].mxu0 %v10463_v34  ;;  %v12288_v34 = vld [vmem:[#allocation34_spill] sm:$0xff] }
 0x68d   :  { %4762 = vmatprep.mubr.f32.mxu0 %v10482_v29  ;;  %2404 = vmatmul.mubr.f32.gmra.mrb[14].mxu1 %v10509_v37  ;;  %v12287_v29 = vld [vmem:[#allocation27_spill] sm:$0xff] }
 0x68e   :  { %2409 = vmatprep.mubr.f32.mxu1 %v10492_v7  ;;  %7696 = vmatpush3.bf16.msra.mxu1 %v12243_v58  ;;  %v12254_v58 = vld [vmem:[#allocation66_spill] sm:$0xff] }
 0x68f   :  { %7698 = vmatprep.subr.bf16.mxu1 %v12244_v44  ;;  %v12255_v44 = vld [vmem:[#allocation65_spill] sm:$0xff] }
 0x690   :  { %4764 = vmatmul.mubr.f32.gmra.mrb[22].mxu0 %v10509_v37  ;;  %v12256_v55 = vpack.c.bf16 %v12254_v58, %v12255_v44 }
 0x691   :  { %4769 = vmatprep.mubr.f32.mxu0 %v10492_v7  ;;  %2411 = vmatmul.mubr.f32.gmra.mrb[16].mxu1 %v10539_v35 }
 0x692   :  { %2416 = vmatprep.mubr.f32.mxu1 %v10520_v24  ;;  %7700 = vmatpush3.bf16.msra.mxu1 %v12246_v27  ;;  %v12258_v27 = vld [vmem:[#allocation83_spill] sm:$0xff] }
 0x693   :  { %7702 = vmatprep.subr.bf16.mxu1 %v12249_v14  ;;  %v12259_v36 = vpack.c.bf16 %v12257_v10, %v12258_v27  ;;  %v12263_v14 = vld [vmem:[#allocation109_spill] sm:$0xff] }
 0x694   :  { %4771 = vmatmul.mubr.f32.gmra.mrb[24].mxu0 %v10539_v35  ;;  %v12265_v45 = vpack.c.bf16 %v12263_v14, %v12264_v31  ;;  %v12308_v14 = vld [vmem:[#allocation64_spill] sm:$0xff] }
 0x695   :  { %4776 = vmatprep.mubr.f32.mxu0 %v10520_v24  ;;  %2418 = vmatmul.mubr.f32.gmra.mrb[18].mxu1 %v10564_v12  ;;  %v12285_v24 = vld [vmem:[#allocation33_spill] sm:$0xff] }
 0x696   :  { %7704 = vmatpush3.bf16.msra.mxu1 %v12252_v62  ;;  %2553 = vmatprep.mubr.f32.mxu1 %v12253_v47  ;;  %v12267_v62 = vld [vmem:[#allocation116_spill] sm:$0xff]  ;;  %v12269_v47 = vld [vmem:[#allocation123_spill] sm:$0xff] }
 0x697   :  { %7706 = vmatprep.subr.bf16.mxu1 %v12256_v55  ;;  %v12268_v5 = vpack.c.bf16 %v12266_v42, %v12267_v62  ;;  %v12271_v49 = vpack.c.bf16 %v12269_v47, %v12270_v26  ;;  %v12272_v55 = vld [vmem:[#allocation130_spill] sm:$0xff]  ;;  %v12307_v42 = vld [vmem:[#allocation51_spill] sm:$0xff] }
 0x698   :  { %4778 = vmatmul.mubr.f32.gmra.mrb[26].mxu0 %v10564_v12  ;;  %v12274_v17 = vpack.c.bf16 %v12272_v55, %v12273_v38  ;;  %v12284_v12 = vld [vmem:[#allocation18_spill] sm:$0xff]  ;;  %v12291_v38 = vld [vmem:[#allocation43_spill] sm:$0xff]  ;;  %v11895_v62 = vand.u32 4294901760, %v12307_v42 }
 0x699   :  { %v12299_v26 = vld [vmem:[#allocation54_spill] sm:$0xff] }
 0x69a   :  { %7708 = vmatpush3.bf16.msra.mxu1 %v12259_v36  ;;  %v12275_v36 = vld [vmem:[#allocation133_spill] sm:$0xff] }
 0x69b   :  { %7710 = vmatprep.subr.bf16.mxu1 %v12262_v0  ;;  %v12277_v3 = vpack.c.bf16 %v12275_v36, %v12276_v51  ;;  %v12278_v0 = vld [vmem:[#allocation23_spill] sm:$0xff]  ;;  %v12289_v36 = vld [vmem:[#allocation29_spill] sm:$0xff]  ;;  %v12290_v51 = vld [vmem:[#allocation30_spill] sm:$0xff] }
 0x69c   :  { %v11884_v55 = vand.u32 4294901760, %v12290_v51 }
 0x69e   :  { %7712 = vmatpush3.bf16.msra.mxu1 %v12265_v45  ;;  %v12280_v45 = vld [vmem:[#allocation15_spill] sm:$0xff] }
 0x69f   :  { %7714 = vmatprep.subr.bf16.mxu1 %v12268_v5  ;;  %v11873_v32 = vand.u32 4294901760, %v12280_v45  ;;  %v11876_v5 = vand.u32 4294901760, %v12281_v2 }
 0x6a2   :  { %7716 = vmatpush3.bf16.msra.mxu1 %v12271_v49  ;;  %v12283_v49 = vld [vmem:[#allocation17_spill] sm:$0xff] }
 0x6a3   :  { %7718 = vmatprep.subr.bf16.mxu1 %v12274_v17  ;;  %v11877_v56 = vand.u32 4294901760, %v12283_v49  ;;  %v11878_v17 = vand.u32 4294901760, %v12284_v12 }
 0x6a5   :  { %v3921_v35 = vsub.f32 %v12284_v12, %v11878_v17 }
 0x6a6   :  { %7720 = vmatpush3.bf16.msra.mxu1 %v12277_v3  ;;  %v4026_v3 = vsub.f32 %v12280_v45, %v11873_v32  ;;  %v11882_v32 = vand.u32 4294901760, %v12287_v29 }
 0x6a7   :  { %7722 = vmatprep.subr.bf16.mxu1 %v12278_v0  ;;  %v3922_v0 = vand.u32 4294901760, %v3921_v35  ;;  %v3935_v35 = vsub.f32 %v12290_v51, %v11884_v55 }
 0x6a8   :  { %v4027_v7 = vand.u32 4294901760, %v4026_v3  ;;  %v4047_v3 = vsub.f32 %v12287_v29, %v11882_v32 }
 0x6a9   :  { %2556 = vmatmul.mubr.f32.vlgmr.msra.gmra.mrb[20].mxu1 %v12279_v53  ;;  %v4033_v53 = vsub.f32 %v12281_v2, %v11876_v5  ;;  %v3936_v32 = vand.u32 4294901760, %v3935_v35 }
 0x6aa   :  { %2562 = vmatprep.mubr.f32.mxu1 %v10495_v16  ;;  %7724 = vmatpush3.bf16.msra.mxu1 %v12282_v63  ;;  %v3914_v16 = vsub.f32 %v12283_v49, %v11877_v56  ;;  %v11883_v56 = vand.u32 4294901760, %v12289_v36 }
 0x6ab   :  { %7726 = vmatprep.subr.bf16.mxu1 %v12285_v24  ;;  %v4034_v37 = vand.u32 4294901760, %v4033_v53  ;;  %v12286_v24 = vld [vmem:[#allocation26_spill] sm:$0xff] }
 0x6ac   :  { %v11881_v63 = vand.u32 4294901760, %v12286_v24  ;;  %v3915_v5 = vand.u32 4294901760, %v3914_v16  ;;  %v3928_v16 = vsub.f32 %v12289_v36, %v11883_v56 }
 0x6ad   :  { %2565 = vmatmul.mubr.f32.gmra.mrb[22].mxu1 %v10526_v52  ;;  %v10720_v17 = vpack.c.bf16 %v4034_v37, %v4027_v7  ;;  %v4048_v37 = vand.u32 4294901760, %v4047_v3  ;;  %v12294_v52 = vld [vmem:[#allocation35_spill] sm:$0xff] }
 0x6ae   :  { %2571 = vmatprep.mubr.f32.mxu1 %v10503_v33  ;;  %7728 = vmatpush3.bf16.msra.mxu1 %v12288_v34  ;;  %v4040_v53 = vsub.f32 %v12286_v24, %v11881_v63  ;;  %v10728_v33 = vpack.c.bf16 %v3922_v0, %v3915_v5  ;;  %v11887_v63 = vand.u32 4294901760, %v12294_v52  ;;  %v12296_v0 = vld [vmem:[#allocation45_spill] sm:$0xff]  ;;  %v3929_v5 = vand.u32 4294901760, %v3928_v16  ;;  %v12298_v34 = vld [vmem:[#allocation40_spill] sm:$0xff] }
 0x6af   :  { %7730 = vmatprep.subr.bf16.mxu1 %v12291_v38  ;;  %12292 = vst [vmem:[#allocation117_spill] sm:$0xff] %v10720_v17  ;;  %v12295_v17 = vld [vmem:[#allocation36_spill] sm:$0xff]  ;;  %v11890_v47 = vand.u32 4294901760, %v12298_v34 }
 0x6b0   :  { %12293 = vst [vmem:[#allocation120_spill] sm:$0xff] %v10728_v33  ;;  %v4041_v7 = vand.u32 4294901760, %v4040_v53  ;;  %v11888_v38 = vand.u32 4294901760, %v12295_v17  ;;  %v12297_v33 = vld [vmem:[#allocation39_spill] sm:$0xff]  ;;  %v4054_v53 = vsub.f32 %v12294_v52, %v11887_v63 }
 0x6b1   :  { %2574 = vmatmul.mubr.f32.gmra.mrb[24].mxu1 %v10555_v15  ;;  %v11889_v56 = vand.u32 4294901760, %v12297_v33  ;;  %v3949_v35 = vsub.f32 %v12298_v34, %v11890_v47  ;;  %v12302_v15 = vld [vmem:[#allocation47_spill] sm:$0xff] }
 0x6b2   :  { %2580 = vmatprep.mubr.f32.mxu1 %v10533_v8  ;;  %7732 = vmatpush3.bf16.msra.mxu1 %v12296_v0  ;;  %v10744_v55 = vpack.c.bf16 %v4048_v37, %v4041_v7  ;;  %v4061_v3 = vsub.f32 %v12295_v17, %v11888_v38  ;;  %v10752_v8 = vpack.c.bf16 %v3936_v32, %v3929_v5  ;;  %v4055_v7 = vand.u32 4294901760, %v4054_v53  ;;  %v12304_v0 = vld [vmem:[#allocation57_spill] sm:$0xff]  ;;  %v12305_v32 = vld [vmem:[#allocation42_spill] sm:$0xff] }
 0x6b3   :  { %7734 = vmatprep.subr.bf16.mxu1 %v12299_v26  ;;  %v3942_v16 = vsub.f32 %v12297_v33, %v11889_v56  ;;  %v11892_v63 = vand.u32 4294901760, %v12302_v15  ;;  %v3950_v38 = vand.u32 4294901760, %v3949_v35 }
 0x6b4   :  { %12300 = vst [vmem:[#allocation70_spill] sm:$0xff] %v10744_v55  ;;  %12301 = vst [vmem:[#allocation134_spill] sm:$0xff] %v10752_v8  ;;  %v4062_v37 = vand.u32 4294901760, %v4061_v3  ;;  %v12303_v55 = vld [vmem:[#allocation48_spill] sm:$0xff]  ;;  %v12306_v8 = vld [vmem:[#allocation50_spill] sm:$0xff] }
 0x6b5   :  { %2583 = vmatmul.mubr.f32.gmra.mrb[26].mxu1 %v10580_v48  ;;  %v11893_v26 = vand.u32 4294901760, %v12303_v55  ;;  %v3943_v5 = vand.u32 4294901760, %v3942_v16  ;;  %v11894_v56 = vand.u32 4294901760, %v12306_v8  ;;  %v4068_v53 = vsub.f32 %v12302_v15, %v11892_v63  ;;  %v12310_v48 = vld [vmem:[#allocation60_spill] sm:$0xff] }
 0x6b6   :  { %7736 = vmatpush3.bf16.msra.mxu1 %v12304_v0  ;;  %2687 = vmatprep.mubr.f32.mxu1 %v12305_v32  ;;  %v10768_v47 = vpack.c.bf16 %v4062_v37, %v4055_v7  ;;  %v11896_v32 = vand.u32 4294901760, %v12310_v48  ;;  %v3963_v7 = vsub.f32 %v12307_v42, %v11895_v62  ;;  %v12312_v37 = vld [vmem:[#allocation61_spill] sm:$0xff]  ;;  %v12313_v0 = vld [vmem:[#allocation82_spill] sm:$0xff] }
 0x6b7   :  { %7738 = vmatprep.subr.bf16.mxu1 %v12308_v14  ;;  %v4075_v3 = vsub.f32 %v12303_v55, %v11893_v26  ;;  %v10777_v16 = vpack.c.bf16 %v3950_v38, %v3943_v5  ;;  %v3956_v35 = vsub.f32 %v12306_v8, %v11894_v56  ;;  %v4069_v14 = vand.u32 4294901760, %v4068_v53 }
 0x6b8   :  { %12309 = vst [vmem:[#allocation135_spill] sm:$0xff] %v10768_v47  ;;  %v11897_v47 = vand.u32 4294901760, %v12312_v37  ;;  %v4082_v26 = vsub.f32 %v12310_v48, %v11896_v32  ;;  %v3964_v5 = vand.u32 4294901760, %v3963_v7  ;;  %v12319_v7 = vld [vmem:[#allocation93_spill] sm:$0xff] }
 0x6b9   :  { %12311 = vst [vmem:[#allocation44_spill] sm:$0xff] %v10777_v16  ;;  %v4076_v63 = vand.u32 4294901760, %v4075_v3  ;;  %v3957_v38 = vand.u32 4294901760, %v3956_v35  ;;  %v12314_v16 = vld [vmem:[#allocation62_spill] sm:$0xff]  ;;  %v12317_v3 = vld [vmem:[#allocation63_spill] sm:$0xff] }
 0x6ba   :  { %7740 = vmatpush3.bf16.msra.mxu1 %v12313_v0  ;;  %v4089_v56 = vsub.f32 %v12312_v37, %v11897_v47  ;;  %v11899_v31 = vand.u32 4294901760, %v12314_v16  ;;  %v4083_v53 = vand.u32 4294901760, %v4082_v26  ;;  %v11900_v18 = vand.u32 4294901760, %v12317_v3  ;;  %v12320_v37 = vld [vmem:[#allocation94_spill] sm:$0xff]  ;;  %v12322_v26 = vld [vmem:[#allocation108_spill] sm:$0xff] }
 0x6bb   :  { %7742 = vmatprep.subr.bf16.mxu1 %v12315_v23  ;;  %v10795_v62 = vpack.c.bf16 %v4076_v63, %v4069_v14  ;;  %v10798_v10 = vpack.c.bf16 %v3964_v5, %v3957_v38  ;;  %v11902_v0 = vand.u32 4294901760, %v12319_v7  ;;  %v11905_v23 = vand.u32 4294901760, %v12320_v37  ;;  %v12321_v63 = vld [vmem:[#allocation5_spill] sm:$0xff]  ;;  %v12324_v5 = vld [vmem:[#allocation118_spill] sm:$0xff] }
 0x6bc   :  { %v4090_v32 = vand.u32 4294901760, %v4089_v56  ;;  %v3970_v35 = vsub.f32 %v12314_v16, %v11899_v31  ;;  %v3977_v47 = vsub.f32 %v12317_v3, %v11900_v18  ;;  %v2003_v14 = vsub.s32 7, %v12321_v63  ;;  %v8442_v63 = vld [vmem:[%s11552_s6] sm:$0xff]  ;;  %v12328_v3 = vld [vmem:[#allocation110_spill] sm:$0xff] }
 0x6bd   :  { %12316 = vst [vmem:[#allocation56_spill] sm:$0xff] %v10795_v62  ;;  %12318 = vst [vmem:[#allocation55_spill] sm:$0xff] %v10798_v10  ;;  %v4096_v56 = vsub.f32 %v12319_v7, %v11902_v0  ;;  %v4103_v18 = vsub.f32 %v12320_v37, %v11905_v23  ;;  %v11914_v0 = vand.u32 4294901760, %v12328_v3  ;;  %v12331_v23 = vld [vmem:[#allocation121_spill] sm:$0xff]  ;;  %v12334_v16 = vand.u32 4294901760, %v10063_v25 }
 0x6be   :  { %7744 = vmatpush3.bf16.msra.mxu1 %v12322_v26  ;;  %v10810_v62 = vpack.c.bf16 %v4090_v32, %v4083_v53  ;;  %v3971_v38 = vand.u32 4294901760, %v3970_v35  ;;  %v3978_v31 = vand.u32 4294901760, %v3977_v47  ;;  %v10822_v10 = vrot.slane %v8442_v63, %v2003_v14  ;;  %v12326_v53 = vld [vmem:[#allocation96_spill] sm:$0xff] }
 0x6bf   :  { %7746 = vmatprep.subr.bf16.mxu1 %v12324_v5  ;;  %v4097_v32 = vand.u32 4294901760, %v4096_v56  ;;  %v11908_v35 = vand.u32 4294901760, %v12326_v53  ;;  %v4104_v47 = vand.u32 4294901760, %v4103_v18  ;;  %v12330_v5 = vld [vmem:[#allocation111_spill] sm:$0xff]  ;;  %v12332_v18 = vld [vmem:[#allocation112_spill] sm:$0xff]  ;;  %v12339_v25 = vand.u32 4294901760, %v9508_v9 }
 0x6c0   :  { %12323 = vst [vmem:[#allocation59_spill] sm:$0xff] %v10810_v62  ;;  %12325 = vst [vmem:[#allocation58_spill] sm:$0xff] %v10822_v10  ;;  %v12327_v62 = vld [vmem:[#allocation97_spill] sm:$0xff]  ;;  %v10827_v7 = vpack.c.bf16 %v3978_v31, %v3971_v38  ;;  %3750 = vrot.lane.b32.xlu0 %v10822_v10, %s8470_s13  ;;  %v4110_v31 = vsub.f32 %v12328_v3, %v11914_v0  ;;  %v11915_v38 = vand.u32 4294901760, %v12332_v18  ;;  %v12333_v56 = vld [vmem:[#allocation128_spill] sm:$0xff]  ;;  %v12335_v10 = vand.u32 4294901760, %v10080_v43 }
 0x6c1   :  { %v11910_v26 = vand.u32 4294901760, %v12327_v62  ;;  %v3984_v63 = vsub.f32 %v12326_v53, %v11908_v35  ;;  %v12337_v35 = vand.u32 4294901760, %v12330_v5  ;;  %v12340_v43 = vand.u32 4294901760, %v9510_v57 }
 0x6c2   :  { %12329 = vst [vmem:[#allocation66_spill] sm:$0xff] %v10827_v7  ;;  %7748 = vmatpush3.bf16.msra.mxu1 %v12331_v23  ;;  %v7753_v7 = vpack.c.bf16 %v12335_v10, %v12334_v16  ;;  %v10848_v23 = vpack.c.bf16 %v4104_v47, %v4097_v32  ;;  %v4111_v0 = vand.u32 4294901760, %v4110_v31  ;;  %v12341_v16 = vand.u32 4294901760, %v9559_v11 }
 0x6c3   :  { %v3991_v14 = vsub.f32 %v12327_v62, %v11910_v26  ;;  %7750 = vmatprep.subr.bf16.mxu1 %v12333_v56  ;;  %v4117_v53 = vsub.f32 %v12330_v5, %v12337_v35  ;;  %v12338_v26 = vld [vmem:[#allocation113_spill] sm:$0xff]  ;;  %v3985_v37 = vand.u32 4294901760, %v3984_v63  ;;  %v3998_v56 = vsub.f32 %v12332_v18, %v11915_v38 }
 0x6c4   :  { %12336 = vst [vmem:[#allocation65_spill] sm:$0xff] %v10848_v23  ;;  %v11921_v62 = vand.u32 4294901760, %v12338_v26  ;;  %v7755_v10 = vpack.c.bf16 %v12340_v43, %v12339_v25  ;;  %v12342_v32 = vand.u32 4294901760, %v9561_v28  ;;  %v12344_v23 = vld [vmem:[#allocation124_spill] sm:$0xff]  ;;  %v12345_v18 = vld [vmem:[#allocation125_spill] sm:$0xff]  ;;  %v12346_v28 = vld [vmem:[#allocation126_spill] sm:$0xff] }
 0x6c5   :  { %v3992_v48 = vand.u32 4294901760, %v3991_v14  ;;  %v4118_v35 = vand.u32 4294901760, %v4117_v53  ;;  %v12343_v14 = vld [vmem:[#allocation131_spill] sm:$0xff]  ;;  %v3999_v38 = vand.u32 4294901760, %v3998_v56  ;;  %v11920_v9 = vand.u32 4294901760, %v12344_v23 }
 0x6c6   :  { %v7757_v47 = vpack.c.bf16 %v12342_v32, %v12341_v16  ;;  %v4005_v63 = vsub.f32 %v12338_v26, %v11921_v62  ;;  %7752 = vmatpush3.bf16.msra.mxu1 %v12343_v14  ;;  %v11917_v57 = vand.u32 4294901760, %v12345_v18  ;;  %v11918_v43 = vand.u32 4294901760, %v12346_v28  ;;  %v12347_v53 = vld [vmem:[#allocation127_spill] sm:$0xff]  ;;  %v12435_v62 = vld [vmem:[#allocation118_spill] sm:$0xff] }
 0x6c7   :  { %v10869_v31 = vpack.c.bf16 %v3992_v48, %v3985_v37  ;;  %7754 = vmatprep.subr.bf16.mxu1 %v7753_v7  ;;  %v10873_v25 = vpack.c.bf16 %v4118_v35, %v4111_v0  ;;  %v11919_v16 = vand.u32 4294901760, %v12347_v53  ;;  %v4124_v32 = vsub.f32 %v12344_v23, %v11920_v9 }
 0x6c8   :  { %v4006_v11 = vand.u32 4294901760, %v4005_v63  ;;  %v4131_v48 = vsub.f32 %v12345_v18, %v11917_v57  ;;  %v12348_v37 = vand.u32 4294901760, %v9568_v22  ;;  %v12349_v0 = vand.u32 4294901760, %v9570_v60  ;;  %v12425_v60 = vld [vmem:[#allocation57_spill] sm:$0xff]  ;;  %v12429_v22 = vld [vmem:[#allocation64_spill] sm:$0xff] }
 0x6c9   :  { %2691 = vmatmul.mubr.f32.vlgmr.msra.gmra.mrb[28].mxu1 %v10490_v61  ;;  %v4012_v35 = vsub.f32 %v12346_v28, %v11918_v43  ;;  %v4019_v63 = vsub.f32 %v12347_v53, %v11919_v16  ;;  %v4125_v57 = vand.u32 4294901760, %v4124_v32 }
 0x6ca   :  { %v7759_v7 = vpack.c.bf16 %v12349_v0, %v12348_v37  ;;  %v10888_v56 = vpack.c.bf16 %v4006_v11, %v3999_v38  ;;  %2698 = vmatprep.mubr.f32.mxu1 %v10516_v59  ;;  %7756 = vmatpush3.bf16.msra.mxu1 %v7755_v10  ;;  %v4132_v61 = vand.u32 4294901760, %v4131_v48  ;;  %v12350_v38 = vand.u32 4294901760, %v9616_v1 }
 0x6cb   :  { %7758 = vmatprep.subr.bf16.mxu1 %v7757_v47  ;;  %v12351_v11 = vand.u32 4294901760, %v9635_v13  ;;  %v4013_v0 = vand.u32 4294901760, %v4012_v35  ;;  %v4020_v43 = vand.u32 4294901760, %v4019_v63  ;;  %v12352_v10 = vand.u32 4294901760, %v12245_v20  ;;  %v12361_v35 = vld [vmem:[#allocation88_spill] sm:$0xff] }
 0x6cc   :  { %v10905_v16 = vpack.c.bf16 %v4132_v61, %v4125_v57  ;;  %v12353_v47 = vand.u32 4294901760, %v9650_v40  ;;  %v12354_v57 = vand.u32 4294901760, %v12248_v41  ;;  %v12356_v40 = vand.u32 4294901760, %v12251_v46 }
 0x6cd   :  { %v7761_v37 = vpack.c.bf16 %v12351_v11, %v12350_v38  ;;  %2702 = vmatmul.mubr.f32.gmra.mrb[30].mxu1 %v10546_v39  ;;  %v10908_v59 = vpack.c.bf16 %v4020_v43, %v4013_v0  ;;  %v12355_v39 = vand.u32 4294901760, %v12247_v4  ;;  %v12357_v20 = vand.u32 4294901760, %v12250_v50  ;;  %v12364_v38 = vld [vmem:[#allocation61_spill] sm:$0xff]  ;;  %v12365_v11 = vld [vmem:[#allocation98_spill] sm:$0xff] }
 0x6ce   :  { %2709 = vmatprep.mubr.f32.mxu1 %v10523_v6  ;;  %7760 = vmatpush3.bf16.msra.mxu1 %v7759_v7  ;;  %v7763_v32 = vpack.c.bf16 %v12353_v47, %v12352_v10  ;;  %v12358_v4 = vand.u32 4294901760, %v12255_v44  ;;  %v12359_v41 = vand.u32 4294901760, %v12254_v58  ;;  %v12360_v50 = vand.u32 4294901760, %v12258_v27  ;;  %v12363_v44 = vld [vmem:[#allocation60_spill] sm:$0xff]  ;;  %v12369_v47 = vld [vmem:[#allocation107_spill] sm:$0xff] }
 0x6cf   :  { %7762 = vmatprep.subr.bf16.mxu1 %v7761_v37  ;;  %v7765_v43 = vpack.c.bf16 %v12355_v39, %v12354_v57  ;;  %v7767_v48 = vpack.c.bf16 %v12357_v20, %v12356_v40  ;;  %v12362_v63 = vand.u32 4294901760, %v12361_v35  ;;  %v12367_v37 = vld [vmem:[#allocation106_spill] sm:$0xff]  ;;  %v12371_v57 = vld [vmem:[#allocation109_spill] sm:$0xff]  ;;  %v12374_v27 = vld [vmem:[#allocation63_spill] sm:$0xff]  ;;  %v12412_v46 = vand.u32 4294901760, %v12294_v52 }
 0x6d0   :  { %v12368_v0 = vand.u32 4294901760, %v12367_v37  ;;  %v12372_v39 = vand.u32 4294901760, %v12371_v57  ;;  %v12373_v40 = vld [vmem:[#allocation62_spill] sm:$0xff]  ;;  %v12383_v37 = vld [vmem:[#allocation129_spill] sm:$0xff]  ;;  %v12389_v58 = vld [vmem:[#allocation96_spill] sm:$0xff]  ;;  %v12417_v7 = vand.u32 4294901760, %v12298_v34 }
 0x6d1   :  { %2713 = vmatmul.mubr.f32.gmra.mrb[32].mxu1 %v10571_v30  ;;  %v7769_v30 = vpack.c.bf16 %v12359_v41, %v12358_v4  ;;  %v7771_v61 = vpack.c.bf16 %v12362_v63, %v12360_v50  ;;  %v12377_v41 = vld [vmem:[#allocation119_spill] sm:$0xff]  ;;  %v12379_v35 = vld [vmem:[#allocation122_spill] sm:$0xff]  ;;  %v12420_v6 = vand.u32 4294901760, %v12302_v15  ;;  %v12421_v13 = vand.u32 4294901760, %v12303_v55 }
 0x6d2   :  { %2720 = vmatprep.mubr.f32.mxu1 %v10552_v21  ;;  %7764 = vmatpush3.bf16.msra.mxu1 %v7763_v32  ;;  %v12370_v32 = vand.u32 4294901760, %v12369_v47  ;;  %v12378_v50 = vand.u32 4294901760, %v12377_v41  ;;  %v12380_v63 = vand.u32 4294901760, %v12379_v35  ;;  %v12385_v47 = vld [vmem:[#allocation130_spill] sm:$0xff]  ;;  %v12393_v41 = vld [vmem:[#allocation133_spill] sm:$0xff] }
 0x6d3   :  { %7766 = vmatprep.subr.bf16.mxu1 %v7765_v43  ;;  %v12388_v20 = vld [vmem:[#allocation94_spill] sm:$0xff]  ;;  %v12415_v21 = vld [vmem:[#allocation45_spill] sm:$0xff] }
 0x6d4   :  { %v7775_v43 = vpack.c.bf16 %v12372_v39, %v12370_v32  ;;  %v12386_v32 = vand.u32 4294901760, %v12385_v47  ;;  %v12387_v39 = vld [vmem:[#allocation93_spill] sm:$0xff] }
 0x6d5   :  { %2724 = vmatmul.mubr.f32.gmra.mrb[34].mxu1 %v10593_v54  ;;  %v12366_v54 = vand.u32 4294901760, %v12365_v11  ;;  %v12381_v11 = vld [vmem:[#allocation123_spill] sm:$0xff]  ;;  %v12398_v47 = vld [vmem:[#allocation41_spill] sm:$0xff] }
 0x6d6   :  { %7768 = vmatpush3.bf16.msra.mxu1 %v7767_v48  ;;  %2890 = vmatprep.mubr.f32.mxu1 %v10452_v19  ;;  %v12375_v48 = vld [vmem:[#allocation116_spill] sm:$0xff] }
 0x6d7   :  { %7770 = vmatprep.subr.bf16.mxu1 %v7769_v30  ;;  %v7773_v10 = vpack.c.bf16 %v12368_v0, %v12366_v54  ;;  %v12376_v4 = vand.u32 4294901760, %v12375_v48  ;;  %v12382_v54 = vand.u32 4294901760, %v12381_v11  ;;  %v12384_v0 = vand.u32 4294901760, %v12383_v37  ;;  %v12390_v48 = vld [vmem:[#allocation97_spill] sm:$0xff]  ;;  %v12406_v37 = vld [vmem:[#allocation46_spill] sm:$0xff] }
 0x6d8   :  { %v12407_v11 = vld [vmem:[#allocation34_spill] sm:$0xff] }
 0x6d9   :  { %v7777_v30 = vpack.c.bf16 %v12378_v50, %v12376_v4  ;;  %v7781_v57 = vpack.c.bf16 %v12386_v32, %v12384_v0  ;;  %v12391_v4 = vld [vmem:[#allocation132_spill] sm:$0xff]  ;;  %v12394_v50 = vand.u32 4294901760, %v12393_v41  ;;  %v12397_v0 = vld [vmem:[#allocation31_spill] sm:$0xff] }
 0x6da   :  { %7772 = vmatpush3.bf16.msra.mxu1 %v7771_v61  ;;  %v7779_v61 = vpack.c.bf16 %v12382_v54, %v12380_v63  ;;  %v12395_v63 = vld [vmem:[#allocation112_spill] sm:$0xff]  ;;  %v12396_v54 = vld [vmem:[#allocation23_spill] sm:$0xff] }
 0x6db   :  { %7774 = vmatprep.subr.bf16.mxu1 %v7773_v10  ;;  %v12399_v32 = vld [vmem:[#allocation24_spill] sm:$0xff]  ;;  %v12413_v10 = vand.u32 4294901760, %v12295_v17 }
 0x6de   :  { %7776 = vmatpush3.bf16.msra.mxu1 %v7775_v43  ;;  %v12392_v43 = vand.u32 4294901760, %v12391_v4  ;;  %v12401_v4 = vand.u32 4294901760, %v12283_v49 }
 0x6df   :  { %7778 = vmatprep.subr.bf16.mxu1 %v7777_v30 }
 0x6e0   :  { %v7783_v35 = vpack.c.bf16 %v12394_v50, %v12392_v43  ;;  %v12402_v43 = vand.u32 4294901760, %v12284_v12  ;;  %v12403_v50 = vld [vmem:[#allocation53_spill] sm:$0xff] }
 0x6e2   :  { %7780 = vmatpush3.bf16.msra.mxu1 %v7779_v61  ;;  %v10996_v41 = vpack.c.bf16 %v12402_v43, %v12401_v4  ;;  %v12410_v4 = vld [vmem:[#allocation43_spill] sm:$0xff]  ;;  %v12411_v43 = vld [vmem:[#allocation85_spill] sm:$0xff] }
 0x6e3   :  { %7782 = vmatprep.subr.bf16.mxu1 %v7781_v57  ;;  %v12400_v57 = vld [vmem:[#allocation33_spill] sm:$0xff] }
 0x6e6   :  { %7784 = vmatpush3.bf16.msra.mxu1 %v7783_v35  ;;  %v12404_v35 = vand.u32 4294901760, %v12286_v24 }
 0x6e7   :  { %7786 = vmatprep.subr.bf16.mxu1 %v12396_v54  ;;  %v12405_v54 = vand.u32 4294901760, %v12287_v29 }
 0x6e9   :  { %2892 = vmatmul.mubr.f32.vlgmr.msra.gmra.mrb[36].mxu1 %v12397_v0  ;;  %v11003_v61 = vpack.c.bf16 %v12405_v54, %v12404_v35  ;;  %v11019_v35 = vpack.c.bf16 %v12413_v10, %v12412_v46  ;;  %v12414_v54 = vld [vmem:[#allocation69_spill] sm:$0xff]  ;;  %v11035_v46 = vpack.c.bf16 %v12421_v13, %v12420_v6  ;;  %v12422_v10 = vand.u32 4294901760, %v12306_v8 }
 0x6ea   :  { %2897 = vmatprep.mubr.f32.mxu1 %v12398_v47  ;;  %7788 = vmatpush3.bf16.msra.mxu1 %v12399_v32  ;;  %v12408_v32 = vand.u32 4294901760, %v12289_v36  ;;  %v12430_v13 = vand.u32 4294901760, %v12373_v40  ;;  %v12431_v6 = vand.u32 4294901760, %v12374_v27 }
 0x6eb   :  { %7790 = vmatprep.subr.bf16.mxu1 %v12400_v57  ;;  %v12409_v57 = vand.u32 4294901760, %v12290_v51 }
 0x6ec   :  { %v11056_v9 = vpack.c.bf16 %v12431_v6, %v12430_v13  ;;  %v12441_v13 = vand.u32 4294901760, %v12395_v63  ;;  %v12442_v6 = vand.u32 4294901760, %v12338_v26 }
 0x6ed   :  { %2899 = vmatmul.mubr.f32.gmra.mrb[38].mxu1 %v12403_v50  ;;  %v11011_v30 = vpack.c.bf16 %v12409_v57, %v12408_v32  ;;  %v12418_v57 = vld [vmem:[#allocation54_spill] sm:$0xff] }
 0x6ee   :  { %2904 = vmatprep.mubr.f32.mxu1 %v12406_v37  ;;  %7792 = vmatpush3.bf16.msra.mxu1 %v12407_v11  ;;  %v12416_v11 = vand.u32 4294901760, %v12297_v33 }
 0x6ef   :  { %7794 = vmatprep.subr.bf16.mxu1 %v12410_v4  ;;  %v12419_v4 = vld [vmem:[#allocation67_spill] sm:$0xff] }
 0x6f0   :  { %v11027_v32 = vpack.c.bf16 %v12417_v7, %v12416_v11  ;;  %v12426_v7 = vand.u32 4294901760, %v12363_v44  ;;  %v12427_v11 = vand.u32 4294901760, %v12364_v38 }
 0x6f1   :  { %2906 = vmatmul.mubr.f32.gmra.mrb[40].mxu1 %v12411_v43 }
 0x6f2   :  { %2911 = vmatprep.mubr.f32.mxu1 %v12414_v54  ;;  %7796 = vmatpush3.bf16.msra.mxu1 %v12415_v21  ;;  %v12423_v21 = vand.u32 4294901760, %v12307_v42 }
 0x6f3   :  { %7798 = vmatprep.subr.bf16.mxu1 %v12418_v57  ;;  %v11049_v57 = vpack.c.bf16 %v12427_v11, %v12426_v7  ;;  %v12437_v7 = vand.u32 4294901760, %v12390_v48 }
 0x6f4   :  { %v11041_v1 = vpack.c.bf16 %v12423_v21, %v12422_v10  ;;  %v12432_v10 = vld [vmem:[#allocation82_spill] sm:$0xff]  ;;  %v12433_v21 = vld [vmem:[#allocation105_spill] sm:$0xff] }
 0x6f5   :  { %2913 = vmatmul.mubr.f32.gmra.mrb[42].mxu1 %v12419_v4  ;;  %12428 = vst [vmem:[#allocation15_spill] sm:$0xff] %v11049_v57  ;;  %v12440_v57 = vld [vmem:[#allocation128_spill] sm:$0xff] }
 0x6f6   :  { %12424 = vst [vmem:[#allocation83_spill] sm:$0xff] %v11041_v1  ;;  %7800 = vmatpush3.bf16.msra.mxu1 %v12425_v60  ;;  %3015 = vmatprep.mubr.f32.mxu1 %v10452_v19  ;;  %v12434_v60 = vld [vmem:[#allocation108_spill] sm:$0xff]  ;;  %v12436_v1 = vand.u32 4294901760, %v12389_v58 }
 0x6f7   :  { %7802 = vmatprep.subr.bf16.mxu1 %v12429_v22  ;;  %v12439_v22 = vld [vmem:[#allocation121_spill] sm:$0xff] }
 0x6f8   :  { %v11066_v11 = vpack.c.bf16 %v12437_v7, %v12436_v1  ;;  %v12448_v7 = vand.u32 4294901760, %v12346_v28 }
 0x6fa   :  { %7804 = vmatpush3.bf16.msra.mxu1 %v12432_v10  ;;  %12438 = vst [vmem:[#allocation16_spill] sm:$0xff] %v11066_v11  ;;  %v11074_v10 = vpack.c.bf16 %v12442_v6, %v12441_v13  ;;  %v12451_v13 = vld [vmem:[#allocation7_spill] sm:$0xff]  ;;  %v12453_v6 = vld [vmem:[#allocation9_spill] sm:$0xff] }
 0x6fb   :  { %7806 = vmatprep.subr.bf16.mxu1 %v12433_v21  ;;  %v12444_v21 = vld [vmem:[#allocation6_spill] sm:$0xff] }
 0x6fc   :  { %12443 = vst [vmem:[#allocation17_spill] sm:$0xff] %v11074_v10  ;;  %v12467_v10 = vld [vmem:[#allocation22_spill] sm:$0xff] }
 0x6fe   :  { %7808 = vmatpush3.bf16.msra.mxu1 %v12434_v60  ;;  %v12446_v60 = vand.u32 4294901760, %v12345_v18 }
 0x6ff   :  { %7810 = vmatprep.subr.bf16.mxu1 %v12435_v62  ;;  %v12445_v62 = vand.u32 4294901760, %v12344_v23 }
 0x701   :  { %v11082_v1 = vpack.c.bf16 %v12446_v60, %v12445_v62  ;;  %v12455_v62 = vld [vmem:[#allocation11_spill] sm:$0xff]  ;;  %v12456_v60 = vld [vmem:[#allocation12_spill] sm:$0xff] }
 0x702   :  { %7812 = vmatpush3.bf16.msra.mxu1 %v12439_v22 }
 0x703   :  { %7814 = vmatprep.subr.bf16.mxu1 %v12440_v57  ;;  %12447 = vst [vmem:[#allocation18_spill] sm:$0xff] %v11082_v1  ;;  %v12449_v57 = vand.u32 4294901760, %v12347_v53 }
 0x705   :  { %v11088_v22 = vpack.c.bf16 %v12449_v57, %v12448_v7  ;;  %v12457_v7 = vld [vmem:[#allocation13_spill] sm:$0xff]  ;;  %v12458_v57 = vld [vmem:[#allocation79_spill] sm:$0xff] }
 0x706   :  { %7816 = vmatpush3.bf16.msra.mxu1 %v12343_v14  ;;  %v12452_v14 = vld [vmem:[#allocation8_spill] sm:$0xff] }
 0x707   :  { %7914 = vmatprep.subr.bf16.mxu1 %v12444_v21  ;;  %12450 = vst [vmem:[#allocation26_spill] sm:$0xff] %v11088_v22  ;;  %v12454_v21 = vld [vmem:[#allocation10_spill] sm:$0xff]  ;;  %v12463_v22 = vld [vmem:[#allocation20_spill] sm:$0xff] }
 0x709   :  { %3017 = vmatmul.mubr.f32.vlgmr.msra.gmra.mrb[44].mxu1 %v12397_v0 }
 0x70a   :  { %3022 = vmatprep.mubr.f32.mxu1 %v12398_v47  ;;  %7916 = vmatpush3.bf16.msra.mxu1 %v12451_v13  ;;  %v12459_v13 = vld [vmem:[#allocation14_spill] sm:$0xff] }
 0x70b   :  { %7918 = vmatprep.subr.bf16.mxu1 %v12452_v14 }
 0x70d   :  { %3024 = vmatmul.mubr.f32.gmra.mrb[46].mxu1 %v12403_v50 }
 0x70e   :  { %3029 = vmatprep.mubr.f32.mxu1 %v12406_v37  ;;  %7920 = vmatpush3.bf16.msra.mxu1 %v12453_v6  ;;  %v12461_v6 = vld [vmem:[#allocation19_spill] sm:$0xff] }
 0x70f   :  { %7922 = vmatprep.subr.bf16.mxu1 %v12454_v21 }
 0x711   :  { %3031 = vmatmul.mubr.f32.gmra.mrb[48].mxu1 %v12411_v43 }
 0x712   :  { %3036 = vmatprep.mubr.f32.mxu1 %v12414_v54  ;;  %7924 = vmatpush3.bf16.msra.mxu1 %v12455_v62  ;;  %v12465_v62 = vld [vmem:[#allocation21_spill] sm:$0xff] }
 0x713   :  { %7926 = vmatprep.subr.bf16.mxu1 %v12456_v60 }
 0x715   :  { %3038 = vmatmul.mubr.f32.gmra.mrb[50].mxu1 %v12419_v4 }
 0x716   :  { %7928 = vmatpush3.bf16.msra.mxu1 %v12457_v7  ;;  %3854 = vmatprep.mubr.f32.mxu1 %v12458_v57  ;;  %v12468_v7 = vld [vmem:[#allocation25_spill] sm:$0xff]  ;;  %v12469_v57 = vld [vmem:[#allocation28_spill] sm:$0xff] }
 0x717   :  { %7930 = vmatprep.subr.bf16.mxu1 %v12459_v13  ;;  %v12470_v13 = vld [vmem:[#allocation38_spill] sm:$0xff] }
 0x71a   :  { %7932 = vmatpush3.bf16.msra.mxu1 %v12461_v6  ;;  %v12472_v6 = vld [vmem:[#allocation80_spill] sm:$0xff] }
 0x71b   :  { %7934 = vmatprep.subr.bf16.mxu1 %v12463_v22  ;;  %v12474_v22 = vld [vmem:[#allocation120_spill] sm:$0xff] }
 0x71e   :  { %7936 = vmatpush3.bf16.msra.mxu1 %v12465_v62  ;;  %v12476_v62 = vld [vmem:[#allocation72_spill] sm:$0xff] }
 0x71f   :  { %v11106_v14 = vpop.f32.mrb[8].mxu0  ;;  %7938 = vmatprep.subr.bf16.mxu1 %v12467_v10  ;;  %v12478_v10 = vld [vmem:[#allocation134_spill] sm:$0xff] }
 0x720   :  { %12460 = vst [vmem:[#allocation27_spill] sm:$0xff] %v11106_v14  ;;  %v11109_v21 = vpop.f32.mrb[9].mxu0  ;;  %v12471_v14 = vld [vmem:[#allocation117_spill] sm:$0xff] }
 0x721   :  { %12462 = vst [vmem:[#allocation29_spill] sm:$0xff] %v11109_v21  ;;  %v12473_v21 = vld [vmem:[#allocation99_spill] sm:$0xff] }
 0x722   :  { %7940 = vmatpush3.bf16.msra.mxu1 %v12468_v7  ;;  %v12479_v7 = vld [vmem:[#allocation135_spill] sm:$0xff] }
 0x723   :  { %v11112_v1 = vpop.f32.mrb[10].mxu0  ;;  %7942 = vmatprep.subr.bf16.mxu1 %v12469_v57  ;;  %v12480_v57 = vld [vmem:[#allocation103_spill] sm:$0xff] }
 0x724   :  { %12464 = vst [vmem:[#allocation30_spill] sm:$0xff] %v11112_v1  ;;  %v11115_v60 = vpop.f32.mrb[11].mxu0  ;;  %v12475_v1 = vld [vmem:[#allocation70_spill] sm:$0xff] }
 0x725   :  { %12466 = vst [vmem:[#allocation35_spill] sm:$0xff] %v11115_v60  ;;  %v12477_v60 = vld [vmem:[#allocation71_spill] sm:$0xff] }
 0x726   :  { %7944 = vmatpush3.bf16.msra.mxu1 %v12470_v13  ;;  %v12481_v13 = vld [vmem:[#allocation114_spill] sm:$0xff] }
 0x727   :  { %7946 = vmatprep.subr.bf16.mxu1 %v12471_v14  ;;  %v12482_v14 = vld [vmem:[#allocation44_spill] sm:$0xff] }
 0x729   :  { %3860 = vmatmul.mubr.f32.vlgmr.msra.gmra.mrb[52].mxu1 %v12472_v6  ;;  %v12483_v6 = vld [vmem:[#allocation56_spill] sm:$0xff] }
 0x72a   :  { %3869 = vmatprep.mubr.f32.mxu1 %v12473_v21  ;;  %7948 = vmatpush3.bf16.msra.mxu1 %v12474_v22  ;;  %v12484_v21 = vld [vmem:[#allocation115_spill] sm:$0xff] }
 0x72b   :  { %7950 = vmatprep.subr.bf16.mxu1 %v12475_v1  ;;  %v12485_v22 = vld [vmem:[#allocation55_spill] sm:$0xff] }
 0x72c   :  { %v12486_v1 = vld [vmem:[#allocation59_spill] sm:$0xff] }
 0x72d   :  { %3875 = vmatmul.mubr.f32.gmra.mrb[54].mxu1 %v12476_v62  ;;  %v12487_v62 = vld [vmem:[#allocation66_spill] sm:$0xff] }
 0x72e   :  { %3884 = vmatprep.mubr.f32.mxu1 %v12477_v60  ;;  %7952 = vmatpush3.bf16.msra.mxu1 %v12478_v10 }
 0x72f   :  { %7954 = vmatprep.subr.bf16.mxu1 %v12479_v7  ;;  %v12488_v7 = vld [vmem:[#allocation65_spill] sm:$0xff] }
 0x731   :  { %3890 = vmatmul.mubr.f32.gmra.mrb[56].mxu1 %v12480_v57 }
 0x732   :  { %3899 = vmatprep.mubr.f32.mxu1 %v12481_v13  ;;  %7956 = vmatpush3.bf16.msra.mxu1 %v12482_v14 }
 0x733   :  { %7958 = vmatprep.subr.bf16.mxu1 %v12483_v6 }
 0x735   :  { %3905 = vmatmul.mubr.f32.gmra.mrb[58].mxu1 %v12484_v21 }
 0x736   :  { %7960 = vmatpush3.bf16.msra.mxu1 %v12485_v22  ;;  %4135 = vmatprep.mubr.f32.mxu1 %v10452_v19 }
 0x737   :  { %7962 = vmatprep.subr.bf16.mxu1 %v12486_v1 }
 0x73a   :  { %7964 = vmatpush3.bf16.msra.mxu1 %v12487_v62 }
 0x73b   :  { %7966 = vmatprep.subr.bf16.mxu1 %v12488_v7 }
 0x73c   :  { %v6277_v13 = vpop.f32.mrb[4].mxu1 }
 0x73d   :  { %v6278_v14 = vpop.f32.mrb[5].mxu1 }
 0x73e   :  { %v6279_v11 = vadd.f32 %v6278_v14, %v6277_v13  ;;  %7968 = vmatpush3.bf16.msra.mxu1 %v10869_v31 }
 0x73f   :  { %v6745_v60 = vpop.f32.mrb[12].mxu0  ;;  %7970 = vmatprep.subr.bf16.mxu1 %v10873_v25  ;;  %v12490_v25 = vpack.c.bf16 %v12281_v2, %v12280_v45 }
 0x740   :  { %v6746_v10 = vpop.f32.mrb[13].mxu0 }
 0x741   :  { %v11140_v57 = vadd.f32 %v6746_v10, %v6745_v60 }
 0x742   :  { %7972 = vmatpush3.bf16.msra.mxu1 %v10888_v56  ;;  %v6280_v1 = vpop.f32.mrb[6].mxu1 }
 0x743   :  { %12489 = vst [vmem:[#allocation36_spill] sm:$0xff] %v11140_v57  ;;  %v6748_v6 = vpop.f32.mrb[14].mxu0  ;;  %v6281_v62 = vpop.f32.mrb[7].mxu1  ;;  %7974 = vmatprep.subr.bf16.mxu1 %v10905_v16  ;;  %v12491_v16 = vpack.c.bf16 %v12284_v12, %v12283_v49  ;;  %v12498_v12 = vld [vmem:[#allocation32_spill] sm:$0xff]  ;;  %v12502_v49 = vld [vmem:[#allocation58_spill] sm:$0xff] }
 0x744   :  { %v6749_v21 = vpop.f32.mrb[15].mxu0  ;;  %v6282_v60 = vadd.f32 %v6281_v62, %v6280_v1  ;;  %v12492_v62 = vpack.c.bf16 %v12287_v29, %v12286_v24  ;;  %v12495_v29 = vpack.c.bf16 %v12298_v34, %v12297_v33  ;;  %v12496_v24 = vpack.c.bf16 %v12303_v55, %v12302_v15 }
 0x745   :  { %v11144_v22 = vadd.f32 %v6749_v21, %v6748_v6  ;;  %v12500_v34 = vpack.c.bf16 %v12374_v27, %v12373_v40  ;;  %v12501_v15 = vpack.c.bf16 %v12388_v20, %v12387_v39  ;;  %v12504_v40 = vpack.c.bf16 %v12330_v5, %v12328_v3 }
 0x746   :  { %7976 = vmatpush3.bf16.msra.mxu1 %v10908_v59  ;;  %v6283_v31 = vpop.f32.mrb[8].mxu1 }
 0x747   :  { %v6751_v7 = vpop.f32.mrb[16].mxu0  ;;  %v6284_v13 = vpop.f32.mrb[9].mxu1  ;;  %7978 = vmatprep.subr.bf16.mxu1 %v12490_v25 }
 0x748   :  { %v6752_v10 = vpop.f32.mrb[17].mxu0  ;;  %v6285_v6 = vadd.f32 %v6284_v13, %v6283_v31  ;;  %v12494_v31 = vpack.c.bf16 %v12295_v17, %v12294_v52  ;;  %v12499_v52 = vpack.c.bf16 %v12364_v38, %v12363_v44  ;;  %v2122_v17 = vadd.f32 %v6279_v11, %v12502_v49 }
 0x749   :  { %v11148_v57 = vadd.f32 %v6752_v10, %v6751_v7  ;;  %4137 = vmatmul.mubr.f32.vlgmr.msra.gmra.mrb[60].mxu1 %v12397_v0  ;;  %v12493_v10 = vpack.c.bf16 %v12290_v51, %v12289_v36  ;;  %v12497_v51 = vpack.c.bf16 %v12307_v42, %v12306_v8  ;;  %v12503_v44 = vpack.c.bf16 %v12390_v48, %v12389_v58 }
 0x74a   :  { %4142 = vmatprep.mubr.f32.mxu1 %v12398_v47  ;;  %7980 = vmatpush3.bf16.msra.mxu1 %v12491_v16  ;;  %v6286_v59 = vpop.f32.mrb[10].mxu1  ;;  %v12506_v48 = vpack.c.bf16 %v12345_v18, %v12344_v23 }
 0x74b   :  { %v6754_v14 = vpop.f32.mrb[18].mxu0  ;;  %v6287_v1 = vpop.f32.mrb[11].mxu1  ;;  %7982 = vmatprep.subr.bf16.mxu1 %v12492_v62  ;;  %v12505_v62 = vpack.c.bf16 %v12338_v26, %v12395_v63  ;;  %v12509_v63 = vpack.c.bf16 %v12347_v53, %v12346_v28  ;;  %v12512_v53 = vld [vmem:[#allocation68_spill] sm:$0xff] }
 0x74c   :  { %v6755_v56 = vpop.f32.mrb[19].mxu0  ;;  %v6288_v7 = vadd.f32 %v6287_v1, %v6286_v59  ;;  %v2137_v59 = vadd.f32 %v6282_v60, %v12502_v49 }
 0x74d   :  { %v11155_v21 = vadd.f32 %v6755_v56, %v6754_v14  ;;  %4144 = vmatmul.mubr.f32.gmra.mrb[62].mxu1 %v12403_v50 }
 0x74e   :  { %4149 = vmatprep.mubr.f32.mxu1 %v12406_v37  ;;  %7984 = vmatpush3.bf16.msra.mxu1 %v12493_v10  ;;  %v12507_v10 = vand.u32 4294901760, %v12280_v45 }
 0x74f   :  { %7986 = vmatprep.subr.bf16.mxu1 %v12494_v31  ;;  %v12508_v31 = vand.u32 4294901760, %v12281_v2 }
 0x751   :  { %4151 = vmatmul.mubr.f32.gmra.mrb[64].mxu1 %v12411_v43 }
 0x752   :  { %4156 = vmatprep.mubr.f32.mxu1 %v12414_v54  ;;  %7988 = vmatpush3.bf16.msra.mxu1 %v12495_v29  ;;  %v8041_v29 = vpack.c.bf16 %v12508_v31, %v12507_v10  ;;  %v12525_v10 = vld [vmem:[#allocation18_spill] sm:$0xff] }
 0x753   :  { %7990 = vmatprep.subr.bf16.mxu1 %v12496_v24 }
 0x755   :  { %4158 = vmatmul.mubr.f32.gmra.mrb[66].mxu1 %v12419_v4 }
 0x756   :  { %7992 = vmatpush3.bf16.msra.mxu1 %v12497_v51  ;;  %4293 = vmatprep.mubr.f32.mxu1 %v12498_v12 }
 0x757   :  { %7994 = vmatprep.subr.bf16.mxu1 %v12499_v52  ;;  %v2152_v52 = vadd.f32 %v6285_v6, %v12502_v49  ;;  %v12511_v6 = vld [vmem:[#allocation49_spill] sm:$0xff] }
 0x75a   :  { %7996 = vmatpush3.bf16.msra.mxu1 %v12500_v34 }
 0x75b   :  { %7998 = vmatprep.subr.bf16.mxu1 %v12501_v15  ;;  %v2167_v15 = vadd.f32 %v6288_v7, %v12502_v49  ;;  %v12515_v7 = vld [vmem:[#allocation84_spill] sm:$0xff]  ;;  %v12518_v49 = vld [vmem:[#allocation15_spill] sm:$0xff] }
 0x75c   :  { %v6321_v42 = vpop.f32.mrb[12].mxu1 }
 0x75d   :  { %v6322_v8 = vpop.f32.mrb[13].mxu1 }
 0x75e   :  { %v6323_v13 = vadd.f32 %v6322_v8, %v6321_v42  ;;  %8000 = vmatpush3.bf16.msra.mxu1 %v12503_v44  ;;  %v12513_v8 = vld [vmem:[#allocation52_spill] sm:$0xff] }
 0x75f   :  { %v6833_v36 = vpop.f32.mrb[20].mxu0  ;;  %8002 = vmatprep.subr.bf16.mxu1 %v12504_v40  ;;  %v12523_v40 = vld [vmem:[#allocation16_spill] sm:$0xff] }
 0x760   :  { %v6834_v33 = vpop.f32.mrb[21].mxu0  ;;  %v2399_v27 = vadd.f32 %v6323_v13, %v2122_v17  ;;  %v6324_v56 = vpop.f32.mrb[14].mxu1  ;;  %v12514_v17 = vld [vmem:[#allocation100_spill] sm:$0xff] }
 0x761   :  { %v11194_v55 = vadd.f32 %v6834_v33, %v6833_v36  ;;  %v6325_v16 = vpop.f32.mrb[15].mxu1  ;;  %v12510_v33 = vld [vmem:[#allocation37_spill] sm:$0xff] }
 0x762   :  { %v6326_v1 = vadd.f32 %v6325_v16, %v6324_v56  ;;  %8004 = vmatpush3.bf16.msra.mxu1 %v12505_v62  ;;  %v3743_v16 = vld [vmem:[%s11550_s4 + $0x110] sm:$0xff] }
 0x763   :  { %v6836_v25 = vpop.f32.mrb[22].mxu0  ;;  %8006 = vmatprep.subr.bf16.mxu1 %v12506_v48  ;;  %v4790_v31 = vand.u32 4294901760, %v3743_v16 }
 0x764   :  { %v6837_v38 = vpop.f32.mrb[23].mxu0  ;;  %v2406_v24 = vadd.f32 %v6326_v1, %v2137_v59  ;;  %v6327_v60 = vpop.f32.mrb[16].mxu1  ;;  %v3744_v59 = vld [vmem:[%s11550_s4 + $0x118] sm:$0xff] }
 0x765   :  { %v11203_v14 = vadd.f32 %v6837_v38, %v6836_v25  ;;  %v6328_v12 = vpop.f32.mrb[17].mxu1 }
 0x766   :  { %v6329_v36 = vadd.f32 %v6328_v12, %v6327_v60  ;;  %8008 = vmatpush3.bf16.msra.mxu1 %v12509_v63 }
 0x767   :  { %v6839_v11 = vpop.f32.mrb[24].mxu0  ;;  %8042 = vmatprep.subr.bf16.mxu1 %v8041_v29  ;;  %v4793_v29 = vand.u32 4294901760, %v3744_v59 }
 0x768   :  { %v6840_v58 = vpop.f32.mrb[25].mxu0  ;;  %v11222_v18 = vadd.f32 %v6329_v36, %v2152_v52  ;;  %v6330_v2 = vpop.f32.mrb[18].mxu1  ;;  %v3745_v52 = vld [vmem:[%s11550_s4 + $0x120] sm:$0xff]  ;;  %v3746_v36 = vld [vmem:[%s11550_s4 + $0x128] sm:$0xff] }
 0x769   :  { %v11216_v51 = vadd.f32 %v6840_v58, %v6839_v11  ;;  %v6331_v34 = vpop.f32.mrb[19].mxu1  ;;  %4296 = vmatmul.mubr.f32.vlgmr.msra.gmra.mrb[68].mxu1 %v12510_v33  ;;  %v12524_v58 = vld [vmem:[#allocation17_spill] sm:$0xff] }
 0x76a   :  { %v6332_v42 = vadd.f32 %v6331_v34, %v6330_v2  ;;  %4302 = vmatprep.mubr.f32.mxu1 %v12511_v6  ;;  %8044 = vmatpush3.bf16.msra.mxu1 %v10996_v41  ;;  %v12516_v41 = vld [vmem:[#allocation102_spill] sm:$0xff]  ;;  %v3748_v34 = vld [vmem:[%s11550_s4 + $0x138] sm:$0xff]  ;;  %v11299_v6 = vpack.c.bf16 %v4793_v29, %v4790_v31 }
 0x76b   :  { %v6842_v26 = vpop.f32.mrb[26].mxu0  ;;  %8046 = vmatprep.subr.bf16.mxu1 %v11003_v61  ;;  %v12517_v61 = vld [vmem:[#allocation83_spill] sm:$0xff]  ;;  %v12526_v2 = vld [vmem:[#allocation26_spill] sm:$0xff] }
 0x76c   :  { %v6843_v23 = vpop.f32.mrb[27].mxu0  ;;  %v11231_v28 = vadd.f32 %v6332_v42, %v2167_v15  ;;  %v11294_v15 = vsub.f32 %v3743_v16, %v4790_v31  ;;  %v11296_v42 = vsub.f32 %v3744_v59, %v4793_v29 }
 0x76d   :  { %v11224_v45 = vadd.f32 %v6843_v23, %v6842_v26  ;;  %4305 = vmatmul.mubr.f32.gmra.mrb[70].mxu1 %v12512_v53  ;;  %v4796_v53 = vand.u32 4294901760, %v3745_v52 }
 0x76e   :  { %4311 = vmatprep.mubr.f32.mxu1 %v12513_v8  ;;  %8048 = vmatpush3.bf16.msra.mxu1 %v11011_v30  ;;  %v12519_v30 = vand.u32 4294901760, %v12387_v39  ;;  %v3742_v39 = vld [vmem:[%s11550_s4 + $0x108] sm:$0xff]  ;;  %v4799_v8 = vand.u32 4294901760, %v3746_v36 }
 0x76f   :  { %8050 = vmatprep.subr.bf16.mxu1 %v11019_v35  ;;  %v12520_v35 = vand.u32 4294901760, %v12388_v20  ;;  %v4787_v56 = vand.u32 4294901760, %v3742_v39 }
 0x771   :  { %4314 = vmatmul.mubr.f32.gmra.mrb[72].mxu1 %v12514_v17  ;;  %v8061_v13 = vpack.c.bf16 %v12520_v35, %v12519_v30  ;;  %v11272_v48 = vsub.f32 %v3742_v39, %v4787_v56 }
 0x772   :  { %4320 = vmatprep.mubr.f32.mxu1 %v12515_v7  ;;  %8052 = vmatpush3.bf16.msra.mxu1 %v11027_v32  ;;  %v12521_v32 = vand.u32 4294901760, %v12328_v3 }
 0x773   :  { %8054 = vmatprep.subr.bf16.mxu1 %v11035_v46  ;;  %v12522_v46 = vand.u32 4294901760, %v12330_v5  ;;  %v4906_v33 = vand.u32 4294901760, %v11272_v48 }
 0x775   :  { %4323 = vmatmul.mubr.f32.gmra.mrb[74].mxu1 %v12516_v41  ;;  %v8065_v25 = vpack.c.bf16 %v12522_v46, %v12521_v32  ;;  %v4920_v32 = vand.u32 4294901760, %v11296_v42  ;;  %v11318_v46 = vsub.f32 %v3745_v52, %v4796_v53  ;;  %v12529_v52 = vld [vmem:[#allocation101_spill] sm:$0xff] }
 0x776   :  { %8056 = vmatpush3.bf16.msra.mxu1 %v12517_v61  ;;  %4630 = vmatprep.mubr.f32.mxu1 %v10452_v19  ;;  %v3741_v19 = vld [vmem:[%s11550_s4 + $0x100] sm:$0xff] }
 0x777   :  { %8058 = vmatprep.subr.bf16.mxu1 %v12518_v49  ;;  %v4805_v49 = vand.u32 4294901760, %v3748_v34 }
 0x77a   :  { %8060 = vmatpush3.bf16.msra.mxu1 %v11056_v9  ;;  %v4784_v9 = vand.u32 4294901760, %v3741_v19 }
 0x77b   :  { %8062 = vmatprep.subr.bf16.mxu1 %v8061_v13  ;;  %v4913_v13 = vand.u32 4294901760, %v11294_v15 }
 0x77c   :  { %v6365_v44 = vpop.f32.mrb[20].mxu1  ;;  %v11269_v11 = vsub.f32 %v3741_v19, %v4784_v9 }
 0x77d   :  { %v6366_v38 = vpop.f32.mrb[21].mxu1 }
 0x77e   :  { %v6367_v20 = vadd.f32 %v6366_v38, %v6365_v44  ;;  %8064 = vmatpush3.bf16.msra.mxu1 %v12523_v40  ;;  %v4899_v63 = vand.u32 4294901760, %v11269_v11  ;;  %v4914_v38 = vsub.f32 %v11294_v15, %v4913_v13 }
 0x77f   :  { %8066 = vmatprep.subr.bf16.mxu1 %v8065_v25  ;;  %v11320_v25 = vsub.f32 %v3746_v36, %v4799_v8 }
 0x780   :  { %v11261_v3 = vadd.f32 %v6367_v20, %v2399_v27  ;;  %v6368_v5 = vpop.f32.mrb[22].mxu1  ;;  %v11275_v27 = vpack.c.bf16 %v4787_v56, %v4784_v9  ;;  %v4900_v30 = vsub.f32 %v11269_v11, %v4899_v63  ;;  %v4921_v20 = vsub.f32 %v11296_v42, %v4920_v32 }
 0x781   :  { %v6369_v1 = vpop.f32.mrb[23].mxu1  ;;  %v4915_v56 = vand.u32 4294901760, %v4914_v38  ;;  %v8141_v38 = vpack.c.bf16 %v11296_v42, %v11294_v15  ;;  %v12542_v15 = vld [vmem:[#allocation92_spill] sm:$0xff] }
 0x782   :  { %v6370_v62 = vadd.f32 %v6369_v1, %v6368_v5  ;;  %8068 = vmatpush3.bf16.msra.mxu1 %v12524_v58  ;;  %v4901_v19 = vand.u32 4294901760, %v4900_v30  ;;  %v4922_v5 = vand.u32 4294901760, %v4921_v20  ;;  %v8137_v30 = vpack.c.bf16 %v11272_v48, %v11269_v11 }
 0x783   :  { %8070 = vmatprep.subr.bf16.mxu1 %v12525_v10 }
 0x784   :  { %v11277_v60 = vadd.f32 %v6370_v62, %v2406_v24  ;;  %v6371_v12 = vpop.f32.mrb[24].mxu1  ;;  %v3747_v24 = vld [vmem:[%s11550_s4 + $0x130] sm:$0xff]  ;;  %v8125_v62 = vpack.c.bf16 %v4922_v5, %v4915_v56  ;;  %v12532_v56 = vld [vmem:[#allocation73_spill] sm:$0xff] }
 0x785   :  { %v6372_v26 = vpop.f32.mrb[25].mxu1  ;;  %v4802_v61 = vand.u32 4294901760, %v3747_v24 }
 0x786   :  { %v6373_v23 = vadd.f32 %v6372_v26, %v6371_v12  ;;  %8072 = vmatpush3.bf16.msra.mxu1 %v12526_v2  ;;  %v12528_v12 = vld [vmem:[#allocation89_spill] sm:$0xff] }
 0x787   :  { %8106 = vmatprep.subr.bf16.mxu1 %v11275_v27  ;;  %v11326_v44 = vpack.c.bf16 %v4805_v49, %v4802_v61  ;;  %v11339_v40 = vsub.f32 %v3747_v24, %v4802_v61  ;;  %v12530_v24 = vld [vmem:[#allocation104_spill] sm:$0xff] }
 0x788   :  { %v11302_v17 = vadd.f32 %v6373_v23, %v11222_v18  ;;  %v6374_v7 = vpop.f32.mrb[26].mxu1  ;;  %v4907_v18 = vsub.f32 %v11272_v48, %v4906_v33  ;;  %v12541_v48 = vld [vmem:[#allocation91_spill] sm:$0xff] }
 0x789   :  { %v6375_v41 = vpop.f32.mrb[27].mxu1  ;;  %4632 = vmatmul.mubr.f32.vlgmr.msra.gmra.mrb[76].mxu1 %v12397_v0  ;;  %v11316_v0 = vpack.c.bf16 %v4799_v8, %v4796_v53  ;;  %v4941_v1 = vand.u32 4294901760, %v11339_v40  ;;  %v12531_v53 = vld [vmem:[#allocation75_spill] sm:$0xff] }
 0x78a   :  { %v6376_v35 = vadd.f32 %v6375_v41, %v6374_v7  ;;  %4637 = vmatprep.mubr.f32.mxu1 %v12398_v47  ;;  %8108 = vmatpush3.bf16.msra.mxu1 %v11275_v27  ;;  %v4908_v39 = vand.u32 4294901760, %v4907_v18 }
 0x78b   :  { %8110 = vmatprep.subr.bf16.mxu1 %v11299_v6  ;;  %v4942_v31 = vsub.f32 %v11339_v40, %v4941_v1 }
 0x78c   :  { %v11323_v47 = vadd.f32 %v6376_v35, %v11231_v28  ;;  %v4934_v28 = vand.u32 4294901760, %v11320_v25  ;;  %v8121_v9 = vpack.c.bf16 %v4908_v39, %v4901_v19 }
 0x78d   :  { %4639 = vmatmul.mubr.f32.gmra.mrb[78].mxu1 %v12403_v50  ;;  %v4927_v50 = vand.u32 4294901760, %v11318_v46  ;;  %v4943_v36 = vand.u32 4294901760, %v4942_v31 }
 0x78e   :  { %4644 = vmatprep.mubr.f32.mxu1 %v12406_v37  ;;  %8112 = vmatpush3.bf16.msra.mxu1 %v11299_v6  ;;  %v11341_v37 = vsub.f32 %v3748_v34, %v4805_v49  ;;  %v4935_v59 = vsub.f32 %v11320_v25, %v4934_v28 }
 0x78f   :  { %8114 = vmatprep.subr.bf16.mxu1 %v11316_v0  ;;  %v4928_v16 = vsub.f32 %v11318_v46, %v4927_v50 }
 0x790   :  { %v4936_v10 = vand.u32 4294901760, %v4935_v59 }
 0x791   :  { %4646 = vmatmul.mubr.f32.gmra.mrb[80].mxu1 %v12411_v43  ;;  %v4948_v43 = vand.u32 4294901760, %v11341_v37  ;;  %v4929_v58 = vand.u32 4294901760, %v4928_v16  ;;  %v12533_v16 = vld [vmem:[#allocation78_spill] sm:$0xff] }
 0x792   :  { %4651 = vmatprep.mubr.f32.mxu1 %v12414_v54  ;;  %8116 = vmatpush3.bf16.msra.mxu1 %v11316_v0  ;;  %v12527_v54 = vld [vmem:[#allocation95_spill] sm:$0xff] }
 0x793   :  { %8118 = vmatprep.subr.bf16.mxu1 %v11326_v44  ;;  %v4949_v29 = vsub.f32 %v11341_v37, %v4948_v43  ;;  %v8181_v42 = vpack.c.bf16 %v4948_v43, %v4941_v1 }
 0x795   :  { %4653 = vmatmul.mubr.f32.gmra.mrb[82].mxu1 %v12419_v4  ;;  %v8129_v4 = vpack.c.bf16 %v4936_v10, %v4929_v58  ;;  %v4950_v26 = vand.u32 4294901760, %v4949_v29  ;;  %v12536_v58 = vld [vmem:[#allocation74_spill] sm:$0xff]  ;;  %v12537_v10 = vld [vmem:[#allocation87_spill] sm:$0xff] }
 0x796   :  { %8120 = vmatpush3.bf16.msra.mxu1 %v11326_v44  ;;  %7197 = vmatprep.mubr.f32.mxu1 %v12527_v54  ;;  %v12534_v54 = vld [vmem:[#allocation81_spill] sm:$0xff]  ;;  %v12538_v29 = vld [vmem:[#allocation90_spill] sm:$0xff] }
 0x797   :  { %8122 = vmatprep.subr.bf16.mxu1 %v8121_v9  ;;  %v8133_v8 = vpack.c.bf16 %v4950_v26, %v4943_v36 }
 0x799   :  { %7198 = vmatmul.mubr.f32.vlgmr.msra.gmra.mrb[84].mxu1 %v12528_v12 }
 0x79a   :  { %7200 = vmatprep.mubr.f32.mxu1 %v12529_v52  ;;  %8124 = vmatpush3.bf16.msra.mxu1 %v8121_v9  ;;  %v12539_v52 = vld [vmem:[#allocation86_spill] sm:$0xff] }
 0x79b   :  { %8126 = vmatprep.subr.bf16.mxu1 %v8125_v62 }
 0x79c   :  { %v6409_v23 = vpop.f32.mrb[28].mxu1 }
 0x79d   :  { %v6410_v2 = vpop.f32.mrb[29].mxu1  ;;  %7201 = vmatmul.mubr.f32.gmra.mrb[86].mxu1 %v12530_v24 }
 0x79e   :  { %v6411_v34 = vadd.f32 %v6410_v2, %v6409_v23  ;;  %8128 = vmatpush3.bf16.msra.mxu1 %v8125_v62  ;;  %7219 = vmatprep.mubr.f32.mxu1 %v12531_v53  ;;  %v12535_v62 = vld [vmem:[#allocation77_spill] sm:$0xff]  ;;  %v8169_v2 = vpack.c.bf16 %v4906_v33, %v4899_v63  ;;  %v8177_v63 = vpack.c.bf16 %v4934_v28, %v4927_v50 }
 0x79f   :  { %8130 = vmatprep.subr.bf16.mxu1 %v8129_v4 }
 0x7a0   :  { %v2693_v7 = vadd.f32 %v6411_v34, %v11261_v3  ;;  %v6412_v41 = vpop.f32.mrb[30].mxu1 }
 0x7a1   :  { %v6413_v61 = vpop.f32.mrb[31].mxu1 }
 0x7a2   :  { %v6414_v49 = vadd.f32 %v6413_v61, %v6412_v41  ;;  %8132 = vmatpush3.bf16.msra.mxu1 %v8129_v4 }
 0x7a3   :  { %8134 = vmatprep.subr.bf16.mxu1 %v8133_v8 }
 0x7a4   :  { %v2704_v35 = vadd.f32 %v6414_v49, %v11277_v60  ;;  %v6415_v18 = vpop.f32.mrb[32].mxu1  ;;  %v8145_v60 = vpack.c.bf16 %v11320_v25, %v11318_v46 }
 0x7a5   :  { %v6416_v19 = vpop.f32.mrb[33].mxu1 }
 0x7a6   :  { %v6417_v39 = vadd.f32 %v6416_v19, %v6415_v18  ;;  %8136 = vmatpush3.bf16.msra.mxu1 %v8133_v8  ;;  %v12540_v18 = vld [vmem:[#allocation76_spill] sm:$0xff]  ;;  %v12544_v19 = vld [vmem:[#allocation27_spill] sm:$0xff] }
 0x7a7   :  { %8138 = vmatprep.subr.bf16.mxu1 %v8137_v30 }
 0x7a8   :  { %v2715_v3 = vadd.f32 %v6417_v39, %v11302_v17  ;;  %v6418_v20 = vpop.f32.mrb[34].mxu1  ;;  %v8149_v17 = vpack.c.bf16 %v11341_v37, %v11339_v40  ;;  %v12543_v40 = vld [vmem:[#allocation29_spill] sm:$0xff] }
 0x7a9   :  { %v6419_v9 = vpop.f32.mrb[35].mxu1  ;;  %7220 = vmatmul.mubr.f32.vlgmr.msra.gmra.mrb[84].mxu1 %v12532_v56 }
 0x7aa   :  { %v6420_v5 = vadd.f32 %v6419_v9, %v6418_v20  ;;  %7222 = vmatprep.mubr.f32.mxu1 %v12533_v16  ;;  %8140 = vmatpush3.bf16.msra.mxu1 %v8137_v30  ;;  %v12545_v20 = vld [vmem:[#allocation35_spill] sm:$0xff] }
 0x7ab   :  { %8142 = vmatprep.subr.bf16.mxu1 %v8141_v38 }
 0x7ac   :  { %v2726_v59 = vadd.f32 %v6420_v5, %v11323_v47 }
 0x7ad   :  { %7223 = vmatmul.mubr.f32.gmra.mrb[86].mxu1 %v12534_v54 }
 0x7ae   :  { %8144 = vmatpush3.bf16.msra.mxu1 %v8141_v38  ;;  %7241 = vmatprep.mubr.f32.mxu1 %v12535_v62 }
 0x7af   :  { %8146 = vmatprep.subr.bf16.mxu1 %v8145_v60 }
 0x7b2   :  { %8148 = vmatpush3.bf16.msra.mxu1 %v8145_v60  ;;  %v12546_v60 = vld [vmem:[#allocation30_spill] sm:$0xff] }
 0x7b3   :  { %8150 = vmatprep.subr.bf16.mxu1 %v8149_v17 }
 0x7b6   :  { %8152 = vmatpush3.bf16.msra.mxu1 %v8149_v17 }
 0x7b7   :  { %8154 = vmatprep.subr.bf16.mxu1 %v11275_v27 }
 0x7b9   :  { %7242 = vmatmul.mubr.f32.vlgmr.msra.gmra.mrb[84].mxu1 %v12536_v58 }
 0x7ba   :  { %7244 = vmatprep.mubr.f32.mxu1 %v12537_v10  ;;  %8156 = vmatpush3.bf16.msra.mxu1 %v11275_v27 }
 0x7bb   :  { %8158 = vmatprep.subr.bf16.mxu1 %v11299_v6 }
 0x7bc   :  { %v6453_v47 = vpop.f32.mrb[36].mxu1 }
 0x7bd   :  { %v6454_v31 = vpop.f32.mrb[37].mxu1  ;;  %7245 = vmatmul.mubr.f32.gmra.mrb[86].mxu1 %v12538_v29 }
 0x7be   :  { %v6455_v12 = vadd.f32 %v6454_v31, %v6453_v47  ;;  %8160 = vmatpush3.bf16.msra.mxu1 %v11299_v6  ;;  %7263 = vmatprep.mubr.f32.mxu1 %v12539_v52 }
 0x7bf   :  { %8162 = vmatprep.subr.bf16.mxu1 %v11316_v0 }
 0x7c0   :  { %v2894_v4 = vadd.f32 %v6455_v12, %v2693_v7  ;;  %v6456_v36 = vpop.f32.mrb[38].mxu1  ;;  %v8173_v7 = vpack.c.bf16 %v4920_v32, %v4913_v13 }
 0x7c1   :  { %v6457_v26 = vpop.f32.mrb[39].mxu1 }
 0x7c2   :  { %v6458_v23 = vadd.f32 %v6457_v26, %v6456_v36  ;;  %8164 = vmatpush3.bf16.msra.mxu1 %v11316_v0  ;;  %v3751_v36 = vpop.permute.xlu0 %3750 }
 0x7c3   :  { %8166 = vmatprep.subr.bf16.mxu1 %v11326_v44 }
 0x7c4   :  { %v2901_v24 = vadd.f32 %v6458_v23, %v2704_v35  ;;  %v6459_v34 = vpop.f32.mrb[40].mxu1 }
 0x7c5   :  { %v6460_v8 = vpop.f32.mrb[41].mxu1 }
 0x7c6   :  { %v6461_v41 = vadd.f32 %v6460_v8, %v6459_v34  ;;  %8168 = vmatpush3.bf16.msra.mxu1 %v11326_v44 }
 0x7c7   :  { %8170 = vmatprep.subr.bf16.mxu1 %v8169_v2 }
 0x7c8   :  { %v2908_v61 = vadd.f32 %v6461_v41, %v2715_v3  ;;  %v6462_v49 = vpop.f32.mrb[42].mxu1 }
 0x7c9   :  { %v6463_v30 = vpop.f32.mrb[43].mxu1  ;;  %7264 = vmatmul.mubr.f32.vlgmr.msra.gmra.mrb[84].mxu1 %v12540_v18 }
 0x7ca   :  { %v6464_v11 = vadd.f32 %v6463_v30, %v6462_v49  ;;  %7266 = vmatprep.mubr.f32.mxu1 %v12541_v48  ;;  %8172 = vmatpush3.bf16.msra.mxu1 %v8169_v2 }
 0x7cb   :  { %8174 = vmatprep.subr.bf16.mxu1 %v8173_v7 }
 0x7cc   :  { %v2915_v33 = vadd.f32 %v6464_v11, %v2726_v59 }
 0x7cd   :  { %7267 = vmatmul.mubr.f32.gmra.mrb[86].mxu1 %v12542_v15 }
 0x7ce   :  { %8176 = vmatpush3.bf16.msra.mxu1 %v8173_v7  ;;  %7285 = vmatprep.mubr.f32.mxu1 %v12531_v53 }
 0x7cf   :  { %8178 = vmatprep.subr.bf16.mxu1 %v8177_v63 }
 0x7d2   :  { %8180 = vmatpush3.bf16.msra.mxu1 %v8177_v63 }
 0x7d3   :  { %8182 = vmatprep.subr.bf16.mxu1 %v8181_v42 }
 0x7d6   :  { %8184 = vmatpush3.bf16.msra.mxu1 %v8181_v42 }
 0x7d7   :  { %8186 = vmatprep.subr.bf16.mxu1 %v11275_v27 }
 0x7d9   :  { %7286 = vmatmul.mubr.f32.vlgmr.msra.gmra.mrb[84].mxu1 %v12532_v56 }
 0x7da   :  { %7288 = vmatprep.mubr.f32.mxu1 %v12533_v16  ;;  %8188 = vmatpush3.bf16.msra.mxu1 %v11275_v27 }
 0x7db   :  { %8190 = vmatprep.subr.bf16.mxu1 %v11299_v6 }
 0x7dc   :  { %v6497_v13 = vpop.f32.mrb[44].mxu1 }
 0x7dd   :  { %v6498_v32 = vpop.f32.mrb[45].mxu1  ;;  %7289 = vmatmul.mubr.f32.gmra.mrb[86].mxu1 %v12534_v54 }
 0x7de   :  { %v6499_v46 = vadd.f32 %v6498_v32, %v6497_v13  ;;  %8192 = vmatpush3.bf16.msra.mxu1 %v11299_v6  ;;  %7307 = vmatprep.mubr.f32.mxu1 %v12531_v53 }
 0x7df   :  { %8194 = vmatprep.subr.bf16.mxu1 %v11316_v0 }
 0x7e0   :  { %v3019_v25 = vadd.f32 %v6499_v46, %v2894_v4  ;;  %v6500_v50 = vpop.f32.mrb[46].mxu1 }
 0x7e1   :  { %v6501_v28 = vpop.f32.mrb[47].mxu1 }
 0x7e2   :  { %v11426_v37 = vadd.f32 %v12543_v40, %v3019_v25  ;;  %v6502_v27 = vadd.f32 %v6501_v28, %v6500_v50  ;;  %8196 = vmatpush3.bf16.msra.mxu1 %v11316_v0 }
 0x7e3   :  { %8198 = vmatprep.subr.bf16.mxu1 %v11326_v44 }
 0x7e4   :  { %v3026_v1 = vadd.f32 %v6502_v27, %v2901_v24  ;;  %v6503_v43 = vpop.f32.mrb[48].mxu1  ;;  %v12547_v27 = vld [vmem:[#allocation36_spill] sm:$0xff] }
 0x7e5   :  { %v6504_v35 = vpop.f32.mrb[49].mxu1 }
 0x7e6   :  { %v11431_v6 = vadd.f32 %v12544_v19, %v3026_v1  ;;  %v6505_v53 = vadd.f32 %v6504_v35, %v6503_v43  ;;  %8200 = vmatpush3.bf16.msra.mxu1 %v11326_v44 }
 0x7e8   :  { %v3033_v39 = vadd.f32 %v6505_v53, %v2908_v61  ;;  %v6506_v38 = vpop.f32.mrb[50].mxu1 }
 0x7e9   :  { %v6507_v3 = vpop.f32.mrb[51].mxu1  ;;  %7308 = vmatmul.mubr.f32.vlgmr.msra.gmra.mrb[84].mxu1 %v12532_v56 }
 0x7ea   :  { %v11436_v9 = vadd.f32 %v12545_v20, %v3033_v39  ;;  %v6508_v0 = vadd.f32 %v6507_v3, %v6506_v38  ;;  %7310 = vmatprep.mubr.f32.mxu1 %v12533_v16 }
 0x7ec   :  { %v3040_v5 = vadd.f32 %v6508_v0, %v2915_v33 }
 0x7ed   :  { %7311 = vmatmul.mubr.f32.gmra.mrb[86].mxu1 %v12534_v54 }
 0x7ee   :  { %v11441_v59 = vadd.f32 %v12546_v60, %v3040_v5 }
 0x7fc   :  { %v6613_v62 = vpop.f32.mrb[52].mxu1 }
 0x7fd   :  { %v6614_v17 = vpop.f32.mrb[53].mxu1 }
 0x7fe   :  { %v6615_v44 = vadd.f32 %v6614_v17, %v6613_v62 }
 0x800   :  { %v6616_v58 = vpop.f32.mrb[54].mxu1  ;;  %v3862_v23 = vadd.f32 %v6615_v44, %v3751_v36 }
 0x801   :  { %v6617_v10 = vpop.f32.mrb[55].mxu1 }
 0x802   :  { %v6618_v47 = vadd.f32 %v6617_v10, %v6616_v58 }
 0x804   :  { %v6619_v31 = vpop.f32.mrb[56].mxu1  ;;  %v3877_v8 = vadd.f32 %v6618_v47, %v3751_v36 }
 0x805   :  { %v6620_v56 = vpop.f32.mrb[57].mxu1 }
 0x806   :  { %v6621_v29 = vadd.f32 %v6620_v56, %v6619_v31 }
 0x808   :  { %v6622_v12 = vpop.f32.mrb[58].mxu1  ;;  %v3892_v30 = vadd.f32 %v6621_v29, %v3751_v36 }
 0x809   :  { %v6623_v52 = vpop.f32.mrb[59].mxu1 }
 0x80a   :  { %v6624_v4 = vadd.f32 %v6623_v52, %v6622_v12 }
 0x80c   :  { %v3907_v33 = vadd.f32 %v6624_v4, %v3751_v36 }
 0x81c   :  { %v6657_v16 = vpop.f32.mrb[60].mxu1 }
 0x81d   :  { %v6658_v26 = vpop.f32.mrb[61].mxu1 }
 0x81e   :  { %v6659_v54 = vadd.f32 %v6658_v26, %v6657_v16 }
 0x820   :  { %v4139_v2 = vadd.f32 %v6659_v54, %v3862_v23  ;;  %v6660_v24 = vpop.f32.mrb[62].mxu1 }
 0x821   :  { %v6661_v34 = vpop.f32.mrb[63].mxu1 }
 0x822   :  { %v6662_v41 = vadd.f32 %v6661_v34, %v6660_v24  ;;  %v5535_v24 = vld [vmem:[%s11551_s5] sm:$0xff] }
 0x823   :  { %v5556_v34 = vand.u32 4294901760, %v5535_v24 }
 0x824   :  { %v4146_v7 = vadd.f32 %v6662_v41, %v3877_v8  ;;  %v6663_v61 = vpop.f32.mrb[64].mxu1 }
 0x825   :  { %v6664_v49 = vpop.f32.mrb[65].mxu1 }
 0x826   :  { %v6665_v18 = vadd.f32 %v6664_v49, %v6663_v61  ;;  %v5666_v49 = vsub.f32 %v5535_v24, %v5556_v34 }
 0x828   :  { %v4153_v11 = vadd.f32 %v6665_v18, %v3892_v30  ;;  %v6666_v48 = vpop.f32.mrb[66].mxu1  ;;  %v5667_v18 = vand.u32 4294901760, %v5666_v49 }
 0x829   :  { %v6667_v63 = vpop.f32.mrb[67].mxu1 }
 0x82a   :  { %v6668_v15 = vadd.f32 %v6667_v63, %v6666_v48 }
 0x82c   :  { %v4160_v42 = vadd.f32 %v6668_v15, %v3907_v33  ;;  %v5668_v33 = vsub.f32 %v5666_v49, %v5667_v18 }
 0x83c   :  { %v6701_v13 = vpop.f32.mrb[68].mxu1 }
 0x83d   :  { %v6702_v32 = vpop.f32.mrb[69].mxu1 }
 0x83e   :  { %v6703_v46 = vadd.f32 %v6702_v32, %v6701_v13  ;;  %v5669_v32 = vand.u32 4294901760, %v5668_v33 }
 0x840   :  { %v4298_v25 = vadd.f32 %v6703_v46, %v4139_v2  ;;  %v6704_v50 = vpop.f32.mrb[70].mxu1 }
 0x841   :  { %v6705_v28 = vpop.f32.mrb[71].mxu1 }
 0x842   :  { %v6706_v40 = vadd.f32 %v6705_v28, %v6704_v50  ;;  %v4433_v1 = vadd.f32 %v12547_v27, %v4298_v25 }
 0x844   :  { %v4307_v43 = vadd.f32 %v6706_v40, %v4146_v7  ;;  %v6707_v35 = vpop.f32.mrb[72].mxu1 }
 0x845   :  { %v6708_v19 = vpop.f32.mrb[73].mxu1 }
 0x846   :  { %v6709_v53 = vadd.f32 %v6708_v19, %v6707_v35  ;;  %v4444_v39 = vadd.f32 %v11144_v22, %v4307_v43 }
 0x848   :  { %v4316_v38 = vadd.f32 %v6709_v53, %v4153_v11  ;;  %v6710_v3 = vpop.f32.mrb[74].mxu1 }
 0x849   :  { %v6711_v20 = vpop.f32.mrb[75].mxu1 }
 0x84a   :  { %v6712_v0 = vadd.f32 %v6711_v20, %v6710_v3  ;;  %v4455_v5 = vadd.f32 %v11148_v57, %v4316_v38 }
 0x84c   :  { %v4325_v60 = vadd.f32 %v6712_v0, %v4160_v42 }
 0x84e   :  { %v4466_v62 = vadd.f32 %v11155_v21, %v4325_v60 }
 0x85c   :  { %v6789_v17 = vpop.f32.mrb[76].mxu1 }
 0x85d   :  { %v6790_v44 = vpop.f32.mrb[77].mxu1 }
 0x85e   :  { %v6791_v58 = vadd.f32 %v6790_v44, %v6789_v17 }
 0x860   :  { %v4634_v10 = vadd.f32 %v6791_v58, %v4433_v1  ;;  %v6792_v47 = vpop.f32.mrb[78].mxu1 }
 0x861   :  { %v6793_v31 = vpop.f32.mrb[79].mxu1 }
 0x862   :  { %v6794_v56 = vadd.f32 %v6793_v31, %v6792_v47  ;;  %v4759_v29 = vadd.f32 %v11194_v55, %v4634_v10  ;;  %v5536_v55 = vld [vmem:[%s11551_s5 + $0x8] sm:$0xff] }
 0x863   :  { %v5559_v8 = vand.u32 4294901760, %v5536_v55 }
 0x864   :  { %v4641_v12 = vadd.f32 %v6794_v56, %v4444_v39  ;;  %v6795_v22 = vpop.f32.mrb[80].mxu1 }
 0x865   :  { %v6796_v52 = vpop.f32.mrb[81].mxu1  ;;  %v11463_v7 = vpack.c.bf16 %v5559_v8, %v5556_v34  ;;  %v5673_v30 = vsub.f32 %v5536_v55, %v5559_v8 }
 0x866   :  { %v6797_v4 = vadd.f32 %v6796_v52, %v6795_v22  ;;  %v4766_v36 = vadd.f32 %v11203_v14, %v4641_v12  ;;  %v5537_v14 = vld [vmem:[%s11551_s5 + $0x10] sm:$0xff] }
 0x867   :  { %v5562_v41 = vand.u32 4294901760, %v5537_v14  ;;  %8202 = vmatprep.subr.bf16.mxu0 %v11463_v7  ;;  %v5674_v11 = vand.u32 4294901760, %v5673_v30  ;;  %v11471_v28 = vpack.c.bf16 %v5673_v30, %v5666_v49 }
 0x868   :  { %v4648_v16 = vadd.f32 %v6797_v4, %v4455_v5  ;;  %v6798_v57 = vpop.f32.mrb[82].mxu1  ;;  %8204 = vmatpush3.bf16.msra.mxu0 %v11463_v7 }
 0x869   :  { %v6799_v26 = vpop.f32.mrb[83].mxu1  ;;  %v5680_v48 = vsub.f32 %v5537_v14, %v5562_v41  ;;  %v5675_v15 = vsub.f32 %v5673_v30, %v5674_v11  ;;  %v11480_v5 = vpack.c.bf16 %v5674_v11, %v5667_v18 }
 0x86a   :  { %v6800_v23 = vadd.f32 %v6799_v26, %v6798_v57  ;;  %v4773_v21 = vadd.f32 %v11216_v51, %v4648_v16  ;;  %v5538_v51 = vld [vmem:[%s11551_s5 + $0x18] sm:$0xff] }
 0x86b   :  { %v5681_v42 = vand.u32 4294901760, %v5680_v48  ;;  %v5676_v46 = vand.u32 4294901760, %v5675_v15 }
 0x86c   :  { %v4655_v54 = vadd.f32 %v6800_v23, %v4466_v62 }
 0x86d   :  { %v5682_v25 = vsub.f32 %v5680_v48, %v5681_v42  ;;  %v11473_v40 = vpack.c.bf16 %v5676_v46, %v5669_v32 }
 0x86e   :  { %v4780_v2 = vadd.f32 %v11224_v45, %v4655_v54  ;;  %v5565_v45 = vand.u32 4294901760, %v5538_v51 }
 0x86f   :  { %v5683_v27 = vand.u32 4294901760, %v5682_v25 }
 0x870   :  { %v11465_v61 = vpack.c.bf16 %v5565_v45, %v5562_v41  ;;  %v5687_v63 = vsub.f32 %v5538_v51, %v5565_v45 }
 0x872   :  { %8206 = vmatprep.subr.bf16.mxu0 %v11465_v61  ;;  %v5688_v13 = vand.u32 4294901760, %v5687_v63  ;;  %v11478_v35 = vpack.c.bf16 %v5687_v63, %v5680_v48 }
 0x873   :  { %8208 = vmatpush3.bf16.msra.mxu0 %v11465_v61 }
 0x874   :  { %v5689_v50 = vsub.f32 %v5687_v63, %v5688_v13  ;;  %8210 = vmatprep.subr.bf16.mxu0 %v11473_v40  ;;  %v11482_v10 = vpack.c.bf16 %v5688_v13, %v5681_v42 }
 0x876   :  { %v5690_v1 = vand.u32 4294901760, %v5689_v50 }
 0x878   :  { %v11476_v43 = vpack.c.bf16 %v5690_v1, %v5683_v27 }
 0x8bc   :  { %v7309_v19 = vpop.f32.mrb[84].mxu1 }
 0x8bd   :  { %v8261_v53 = vadd.f32 %v7309_v19, %v4766_v36  ;;  %v5427_v39 = vpop.f32.mrb[85].mxu1 }
 0x8be   :  { %v8262_v38 = vadd.f32 %v5427_v39, %v4759_v29 }
 0x8bf   :  { %v6194_v3 = vmul.f32 -1.442695, %v8261_v53 }
 0x8c0   :  { %v6193_v20 = vmul.f32 -1.442695, %v8262_v38  ;;  %v7312_v0 = vpop.f32.mrb[86].mxu1 }
 0x8c1   :  { %8424 = vpow2.f32 %v6194_v3  ;;  %v8263_v60 = vadd.f32 %v7312_v0, %v4780_v2  ;;  %v5439_v62 = vpop.f32.mrb[87].mxu1 }
 0x8c2   :  { %8426 = vpow2.f32 %v6193_v20  ;;  %v8264_v17 = vadd.f32 %v5439_v62, %v4773_v21 }
 0x8c3   :  { %v6196_v44 = vmul.f32 -1.442695, %v8263_v60 }
 0x8c4   :  { %v6195_v58 = vmul.f32 -1.442695, %v8264_v17  ;;  %v12548_v17 = vld [vmem:[#allocation5_spill] sm:$0xff] }
 0x8c5   :  { %8428 = vpow2.f32 %v6196_v44  ;;  %v5521_v44 = vsub.s32 3, %v12548_v17 }
 0x8c6   :  { %8430 = vpow2.f32 %v6195_v58  ;;  %v5529_v58 = vsub.s32 4, %v12548_v17 }
 0x8cb   :  { %v8425_v47 = vpop.eup %8424 }
 0x8cc   :  { %v8427_v31 = vpop.eup %8426  ;;  %v5462_v56 = vadd.f32 1.0, %v8425_v47  ;;  %v11501_v47 = vld [vmem:[%s11552_s6] sm:$0xff]  ;;  %s8472_s6 = smov [#allocation2]  }
 0x8cd   :  { %v5461_v29 = vadd.f32 1.0, %v8427_v31  ;;  %v5522_v31 = vrot.slane %v11501_v47, %v5521_v44  ;;  %s6178_s14 = sshll.u32 %s8472_s6, 4  ;;  %s6179_s14 = int_to_ptr.vmem [resolvable:$true] %s6178_s14 }
 0x8ce   :  { %8432 = vrcp.f32 %v5462_v56  ;;  %s8444_s3 = scalar_lea.vmem %s6179_s14, 512  ;;  %p8449_p1 = scmp.lt.s32.totalorder %s6179_s14, %s6179_s14 }
 0x8cf   :  { %v8429_v12 = vpop.eup %8428  ;;  %8434 = vrcp.f32 %v5461_v29  ;;  %v5530_v29 = vrot.slane %v11501_v47, %v5529_v58  ;;  %p8445_p0 = scmp.ne.s32.totalorder %s6179_s14, %s8444_s3  ;;  %p8450_p2 = scmp.lt.s32.totalorder %s8444_s3, %s8444_s3 }
 0x8d0   :  { %v8431_v22 = vpop.eup %8430  ;;  %v5464_v52 = vadd.f32 1.0, %v8429_v12 }
 0x8d1   :  { %v5463_v4 = vadd.f32 1.0, %v8431_v22  ;;  %p8451_p3 = por %p8450_p2, %p8449_p1 }
 0x8d2   :  { %8436 = vrcp.f32 %v5464_v52 }
 0x8d3   :  { %8438 = vrcp.f32 %v5463_v4  ;;  %p8452_p4 = pnand %p8451_p3, %p8445_p0 }
 0x8d8   :  { %v8433_v36 = vpop.eup %8432 }
 0x8d9   :  { %v8435_v16 = vpop.eup %8434  ;;  %v5474_v57 = vmul.f32 %v8433_v36, %v11431_v6 }
 0x8da   :  { %v5473_v26 = vmul.f32 %v8435_v16, %v11426_v37 }
 0x8db   :  { %v5478_v23 = vsel %vm137_vm4, %v5474_v57, 0.0 }
 0x8dc   :  { %v8437_v21 = vpop.eup %8436  ;;  %v5477_v54 = vsel %vm137_vm4, %v5473_v26, 0.0 }
 0x8dd   :  { %v8439_v2 = vpop.eup %8438  ;;  %v5479_v24 = vadd.f32 %v5478_v23, %v5477_v54  ;;  %v5476_v55 = vmul.f32 %v8437_v21, %v11441_v59 }
 0x8de   :  { %v5475_v14 = vmul.f32 %v8439_v2, %v11436_v9 }
 0x8df   :  { %v5482_v51 = vsel %vm137_vm4, %v5476_v55, 0.0 }
 0x8e0   :  { %v5480_v34 = vsel %vm137_vm4, %v5475_v14, 0.0 }
 0x8e1   :  { %v5481_v8 = vadd.f32 %v5480_v34, %v5479_v24 }
 0x8e3   :  { %v5483_v41 = vadd.f32 %v5482_v51, %v5481_v8 }
 0x8e5   :  { %v5484_v6 = vrot.slane %v5483_v41, 4 }
 0x8e7   :  { %v5485_v45 = vadd.f32 %v5484_v6, %v5483_v41 }
 0x8e9   :  { %v5486_v37 = vrot.slane %v5485_v45, 2 }
 0x8eb   :  { %v5487_v49 = vadd.f32 %v5486_v37, %v5485_v45 }
 0x8ed   :  { %v5488_v30 = vrot.slane %v5487_v49, 1 }
 0x8ef   :  { %v5489_v18 = vadd.f32 %v5488_v30, %v5487_v49 }
 0x8f1   :  { %v5490_v11 = vmul.f32 0.03125, %v5489_v18 }
 0x8f3   :  { %v5493_v48 = vsub.f32 %v5475_v14, %v5490_v11  ;;  %v5491_v63 = vsub.f32 %v5473_v26, %v5490_v11  ;;  %v5492_v33 = vsub.f32 %v5474_v57, %v5490_v11  ;;  %v5494_v15 = vsub.f32 %v5476_v55, %v5490_v11 }
 0x8f5   :  { %v5497_v59 = vmul.f32 %v5493_v48, %v5493_v48  ;;  %v5495_v42 = vmul.f32 %v5491_v63, %v5491_v63  ;;  %v5496_v9 = vmul.f32 %v5492_v33, %v5492_v33  ;;  %v5498_v13 = vmul.f32 %v5494_v15, %v5494_v15 }
 0x8f7   :  { %v5499_v32 = vsel %vm137_vm4, %v5495_v42, 0.0  ;;  %v5500_v46 = vsel %vm137_vm4, %v5496_v9, 0.0  ;;  %v5502_v50 = vsel %vm137_vm4, %v5497_v59, 0.0  ;;  %v5504_v1 = vsel %vm137_vm4, %v5498_v13, 0.0 }
 0x8f8   :  { %v5501_v25 = vadd.f32 %v5500_v46, %v5499_v32 }
 0x8fa   :  { %v5503_v27 = vadd.f32 %v5502_v50, %v5501_v25 }
 0x8fc   :  { %v5505_v19 = vadd.f32 %v5504_v1, %v5503_v27 }
 0x8fe   :  { %v5506_v53 = vrot.slane %v5505_v19, 4 }
 0x900   :  { %v5507_v39 = vadd.f32 %v5506_v53, %v5505_v19 }
 0x902   :  { %v5508_v38 = vrot.slane %v5507_v39, 2 }
 0x904   :  { %v5509_v3 = vadd.f32 %v5508_v38, %v5507_v39 }
 0x906   :  { %v5510_v20 = vrot.slane %v5509_v3, 1 }
 0x908   :  { %v5511_v0 = vadd.f32 %v5510_v20, %v5509_v3 }
 0x90a   :  { %v5512_v60 = vmul.f32 0.03125, %v5511_v0 }
 0x90c   :  { %v5513_v62 = vadd.f32 1e-05, %v5512_v60 }
 0x90e   :  { %8440 = vrsqrt.f32 %v5513_v62 }
 0x918   :  { %v8441_v56 = vpop.eup %8440 }
 0x919   :  { %v5515_v12 = vmul.f32 %v8441_v56, %v5491_v63  ;;  %v5516_v22 = vmul.f32 %v8441_v56, %v5492_v33  ;;  %v5517_v52 = vmul.f32 %v8441_v56, %v5493_v48  ;;  %v5518_v4 = vmul.f32 %v8441_v56, %v5494_v15 }
 0x91b   :  { %v5523_v36 = vmul.f32 %v5522_v31, %v5515_v12  ;;  %v5524_v16 = vmul.f32 %v5522_v31, %v5516_v22  ;;  %v5525_v57 = vmul.f32 %v5522_v31, %v5517_v52  ;;  %v5526_v26 = vmul.f32 %v5522_v31, %v5518_v4 }
 0x91d   :  { %v5531_v23 = vadd.f32 %v5530_v29, %v5523_v36  ;;  %v5532_v21 = vadd.f32 %v5530_v29, %v5524_v16  ;;  %v5533_v54 = vadd.f32 %v5530_v29, %v5525_v57  ;;  %v5534_v2 = vadd.f32 %v5530_v29, %v5526_v26 }
 0x91f   :  { %v5544_v24 = vsel %vm137_vm4, %v5531_v23, 0  ;;  %v5547_v55 = vsel %vm137_vm4, %v5532_v21, 0  ;;  %v5550_v14 = vsel %vm137_vm4, %v5533_v54, 0  ;;  %v5553_v34 = vsel %vm137_vm4, %v5534_v2, 0 }
 0x920   :  { %v5624_v8 = vand.u32 4294901760, %v5544_v24  ;;  %v5634_v51 = vand.u32 4294901760, %v5547_v55  ;;  %v5644_v41 = vand.u32 4294901760, %v5550_v14  ;;  %v5654_v6 = vand.u32 4294901760, %v5553_v34 }
 0x922   :  { %v5625_v45 = vsub.f32 %v5544_v24, %v5624_v8  ;;  %v5635_v37 = vsub.f32 %v5547_v55, %v5634_v51  ;;  %v5645_v49 = vsub.f32 %v5550_v14, %v5644_v41  ;;  %v5655_v30 = vsub.f32 %v5553_v34, %v5654_v6 }
 0x924   :  { %v5626_v18 = vand.u32 4294901760, %v5625_v45  ;;  %v5636_v11 = vand.u32 4294901760, %v5635_v37  ;;  %v5646_v48 = vand.u32 4294901760, %v5645_v49  ;;  %v5656_v63 = vand.u32 4294901760, %v5655_v30 }
 0x926   :  { %v5627_v33 = vsub.f32 %v5625_v45, %v5626_v18  ;;  %v5637_v15 = vsub.f32 %v5635_v37, %v5636_v11  ;;  %v5647_v59 = vsub.f32 %v5645_v49, %v5646_v48  ;;  %v5657_v13 = vsub.f32 %v5655_v30, %v5656_v63 }
 0x928   :  { %v5628_v42 = vand.u32 4294901760, %v5627_v33  ;;  %v5638_v9 = vand.u32 4294901760, %v5637_v15  ;;  %v5648_v32 = vand.u32 4294901760, %v5647_v59  ;;  %v5658_v46 = vand.u32 4294901760, %v5657_v13 }
 0x92a   :  { %7321 = vmatprep.mubr.f32.mxu0 %v5628_v42 }
 0x92b   :  { %7322 = vmatmul.mubr.f32.vlgmr.msra.gmra.mrb[28].mxu0 %v5638_v9 }
 0x92c   :  { %8212 = vmatpush3.bf16.msra.mxu0 %v11473_v40  ;;  %7324 = vmatprep.mubr.f32.mxu0 %v5648_v32 }
 0x92d   :  { %8214 = vmatprep.subr.bf16.mxu0 %v11476_v43 }
 0x92f   :  { %7325 = vmatmul.mubr.f32.gmra.mrb[30].mxu0 %v5658_v46 }
 0x930   :  { %8216 = vmatpush3.bf16.msra.mxu0 %v11476_v43  ;;  %7335 = vmatprep.mubr.f32.mxu0 %v5624_v8 }
 0x931   :  { %8218 = vmatprep.subr.bf16.mxu0 %v11471_v28 }
 0x933   :  { %7336 = vmatmul.mubr.f32.vlgmr.msra.gmra.mrb[28].mxu0 %v5634_v51 }
 0x934   :  { %8220 = vmatpush3.bf16.msra.mxu0 %v11471_v28  ;;  %7338 = vmatprep.mubr.f32.mxu0 %v5644_v41  ;;  %v5541_v28 = vsub.s32 5, %v12548_v17 }
 0x935   :  { %8222 = vmatprep.subr.bf16.mxu0 %v11478_v35 }
 0x936   :  { %v5542_v40 = vrot.slane %v11501_v47, %v5541_v28 }
 0x937   :  { %7339 = vmatmul.mubr.f32.gmra.mrb[30].mxu0 %v5654_v6 }
 0x938   :  { %8224 = vmatpush3.bf16.msra.mxu0 %v11478_v35  ;;  %7349 = vmatprep.mubr.f32.mxu0 %v5625_v45 }
 0x939   :  { %8226 = vmatprep.subr.bf16.mxu0 %v11463_v7 }
 0x93b   :  { %7350 = vmatmul.mubr.f32.vlgmr.msra.gmra.mrb[28].mxu0 %v5635_v37 }
 0x93c   :  { %8228 = vmatpush3.bf16.msra.mxu0 %v11463_v7  ;;  %7352 = vmatprep.mubr.f32.mxu0 %v5645_v49 }
 0x93d   :  { %8230 = vmatprep.subr.bf16.mxu0 %v11465_v61 }
 0x93f   :  { %7353 = vmatmul.mubr.f32.gmra.mrb[30].mxu0 %v5655_v30 }
 0x940   :  { %8232 = vmatpush3.bf16.msra.mxu0 %v11465_v61  ;;  %7363 = vmatprep.mubr.f32.mxu0 %v5626_v18 }
 0x941   :  { %8234 = vmatprep.subr.bf16.mxu0 %v11480_v5 }
 0x943   :  { %7364 = vmatmul.mubr.f32.vlgmr.msra.gmra.mrb[28].mxu0 %v5636_v11 }
 0x944   :  { %8236 = vmatpush3.bf16.msra.mxu0 %v11480_v5  ;;  %7366 = vmatprep.mubr.f32.mxu0 %v5646_v48 }
 0x945   :  { %8238 = vmatprep.subr.bf16.mxu0 %v11482_v10 }
 0x947   :  { %7367 = vmatmul.mubr.f32.gmra.mrb[30].mxu0 %v5656_v63 }
 0x948   :  { %8240 = vmatpush3.bf16.msra.mxu0 %v11482_v10  ;;  %7377 = vmatprep.mubr.f32.mxu0 %v5624_v8 }
 0x949   :  { %8242 = vmatprep.subr.bf16.mxu0 %v11463_v7 }
 0x94b   :  { %7378 = vmatmul.mubr.f32.vlgmr.msra.gmra.mrb[28].mxu0 %v5634_v51 }
 0x94c   :  { %8244 = vmatpush3.bf16.msra.mxu0 %v11463_v7  ;;  %7380 = vmatprep.mubr.f32.mxu0 %v5644_v41 }
 0x94d   :  { %8246 = vmatprep.subr.bf16.mxu0 %v11465_v61 }
 0x94f   :  { %7381 = vmatmul.mubr.f32.gmra.mrb[30].mxu0 %v5654_v6 }
 0x950   :  { %8248 = vmatpush3.bf16.msra.mxu0 %v11465_v61  ;;  %7391 = vmatprep.mubr.f32.mxu0 %v5624_v8 }
 0x953   :  { %7392 = vmatmul.mubr.f32.vlgmr.msra.gmra.mrb[28].mxu0 %v5634_v51 }
 0x954   :  { %7394 = vmatprep.mubr.f32.mxu0 %v5644_v41 }
 0x957   :  { %7395 = vmatmul.mubr.f32.gmra.mrb[30].mxu0 %v5654_v6 }
 0xa26   :  { %v7393_v43 = vpop.f32.mrb[28].mxu0 }
 0xa27   :  { %v8265_v35 = vadd.f32 %v7393_v43, %v5542_v40  ;;  %v6147_v5 = vpop.f32.mrb[29].mxu0 }
 0xa28   :  { %v8266_v10 = vadd.f32 %v6147_v5, %v5542_v40 }
 0xa29   :  { %6170 = vst.msk [vmem:[#allocation2 + $0x8] sm:$0xff] %vm137_vm4, %v8265_v35 }
 0xa2a   :  { %6169 = vst.msk [vmem:[#allocation2] sm:$0xff] %vm137_vm4, %v8266_v10  ;;  %v7396_v7 = vpop.f32.mrb[30].mxu0 }
 0xa2b   :  { %v8267_v61 = vadd.f32 %v7396_v7, %v5542_v40  ;;  %v6159_v25 = vpop.f32.mrb[31].mxu0 }
 0xa2c   :  { %v8268_v50 = vadd.f32 %v6159_v25, %v5542_v40 }
 0xa2d   :  { %6172 = vst.msk [vmem:[#allocation2 + $0x18] sm:$0xff] %vm137_vm4, %v8267_v61 }
 0xa2e   :  { %6171 = vst.msk [vmem:[#allocation2 + $0x10] sm:$0xff] %vm137_vm4, %v8268_v50 }
 0xa2f   :  { %8455 = shalt.err (!%p8452_p4)
}
 0xa30   :  { %s8456_s2 = scalar_lea.hbm %s11553_s7, 512 }
 0xa31   :  { %p8457_p5 = scmp.ne.s32.totalorder %s11553_s7, %s8456_s2  ;;  %p8460_p6 = scmp.lt.u32.totalorder %s8456_s2, %s11553_s7 }
 0xa33   :  { %p8462_p7 = pnand %p8460_p6, %p8457_p5 }
 0xa35   :  { %8465 = shalt.err (!%p8462_p7)
}
 0xa36   :  { %s8473_s20 = smov 128   ;;  %s8474_s21 = smov 8  }
 0xa37   :  { %6184 = dma.vmem_to_hbm [thread:$0]  %s6179_s14, 512, %s11553_s7, [#allocation3], %s8473_s20, %s8473_s20, %s8474_s21  }
 0xa38   :  { %8466 = dma.done.wait [#allocation3], 512  }
 0xa39   :  { %8467 = vsyncadd [#allocation3], 4294966784 }
 0xa3a   :  { %6188 = vsyncpa [#allocation3], 1 }

</bundles_post_ra>
